<compile_context>
chip_gen: v7x
topology: tpu7x:2x2x1
jax: 0.10.0
libtpu: 0.0.40
codegen_flags: <defaults>
</compile_context>

<pallas_src>
import functools

import jax
import jax.numpy as jnp
from jax.experimental import pallas as pl
from jax.experimental.pallas import tpu as pltpu


# ----------------------------------------------------------------------------
# Pallas kernel: fused adder-conv (negative L1) + BN affine + residual + ReLU
# ----------------------------------------------------------------------------
def _make_adder_bn_relu_kernel(cin: int, cout: int, h: int, w: int,
                               has_residual: bool):
    wp = w + 2          # padded row width == output slab row width (2 junk cols/row)
    m = h * wp          # flattened, lane-dense spatial extent per image

    def kernel(*refs):
        if has_residual:
            x_ref, w_ref, sb_ref, res_ref, o_ref = refs
        else:
            x_ref, w_ref, sb_ref, o_ref = refs
            res_ref = None

        # x_ref:   (1, Cin, Lp)   zero-padded image, per-channel planes flattened
        # w_ref:   (Cout, K)      adder weights, K ordered (kh, kw, ci)
        # sb_ref:  (Cout, 2)      BN scale / bias (merged)
        # res_ref: (1, Cout, M)   identity in packed layout (conv2 only)
        # o_ref:   (1, Cout, M)   packed output slab, M = H * (W + 2)
        #
        # AdderNet conv:  out[co, j] = -sum_k |x_tap_k[j] - W[co, k]|
        # accumulated tap-by-tap into a single (Cout, M) f32 tile (VPU only).
        acc = jnp.zeros((cout, m), jnp.float32)
        for kh in range(3):
            for kw in range(3):
                delta = kh * wp + kw                  # flat lane offset of this tap
                for ci in range(cin):
                    k = (kh * 3 + kw) * cin + ci
                    row = x_ref[0, ci:ci + 1, delta:delta + m]   # (1, M) tap values
                    wk = w_ref[:, k:k + 1]                       # (Cout, 1) weights
                    acc = acc - jnp.abs(row - wk).astype(jnp.float32)

        scale = sb_ref[:, 0:1]                        # (Cout, 1)
        bias = sb_ref[:, 1:2]                         # (Cout, 1)
        y = acc * scale + bias                        # BatchNorm (eval mode, affine)
        if has_residual:
            y = y + res_ref[0].astype(jnp.float32)    # residual add
        o_ref[0] = jnp.maximum(y, 0.0).astype(o_ref.dtype)   # ReLU

    return kernel


# ----------------------------------------------------------------------------
# Wrapper: layout plumbing + pallas_call
# ----------------------------------------------------------------------------
def adder_conv3x3_bn_relu(x_nchw, w_oihw, gamma, beta, mean, var, eps,
                          residual_nchw=None, io_dtype=jnp.float32):
    """Fused adder2d(3x3, stride=1, pad=1) -> BatchNorm2d(eval) -> (+res) -> ReLU.

    NCHW in / NCHW out.  io_dtype=jnp.bfloat16 halves the HBM traffic of the
    input / weight / residual streams on v6e / v7x (accumulation stays f32);
    keep f32 on v5e (no bf16 VPU) or when bit-accuracy vs f32 is required.
    """
    n, cin, h, w = x_nchw.shape
    cout, cin_w, kh_, kw_ = w_oihw.shape
    assert (cin_w, kh_, kw_) == (cin, 3, 3)

    wp = w + 2                      # W plus 1 left + 1 right zero column
    m = h * wp                      # lane-dense flattened spatial extent
    lp = (h + 3) * wp               # 1 top + 2 bottom zero rows (slack for max shift)
    k = 9 * cin

    # One zero-padded copy of the input (instead of a 9x im2col slab in HBM).
    xpad = jnp.pad(x_nchw, ((0, 0), (0, 0), (1, 2), (1, 1))).astype(io_dtype)
    xflat = xpad.reshape(n, cin, lp)

    # Weights laid out (Cout, K) with K ordered (kh, kw, ci).
    w_ck = jnp.transpose(w_oihw, (0, 2, 3, 1)).reshape(cout, k).astype(io_dtype)

    # BatchNorm folded to one (Cout, 2) scale/bias operand.
    # (Applied AFTER the L1 sum -- it must NOT be folded into the adder weights.)
    inv_std = 1.0 / jnp.sqrt(var + eps)
    scale = (gamma * inv_std).astype(jnp.float32)
    bias = (beta - mean * gamma * inv_std).astype(jnp.float32)
    sb = jnp.stack([scale, bias], axis=1)            # (Cout, 2)

    has_res = residual_nchw is not None
    inputs = [xflat, w_ck, sb]
    in_specs = [
        pl.BlockSpec((1, cin, lp), lambda i: (i, 0, 0)),   # one padded image / step
        pl.BlockSpec((cout, k), lambda i: (0, 0)),         # weights (resident)
        pl.BlockSpec((cout, 2), lambda i: (0, 0)),         # merged BN scale/bias
    ]
    io_size = jnp.dtype(io_dtype).itemsize
    res_bytes = 0
    if has_res:
        # Identity in the kernel's packed (Cout, H*Wp) layout (2 junk cols / row).
        res = jnp.pad(residual_nchw, ((0, 0), (0, 0), (0, 0), (0, 2)))
        res = res.reshape(n, cout, m).astype(io_dtype)
        inputs.append(res)
        in_specs.append(pl.BlockSpec((1, cout, m), lambda i: (i, 0, 0)))
        res_bytes = n * cout * m * io_size

    cost = pl.CostEstimate(
        flops=3 * n * cout * m * k,                  # sub + abs + accumulate (VPU)
        transcendentals=0,
        bytes_accessed=(n * cin * lp + cout * k) * io_size
                       + cout * 2 * 4 + res_bytes + n * cout * m * 4)

    out = pl.pallas_call(
        _make_adder_bn_relu_kernel(cin, cout, h, w, has_res),
        out_shape=jax.ShapeDtypeStruct((n, cout, m), jnp.float32),
        grid_spec=pltpu.PrefetchScalarGridSpec(
            num_scalar_prefetch=0,
            grid=(n,),                               # >= 2 steps: batch across TCs
            in_specs=in_specs,
            out_specs=pl.BlockSpec((1, cout, m), lambda i: (i, 0, 0)),
        ),
        compiler_params=pltpu.CompilerParams(
            dimension_semantics=("parallel",),
            vmem_limit_bytes=32 * 1024 * 1024),
        cost_estimate=cost,
    )(*inputs)

    # Strip the 2 junk columns per row: (N, Cout, H, Wp) -> (N, Cout, H, W).
    return out.reshape(n, cout, h, wp)[..., :w]


# ----------------------------------------------------------------------------
# BasicBlock forward (inplanes == planes, stride == 1, downsample == None)
# ----------------------------------------------------------------------------
@functools.partial(jax.jit, static_argnames=("eps",))
def basic_block_forward(x_nchw, w1, w2, bn1, bn2, eps=1e-5):
    # conv1 -> bn1 -> relu                         (fused; no residual stream)
    out = adder_conv3x3_bn_relu(x_nchw, w1, *bn1, eps, residual_nchw=None)
    # conv2 -> bn2 -> (+identity) -> relu          (fused; downsample is None)
    out = adder_conv3x3_bn_relu(out, w2, *bn2, eps, residual_nchw=x_nchw)
    return out


# ----------------------------------------------------------------------------
# Pure-JAX reference (validation only; NOT on the kernel path)
# ----------------------------------------------------------------------------
def _im2col(x_nhwc, ksize=3, stride=1, pad=1):
    n, h, w, c = x_nhwc.shape
    xp = jnp.pad(x_nhwc, ((0, 0), (pad, pad), (pad, pad), (0, 0)))
    ho = (h + 2 * pad - ksize) // stride + 1
    wo = (w + 2 * pad - ksize) // stride + 1
    pieces = []
    for kh in range(ksize):
        for kw in range(ksize):
            pieces.append(xp[:, kh::stride, kw::stride, :][:, :ho, :wo, :])
    p = jnp.stack(pieces, axis=3)                    # (N, Ho, Wo, 9, C)
    return p.reshape(n * ho * wo, ksize * ksize * c), ho, wo


def _adder_conv_ref(x_nhwc, w_oihw, stride=1):
    patches, ho, wo = _im2col(x_nhwc, stride=stride)
    cout = w_oihw.shape[0]
    k = patches.shape[1]
    wk = jnp.transpose(w_oihw, (2, 3, 1, 0)).reshape(k, cout)
    out = -jnp.sum(jnp.abs(patches[:, :, None] - wk[None, :, :]), axis=1)
    return out.reshape(x_nhwc.shape[0], ho, wo, cout)


def _basic_block_ref(x_nchw, w1, w2, bn1, bn2, eps=1e-5):
    def bn(y, params):
        g, b, mu, v = params
        return (y - mu) / jnp.sqrt(v + eps) * g + b
    x = jnp.transpose(x_nchw, (0, 2, 3, 1))
    out = jnp.maximum(bn(_adder_conv_ref(x, w1), bn1), 0.0)
    out = bn(_adder_conv_ref(out, w2), bn2) + x
    out = jnp.maximum(out, 0.0)
    return jnp.transpose(out, (0, 3, 1, 2))


# ----------------------------------------------------------------------------
if __name__ == "__main__":
    N, C, H, W = 2, 4, 16, 16      # inplanes == planes == 4, stride == 1
    planes = 4

    key = jax.random.PRNGKey(0)
    kx, k1, k2 = jax.random.split(key, 3)
    x = jax.random.normal(kx, (N, C, H, W), jnp.float32)
    w1 = 0.1 * jax.random.normal(k1, (planes, C, 3, 3), jnp.float32)
    w2 = 0.1 * jax.random.normal(k2, (planes, planes, 3, 3), jnp.float32)

    # BatchNorm2d init values: gamma=1, beta=0, running_mean=0, running_var=1
    bn1 = (jnp.ones((planes,)), jnp.zeros((planes,)),
           jnp.zeros((planes,)), jnp.ones((planes,)))
    bn2 = (jnp.ones((planes,)), jnp.zeros((planes,)),
           jnp.zeros((planes,)), jnp.ones((planes,)))

    out = basic_block_forward(x, w1, w2, bn1, bn2)
    out = jax.block_until_ready(out)

    ref = _basic_block_ref(x, w1, w2, bn1, bn2)
    assert out.shape == (N, planes, H, W)
    assert jnp.max(jnp.abs(out - ref)) < 1e-3, "mismatch vs pure-JAX reference"

    print("KERNEL_OK")
</pallas_src>

<mosaic_0001>
module attributes {stable_mosaic.version = 11 : i64} {
  func.func @kernel(%arg0: i32, %arg1: memref<1x4x342xf32, #tpu.memory_space<vmem>>, %arg2: memref<4x36xf32, #tpu.memory_space<vmem>>, %arg3: memref<4x2xf32, #tpu.memory_space<vmem>>, %arg4: memref<1x4x288xf32, #tpu.memory_space<vmem>>) attributes {dimension_semantics = [#tpu.dimension_semantics<parallel>], iteration_bounds = array<i64: 2>, scalar_prefetch = 0 : i64, scratch_operands = 0 : i64, tpu.core_type = #tpu.core_type<tc>, window_params = [{transform_indices = @transform_0, window_bounds = array<i64: 1, 4, 342>}, {pipeline_mode = #tpu.pipeline_mode<synchronous>, transform_indices = @transform_1, window_bounds = array<i64: 4, 36>}, {pipeline_mode = #tpu.pipeline_mode<synchronous>, transform_indices = @transform_2, window_bounds = array<i64: 4, 2>}, {transform_indices = @transform_3, window_bounds = array<i64: 1, 4, 288>}]} {
    %cst = arith.constant 0.000000e+00 : f32
    %0 = vector.broadcast %cst : f32 to vector<4x288xf32>
    %c0 = arith.constant 0 : index
    %c0_0 = arith.constant 0 : index
    %c0_1 = arith.constant 0 : index
    %1 = vector.load %arg1[%c0, %c0_0, %c0_1] : memref<1x4x342xf32, #tpu.memory_space<vmem>>, vector<1x1x288xf32>
    %2 = vector.shape_cast %1 : vector<1x1x288xf32> to vector<1x288xf32>
    %c0_2 = arith.constant 0 : index
    %c0_3 = arith.constant 0 : index
    %3 = vector.load %arg2[%c0_2, %c0_3] : memref<4x36xf32, #tpu.memory_space<vmem>>, vector<4x1xf32>
    %4 = vector.broadcast %2 : vector<1x288xf32> to vector<4x288xf32>
    %5 = vector.broadcast %3 : vector<4x1xf32> to vector<4x288xf32>
    %6 = arith.subf %4, %5 : vector<4x288xf32>
    %7 = math.absf %6 : vector<4x288xf32>
    %8 = arith.subf %0, %7 : vector<4x288xf32>
    %c0_4 = arith.constant 0 : index
    %c1 = arith.constant 1 : index
    %c0_5 = arith.constant 0 : index
    %9 = vector.load %arg1[%c0_4, %c1, %c0_5] : memref<1x4x342xf32, #tpu.memory_space<vmem>>, vector<1x1x288xf32>
    %10 = vector.shape_cast %9 : vector<1x1x288xf32> to vector<1x288xf32>
    %c0_6 = arith.constant 0 : index
    %c1_7 = arith.constant 1 : index
    %11 = vector.load %arg2[%c0_6, %c1_7] : memref<4x36xf32, #tpu.memory_space<vmem>>, vector<4x1xf32>
    %12 = vector.broadcast %10 : vector<1x288xf32> to vector<4x288xf32>
    %13 = vector.broadcast %11 : vector<4x1xf32> to vector<4x288xf32>
    %14 = arith.subf %12, %13 : vector<4x288xf32>
    %15 = math.absf %14 : vector<4x288xf32>
    %16 = arith.subf %8, %15 : vector<4x288xf32>
    %c0_8 = arith.constant 0 : index
    %c2 = arith.constant 2 : index
    %c0_9 = arith.constant 0 : index
    %17 = vector.load %arg1[%c0_8, %c2, %c0_9] : memref<1x4x342xf32, #tpu.memory_space<vmem>>, vector<1x1x288xf32>
    %18 = vector.shape_cast %17 : vector<1x1x288xf32> to vector<1x288xf32>
    %c0_10 = arith.constant 0 : index
    %c2_11 = arith.constant 2 : index
    %19 = vector.load %arg2[%c0_10, %c2_11] : memref<4x36xf32, #tpu.memory_space<vmem>>, vector<4x1xf32>
    %20 = vector.broadcast %18 : vector<1x288xf32> to vector<4x288xf32>
    %21 = vector.broadcast %19 : vector<4x1xf32> to vector<4x288xf32>
    %22 = arith.subf %20, %21 : vector<4x288xf32>
    %23 = math.absf %22 : vector<4x288xf32>
    %24 = arith.subf %16, %23 : vector<4x288xf32>
    %c0_12 = arith.constant 0 : index
    %c3 = arith.constant 3 : index
    %c0_13 = arith.constant 0 : index
    %25 = vector.load %arg1[%c0_12, %c3, %c0_13] : memref<1x4x342xf32, #tpu.memory_space<vmem>>, vector<1x1x288xf32>
    %26 = vector.shape_cast %25 : vector<1x1x288xf32> to vector<1x288xf32>
    %c0_14 = arith.constant 0 : index
    %c3_15 = arith.constant 3 : index
    %27 = vector.load %arg2[%c0_14, %c3_15] : memref<4x36xf32, #tpu.memory_space<vmem>>, vector<4x1xf32>
    %28 = vector.broadcast %26 : vector<1x288xf32> to vector<4x288xf32>
    %29 = vector.broadcast %27 : vector<4x1xf32> to vector<4x288xf32>
    %30 = arith.subf %28, %29 : vector<4x288xf32>
    %31 = math.absf %30 : vector<4x288xf32>
    %32 = arith.subf %24, %31 : vector<4x288xf32>
    %c0_16 = arith.constant 0 : index
    %c0_17 = arith.constant 0 : index
    %c1_18 = arith.constant 1 : index
    %33 = vector.load %arg1[%c0_16, %c0_17, %c1_18] : memref<1x4x342xf32, #tpu.memory_space<vmem>>, vector<1x1x288xf32>
    %34 = vector.shape_cast %33 : vector<1x1x288xf32> to vector<1x288xf32>
    %c0_19 = arith.constant 0 : index
    %c4 = arith.constant 4 : index
    %35 = vector.load %arg2[%c0_19, %c4] : memref<4x36xf32, #tpu.memory_space<vmem>>, vector<4x1xf32>
    %36 = vector.broadcast %34 : vector<1x288xf32> to vector<4x288xf32>
    %37 = vector.broadcast %35 : vector<4x1xf32> to vector<4x288xf32>
    %38 = arith.subf %36, %37 : vector<4x288xf32>
    %39 = math.absf %38 : vector<4x288xf32>
    %40 = arith.subf %32, %39 : vector<4x288xf32>
    %c0_20 = arith.constant 0 : index
    %c1_21 = arith.constant 1 : index
    %c1_22 = arith.constant 1 : index
    %41 = vector.load %arg1[%c0_20, %c1_21, %c1_22] : memref<1x4x342xf32, #tpu.memory_space<vmem>>, vector<1x1x288xf32>
    %42 = vector.shape_cast %41 : vector<1x1x288xf32> to vector<1x288xf32>
    %c0_23 = arith.constant 0 : index
    %c5 = arith.constant 5 : index
    %43 = vector.load %arg2[%c0_23, %c5] : memref<4x36xf32, #tpu.memory_space<vmem>>, vector<4x1xf32>
    %44 = vector.broadcast %42 : vector<1x288xf32> to vector<4x288xf32>
    %45 = vector.broadcast %43 : vector<4x1xf32> to vector<4x288xf32>
    %46 = arith.subf %44, %45 : vector<4x288xf32>
    %47 = math.absf %46 : vector<4x288xf32>
    %48 = arith.subf %40, %47 : vector<4x288xf32>
    %c0_24 = arith.constant 0 : index
    %c2_25 = arith.constant 2 : index
    %c1_26 = arith.constant 1 : index
    %49 = vector.load %arg1[%c0_24, %c2_25, %c1_26] : memref<1x4x342xf32, #tpu.memory_space<vmem>>, vector<1x1x288xf32>
    %50 = vector.shape_cast %49 : vector<1x1x288xf32> to vector<1x288xf32>
    %c0_27 = arith.constant 0 : index
    %c6 = arith.constant 6 : index
    %51 = vector.load %arg2[%c0_27, %c6] : memref<4x36xf32, #tpu.memory_space<vmem>>, vector<4x1xf32>
    %52 = vector.broadcast %50 : vector<1x288xf32> to vector<4x288xf32>
    %53 = vector.broadcast %51 : vector<4x1xf32> to vector<4x288xf32>
    %54 = arith.subf %52, %53 : vector<4x288xf32>
    %55 = math.absf %54 : vector<4x288xf32>
    %56 = arith.subf %48, %55 : vector<4x288xf32>
    %c0_28 = arith.constant 0 : index
    %c3_29 = arith.constant 3 : index
    %c1_30 = arith.constant 1 : index
    %57 = vector.load %arg1[%c0_28, %c3_29, %c1_30] : memref<1x4x342xf32, #tpu.memory_space<vmem>>, vector<1x1x288xf32>
    %58 = vector.shape_cast %57 : vector<1x1x288xf32> to vector<1x288xf32>
    %c0_31 = arith.constant 0 : index
    %c7 = arith.constant 7 : index
    %59 = vector.load %arg2[%c0_31, %c7] : memref<4x36xf32, #tpu.memory_space<vmem>>, vector<4x1xf32>
    %60 = vector.broadcast %58 : vector<1x288xf32> to vector<4x288xf32>
    %61 = vector.broadcast %59 : vector<4x1xf32> to vector<4x288xf32>
    %62 = arith.subf %60, %61 : vector<4x288xf32>
    %63 = math.absf %62 : vector<4x288xf32>
    %64 = arith.subf %56, %63 : vector<4x288xf32>
    %c0_32 = arith.constant 0 : index
    %c0_33 = arith.constant 0 : index
    %c2_34 = arith.constant 2 : index
    %65 = vector.load %arg1[%c0_32, %c0_33, %c2_34] : memref<1x4x342xf32, #tpu.memory_space<vmem>>, vector<1x1x288xf32>
    %66 = vector.shape_cast %65 : vector<1x1x288xf32> to vector<1x288xf32>
    %c0_35 = arith.constant 0 : index
    %c8 = arith.constant 8 : index
    %67 = vector.load %arg2[%c0_35, %c8] : memref<4x36xf32, #tpu.memory_space<vmem>>, vector<4x1xf32>
    %68 = vector.broadcast %66 : vector<1x288xf32> to vector<4x288xf32>
    %69 = vector.broadcast %67 : vector<4x1xf32> to vector<4x288xf32>
    %70 = arith.subf %68, %69 : vector<4x288xf32>
    %71 = math.absf %70 : vector<4x288xf32>
    %72 = arith.subf %64, %71 : vector<4x288xf32>
    %c0_36 = arith.constant 0 : index
    %c1_37 = arith.constant 1 : index
    %c2_38 = arith.constant 2 : index
    %73 = vector.load %arg1[%c0_36, %c1_37, %c2_38] : memref<1x4x342xf32, #tpu.memory_space<vmem>>, vector<1x1x288xf32>
    %74 = vector.shape_cast %73 : vector<1x1x288xf32> to vector<1x288xf32>
    %c0_39 = arith.constant 0 : index
    %c9 = arith.constant 9 : index
    %75 = vector.load %arg2[%c0_39, %c9] : memref<4x36xf32, #tpu.memory_space<vmem>>, vector<4x1xf32>
    %76 = vector.broadcast %74 : vector<1x288xf32> to vector<4x288xf32>
    %77 = vector.broadcast %75 : vector<4x1xf32> to vector<4x288xf32>
    %78 = arith.subf %76, %77 : vector<4x288xf32>
    %79 = math.absf %78 : vector<4x288xf32>
    %80 = arith.subf %72, %79 : vector<4x288xf32>
    %c0_40 = arith.constant 0 : index
    %c2_41 = arith.constant 2 : index
    %c2_42 = arith.constant 2 : index
    %81 = vector.load %arg1[%c0_40, %c2_41, %c2_42] : memref<1x4x342xf32, #tpu.memory_space<vmem>>, vector<1x1x288xf32>
    %82 = vector.shape_cast %81 : vector<1x1x288xf32> to vector<1x288xf32>
    %c0_43 = arith.constant 0 : index
    %c10 = arith.constant 10 : index
    %83 = vector.load %arg2[%c0_43, %c10] : memref<4x36xf32, #tpu.memory_space<vmem>>, vector<4x1xf32>
    %84 = vector.broadcast %82 : vector<1x288xf32> to vector<4x288xf32>
    %85 = vector.broadcast %83 : vector<4x1xf32> to vector<4x288xf32>
    %86 = arith.subf %84, %85 : vector<4x288xf32>
    %87 = math.absf %86 : vector<4x288xf32>
    %88 = arith.subf %80, %87 : vector<4x288xf32>
    %c0_44 = arith.constant 0 : index
    %c3_45 = arith.constant 3 : index
    %c2_46 = arith.constant 2 : index
    %89 = vector.load %arg1[%c0_44, %c3_45, %c2_46] : memref<1x4x342xf32, #tpu.memory_space<vmem>>, vector<1x1x288xf32>
    %90 = vector.shape_cast %89 : vector<1x1x288xf32> to vector<1x288xf32>
    %c0_47 = arith.constant 0 : index
    %c11 = arith.constant 11 : index
    %91 = vector.load %arg2[%c0_47, %c11] : memref<4x36xf32, #tpu.memory_space<vmem>>, vector<4x1xf32>
    %92 = vector.broadcast %90 : vector<1x288xf32> to vector<4x288xf32>
    %93 = vector.broadcast %91 : vector<4x1xf32> to vector<4x288xf32>
    %94 = arith.subf %92, %93 : vector<4x288xf32>
    %95 = math.absf %94 : vector<4x288xf32>
    %96 = arith.subf %88, %95 : vector<4x288xf32>
    %c0_48 = arith.constant 0 : index
    %c0_49 = arith.constant 0 : index
    %c18 = arith.constant 18 : index
    %97 = vector.load %arg1[%c0_48, %c0_49, %c18] : memref<1x4x342xf32, #tpu.memory_space<vmem>>, vector<1x1x288xf32>
    %98 = vector.shape_cast %97 : vector<1x1x288xf32> to vector<1x288xf32>
    %c0_50 = arith.constant 0 : index
    %c12 = arith.constant 12 : index
    %99 = vector.load %arg2[%c0_50, %c12] : memref<4x36xf32, #tpu.memory_space<vmem>>, vector<4x1xf32>
    %100 = vector.broadcast %98 : vector<1x288xf32> to vector<4x288xf32>
    %101 = vector.broadcast %99 : vector<4x1xf32> to vector<4x288xf32>
    %102 = arith.subf %100, %101 : vector<4x288xf32>
    %103 = math.absf %102 : vector<4x288xf32>
    %104 = arith.subf %96, %103 : vector<4x288xf32>
    %c0_51 = arith.constant 0 : index
    %c1_52 = arith.constant 1 : index
    %c18_53 = arith.constant 18 : index
    %105 = vector.load %arg1[%c0_51, %c1_52, %c18_53] : memref<1x4x342xf32, #tpu.memory_space<vmem>>, vector<1x1x288xf32>
    %106 = vector.shape_cast %105 : vector<1x1x288xf32> to vector<1x288xf32>
    %c0_54 = arith.constant 0 : index
    %c13 = arith.constant 13 : index
    %107 = vector.load %arg2[%c0_54, %c13] : memref<4x36xf32, #tpu.memory_space<vmem>>, vector<4x1xf32>
    %108 = vector.broadcast %106 : vector<1x288xf32> to vector<4x288xf32>
    %109 = vector.broadcast %107 : vector<4x1xf32> to vector<4x288xf32>
    %110 = arith.subf %108, %109 : vector<4x288xf32>
    %111 = math.absf %110 : vector<4x288xf32>
    %112 = arith.subf %104, %111 : vector<4x288xf32>
    %c0_55 = arith.constant 0 : index
    %c2_56 = arith.constant 2 : index
    %c18_57 = arith.constant 18 : index
    %113 = vector.load %arg1[%c0_55, %c2_56, %c18_57] : memref<1x4x342xf32, #tpu.memory_space<vmem>>, vector<1x1x288xf32>
    %114 = vector.shape_cast %113 : vector<1x1x288xf32> to vector<1x288xf32>
    %c0_58 = arith.constant 0 : index
    %c14 = arith.constant 14 : index
    %115 = vector.load %arg2[%c0_58, %c14] : memref<4x36xf32, #tpu.memory_space<vmem>>, vector<4x1xf32>
    %116 = vector.broadcast %114 : vector<1x288xf32> to vector<4x288xf32>
    %117 = vector.broadcast %115 : vector<4x1xf32> to vector<4x288xf32>
    %118 = arith.subf %116, %117 : vector<4x288xf32>
    %119 = math.absf %118 : vector<4x288xf32>
    %120 = arith.subf %112, %119 : vector<4x288xf32>
    %c0_59 = arith.constant 0 : index
    %c3_60 = arith.constant 3 : index
    %c18_61 = arith.constant 18 : index
    %121 = vector.load %arg1[%c0_59, %c3_60, %c18_61] : memref<1x4x342xf32, #tpu.memory_space<vmem>>, vector<1x1x288xf32>
    %122 = vector.shape_cast %121 : vector<1x1x288xf32> to vector<1x288xf32>
    %c0_62 = arith.constant 0 : index
    %c15 = arith.constant 15 : index
    %123 = vector.load %arg2[%c0_62, %c15] : memref<4x36xf32, #tpu.memory_space<vmem>>, vector<4x1xf32>
    %124 = vector.broadcast %122 : vector<1x288xf32> to vector<4x288xf32>
    %125 = vector.broadcast %123 : vector<4x1xf32> to vector<4x288xf32>
    %126 = arith.subf %124, %125 : vector<4x288xf32>
    %127 = math.absf %126 : vector<4x288xf32>
    %128 = arith.subf %120, %127 : vector<4x288xf32>
    %c0_63 = arith.constant 0 : index
    %c0_64 = arith.constant 0 : index
    %c19 = arith.constant 19 : index
    %129 = vector.load %arg1[%c0_63, %c0_64, %c19] : memref<1x4x342xf32, #tpu.memory_space<vmem>>, vector<1x1x288xf32>
    %130 = vector.shape_cast %129 : vector<1x1x288xf32> to vector<1x288xf32>
    %c0_65 = arith.constant 0 : index
    %c16 = arith.constant 16 : index
    %131 = vector.load %arg2[%c0_65, %c16] : memref<4x36xf32, #tpu.memory_space<vmem>>, vector<4x1xf32>
    %132 = vector.broadcast %130 : vector<1x288xf32> to vector<4x288xf32>
    %133 = vector.broadcast %131 : vector<4x1xf32> to vector<4x288xf32>
    %134 = arith.subf %132, %133 : vector<4x288xf32>
    %135 = math.absf %134 : vector<4x288xf32>
    %136 = arith.subf %128, %135 : vector<4x288xf32>
    %c0_66 = arith.constant 0 : index
    %c1_67 = arith.constant 1 : index
    %c19_68 = arith.constant 19 : index
    %137 = vector.load %arg1[%c0_66, %c1_67, %c19_68] : memref<1x4x342xf32, #tpu.memory_space<vmem>>, vector<1x1x288xf32>
    %138 = vector.shape_cast %137 : vector<1x1x288xf32> to vector<1x288xf32>
    %c0_69 = arith.constant 0 : index
    %c17 = arith.constant 17 : index
    %139 = vector.load %arg2[%c0_69, %c17] : memref<4x36xf32, #tpu.memory_space<vmem>>, vector<4x1xf32>
    %140 = vector.broadcast %138 : vector<1x288xf32> to vector<4x288xf32>
    %141 = vector.broadcast %139 : vector<4x1xf32> to vector<4x288xf32>
    %142 = arith.subf %140, %141 : vector<4x288xf32>
    %143 = math.absf %142 : vector<4x288xf32>
    %144 = arith.subf %136, %143 : vector<4x288xf32>
    %c0_70 = arith.constant 0 : index
    %c2_71 = arith.constant 2 : index
    %c19_72 = arith.constant 19 : index
    %145 = vector.load %arg1[%c0_70, %c2_71, %c19_72] : memref<1x4x342xf32, #tpu.memory_space<vmem>>, vector<1x1x288xf32>
    %146 = vector.shape_cast %145 : vector<1x1x288xf32> to vector<1x288xf32>
    %c0_73 = arith.constant 0 : index
    %c18_74 = arith.constant 18 : index
    %147 = vector.load %arg2[%c0_73, %c18_74] : memref<4x36xf32, #tpu.memory_space<vmem>>, vector<4x1xf32>
    %148 = vector.broadcast %146 : vector<1x288xf32> to vector<4x288xf32>
    %149 = vector.broadcast %147 : vector<4x1xf32> to vector<4x288xf32>
    %150 = arith.subf %148, %149 : vector<4x288xf32>
    %151 = math.absf %150 : vector<4x288xf32>
    %152 = arith.subf %144, %151 : vector<4x288xf32>
    %c0_75 = arith.constant 0 : index
    %c3_76 = arith.constant 3 : index
    %c19_77 = arith.constant 19 : index
    %153 = vector.load %arg1[%c0_75, %c3_76, %c19_77] : memref<1x4x342xf32, #tpu.memory_space<vmem>>, vector<1x1x288xf32>
    %154 = vector.shape_cast %153 : vector<1x1x288xf32> to vector<1x288xf32>
    %c0_78 = arith.constant 0 : index
    %c19_79 = arith.constant 19 : index
    %155 = vector.load %arg2[%c0_78, %c19_79] : memref<4x36xf32, #tpu.memory_space<vmem>>, vector<4x1xf32>
    %156 = vector.broadcast %154 : vector<1x288xf32> to vector<4x288xf32>
    %157 = vector.broadcast %155 : vector<4x1xf32> to vector<4x288xf32>
    %158 = arith.subf %156, %157 : vector<4x288xf32>
    %159 = math.absf %158 : vector<4x288xf32>
    %160 = arith.subf %152, %159 : vector<4x288xf32>
    %c0_80 = arith.constant 0 : index
    %c0_81 = arith.constant 0 : index
    %c20 = arith.constant 20 : index
    %161 = vector.load %arg1[%c0_80, %c0_81, %c20] : memref<1x4x342xf32, #tpu.memory_space<vmem>>, vector<1x1x288xf32>
    %162 = vector.shape_cast %161 : vector<1x1x288xf32> to vector<1x288xf32>
    %c0_82 = arith.constant 0 : index
    %c20_83 = arith.constant 20 : index
    %163 = vector.load %arg2[%c0_82, %c20_83] : memref<4x36xf32, #tpu.memory_space<vmem>>, vector<4x1xf32>
    %164 = vector.broadcast %162 : vector<1x288xf32> to vector<4x288xf32>
    %165 = vector.broadcast %163 : vector<4x1xf32> to vector<4x288xf32>
    %166 = arith.subf %164, %165 : vector<4x288xf32>
    %167 = math.absf %166 : vector<4x288xf32>
    %168 = arith.subf %160, %167 : vector<4x288xf32>
    %c0_84 = arith.constant 0 : index
    %c1_85 = arith.constant 1 : index
    %c20_86 = arith.constant 20 : index
    %169 = vector.load %arg1[%c0_84, %c1_85, %c20_86] : memref<1x4x342xf32, #tpu.memory_space<vmem>>, vector<1x1x288xf32>
    %170 = vector.shape_cast %169 : vector<1x1x288xf32> to vector<1x288xf32>
    %c0_87 = arith.constant 0 : index
    %c21 = arith.constant 21 : index
    %171 = vector.load %arg2[%c0_87, %c21] : memref<4x36xf32, #tpu.memory_space<vmem>>, vector<4x1xf32>
    %172 = vector.broadcast %170 : vector<1x288xf32> to vector<4x288xf32>
    %173 = vector.broadcast %171 : vector<4x1xf32> to vector<4x288xf32>
    %174 = arith.subf %172, %173 : vector<4x288xf32>
    %175 = math.absf %174 : vector<4x288xf32>
    %176 = arith.subf %168, %175 : vector<4x288xf32>
    %c0_88 = arith.constant 0 : index
    %c2_89 = arith.constant 2 : index
    %c20_90 = arith.constant 20 : index
    %177 = vector.load %arg1[%c0_88, %c2_89, %c20_90] : memref<1x4x342xf32, #tpu.memory_space<vmem>>, vector<1x1x288xf32>
    %178 = vector.shape_cast %177 : vector<1x1x288xf32> to vector<1x288xf32>
    %c0_91 = arith.constant 0 : index
    %c22 = arith.constant 22 : index
    %179 = vector.load %arg2[%c0_91, %c22] : memref<4x36xf32, #tpu.memory_space<vmem>>, vector<4x1xf32>
    %180 = vector.broadcast %178 : vector<1x288xf32> to vector<4x288xf32>
    %181 = vector.broadcast %179 : vector<4x1xf32> to vector<4x288xf32>
    %182 = arith.subf %180, %181 : vector<4x288xf32>
    %183 = math.absf %182 : vector<4x288xf32>
    %184 = arith.subf %176, %183 : vector<4x288xf32>
    %c0_92 = arith.constant 0 : index
    %c3_93 = arith.constant 3 : index
    %c20_94 = arith.constant 20 : index
    %185 = vector.load %arg1[%c0_92, %c3_93, %c20_94] : memref<1x4x342xf32, #tpu.memory_space<vmem>>, vector<1x1x288xf32>
    %186 = vector.shape_cast %185 : vector<1x1x288xf32> to vector<1x288xf32>
    %c0_95 = arith.constant 0 : index
    %c23 = arith.constant 23 : index
    %187 = vector.load %arg2[%c0_95, %c23] : memref<4x36xf32, #tpu.memory_space<vmem>>, vector<4x1xf32>
    %188 = vector.broadcast %186 : vector<1x288xf32> to vector<4x288xf32>
    %189 = vector.broadcast %187 : vector<4x1xf32> to vector<4x288xf32>
    %190 = arith.subf %188, %189 : vector<4x288xf32>
    %191 = math.absf %190 : vector<4x288xf32>
    %192 = arith.subf %184, %191 : vector<4x288xf32>
    %c0_96 = arith.constant 0 : index
    %c0_97 = arith.constant 0 : index
    %c36 = arith.constant 36 : index
    %193 = vector.load %arg1[%c0_96, %c0_97, %c36] : memref<1x4x342xf32, #tpu.memory_space<vmem>>, vector<1x1x288xf32>
    %194 = vector.shape_cast %193 : vector<1x1x288xf32> to vector<1x288xf32>
    %c0_98 = arith.constant 0 : index
    %c24 = arith.constant 24 : index
    %195 = vector.load %arg2[%c0_98, %c24] : memref<4x36xf32, #tpu.memory_space<vmem>>, vector<4x1xf32>
    %196 = vector.broadcast %194 : vector<1x288xf32> to vector<4x288xf32>
    %197 = vector.broadcast %195 : vector<4x1xf32> to vector<4x288xf32>
    %198 = arith.subf %196, %197 : vector<4x288xf32>
    %199 = math.absf %198 : vector<4x288xf32>
    %200 = arith.subf %192, %199 : vector<4x288xf32>
    %c0_99 = arith.constant 0 : index
    %c1_100 = arith.constant 1 : index
    %c36_101 = arith.constant 36 : index
    %201 = vector.load %arg1[%c0_99, %c1_100, %c36_101] : memref<1x4x342xf32, #tpu.memory_space<vmem>>, vector<1x1x288xf32>
    %202 = vector.shape_cast %201 : vector<1x1x288xf32> to vector<1x288xf32>
    %c0_102 = arith.constant 0 : index
    %c25 = arith.constant 25 : index
    %203 = vector.load %arg2[%c0_102, %c25] : memref<4x36xf32, #tpu.memory_space<vmem>>, vector<4x1xf32>
    %204 = vector.broadcast %202 : vector<1x288xf32> to vector<4x288xf32>
    %205 = vector.broadcast %203 : vector<4x1xf32> to vector<4x288xf32>
    %206 = arith.subf %204, %205 : vector<4x288xf32>
    %207 = math.absf %206 : vector<4x288xf32>
    %208 = arith.subf %200, %207 : vector<4x288xf32>
    %c0_103 = arith.constant 0 : index
    %c2_104 = arith.constant 2 : index
    %c36_105 = arith.constant 36 : index
    %209 = vector.load %arg1[%c0_103, %c2_104, %c36_105] : memref<1x4x342xf32, #tpu.memory_space<vmem>>, vector<1x1x288xf32>
    %210 = vector.shape_cast %209 : vector<1x1x288xf32> to vector<1x288xf32>
    %c0_106 = arith.constant 0 : index
    %c26 = arith.constant 26 : index
    %211 = vector.load %arg2[%c0_106, %c26] : memref<4x36xf32, #tpu.memory_space<vmem>>, vector<4x1xf32>
    %212 = vector.broadcast %210 : vector<1x288xf32> to vector<4x288xf32>
    %213 = vector.broadcast %211 : vector<4x1xf32> to vector<4x288xf32>
    %214 = arith.subf %212, %213 : vector<4x288xf32>
    %215 = math.absf %214 : vector<4x288xf32>
    %216 = arith.subf %208, %215 : vector<4x288xf32>
    %c0_107 = arith.constant 0 : index
    %c3_108 = arith.constant 3 : index
    %c36_109 = arith.constant 36 : index
    %217 = vector.load %arg1[%c0_107, %c3_108, %c36_109] : memref<1x4x342xf32, #tpu.memory_space<vmem>>, vector<1x1x288xf32>
    %218 = vector.shape_cast %217 : vector<1x1x288xf32> to vector<1x288xf32>
    %c0_110 = arith.constant 0 : index
    %c27 = arith.constant 27 : index
    %219 = vector.load %arg2[%c0_110, %c27] : memref<4x36xf32, #tpu.memory_space<vmem>>, vector<4x1xf32>
    %220 = vector.broadcast %218 : vector<1x288xf32> to vector<4x288xf32>
    %221 = vector.broadcast %219 : vector<4x1xf32> to vector<4x288xf32>
    %222 = arith.subf %220, %221 : vector<4x288xf32>
    %223 = math.absf %222 : vector<4x288xf32>
    %224 = arith.subf %216, %223 : vector<4x288xf32>
    %c0_111 = arith.constant 0 : index
    %c0_112 = arith.constant 0 : index
    %c37 = arith.constant 37 : index
    %225 = vector.load %arg1[%c0_111, %c0_112, %c37] : memref<1x4x342xf32, #tpu.memory_space<vmem>>, vector<1x1x288xf32>
    %226 = vector.shape_cast %225 : vector<1x1x288xf32> to vector<1x288xf32>
    %c0_113 = arith.constant 0 : index
    %c28 = arith.constant 28 : index
    %227 = vector.load %arg2[%c0_113, %c28] : memref<4x36xf32, #tpu.memory_space<vmem>>, vector<4x1xf32>
    %228 = vector.broadcast %226 : vector<1x288xf32> to vector<4x288xf32>
    %229 = vector.broadcast %227 : vector<4x1xf32> to vector<4x288xf32>
    %230 = arith.subf %228, %229 : vector<4x288xf32>
    %231 = math.absf %230 : vector<4x288xf32>
    %232 = arith.subf %224, %231 : vector<4x288xf32>
    %c0_114 = arith.constant 0 : index
    %c1_115 = arith.constant 1 : index
    %c37_116 = arith.constant 37 : index
    %233 = vector.load %arg1[%c0_114, %c1_115, %c37_116] : memref<1x4x342xf32, #tpu.memory_space<vmem>>, vector<1x1x288xf32>
    %234 = vector.shape_cast %233 : vector<1x1x288xf32> to vector<1x288xf32>
    %c0_117 = arith.constant 0 : index
    %c29 = arith.constant 29 : index
    %235 = vector.load %arg2[%c0_117, %c29] : memref<4x36xf32, #tpu.memory_space<vmem>>, vector<4x1xf32>
    %236 = vector.broadcast %234 : vector<1x288xf32> to vector<4x288xf32>
    %237 = vector.broadcast %235 : vector<4x1xf32> to vector<4x288xf32>
    %238 = arith.subf %236, %237 : vector<4x288xf32>
    %239 = math.absf %238 : vector<4x288xf32>
    %240 = arith.subf %232, %239 : vector<4x288xf32>
    %c0_118 = arith.constant 0 : index
    %c2_119 = arith.constant 2 : index
    %c37_120 = arith.constant 37 : index
    %241 = vector.load %arg1[%c0_118, %c2_119, %c37_120] : memref<1x4x342xf32, #tpu.memory_space<vmem>>, vector<1x1x288xf32>
    %242 = vector.shape_cast %241 : vector<1x1x288xf32> to vector<1x288xf32>
    %c0_121 = arith.constant 0 : index
    %c30 = arith.constant 30 : index
    %243 = vector.load %arg2[%c0_121, %c30] : memref<4x36xf32, #tpu.memory_space<vmem>>, vector<4x1xf32>
    %244 = vector.broadcast %242 : vector<1x288xf32> to vector<4x288xf32>
    %245 = vector.broadcast %243 : vector<4x1xf32> to vector<4x288xf32>
    %246 = arith.subf %244, %245 : vector<4x288xf32>
    %247 = math.absf %246 : vector<4x288xf32>
    %248 = arith.subf %240, %247 : vector<4x288xf32>
    %c0_122 = arith.constant 0 : index
    %c3_123 = arith.constant 3 : index
    %c37_124 = arith.constant 37 : index
    %249 = vector.load %arg1[%c0_122, %c3_123, %c37_124] : memref<1x4x342xf32, #tpu.memory_space<vmem>>, vector<1x1x288xf32>
    %250 = vector.shape_cast %249 : vector<1x1x288xf32> to vector<1x288xf32>
    %c0_125 = arith.constant 0 : index
    %c31 = arith.constant 31 : index
    %251 = vector.load %arg2[%c0_125, %c31] : memref<4x36xf32, #tpu.memory_space<vmem>>, vector<4x1xf32>
    %252 = vector.broadcast %250 : vector<1x288xf32> to vector<4x288xf32>
    %253 = vector.broadcast %251 : vector<4x1xf32> to vector<4x288xf32>
    %254 = arith.subf %252, %253 : vector<4x288xf32>
    %255 = math.absf %254 : vector<4x288xf32>
    %256 = arith.subf %248, %255 : vector<4x288xf32>
    %c0_126 = arith.constant 0 : index
    %c0_127 = arith.constant 0 : index
    %c38 = arith.constant 38 : index
    %257 = vector.load %arg1[%c0_126, %c0_127, %c38] : memref<1x4x342xf32, #tpu.memory_space<vmem>>, vector<1x1x288xf32>
    %258 = vector.shape_cast %257 : vector<1x1x288xf32> to vector<1x288xf32>
    %c0_128 = arith.constant 0 : index
    %c32 = arith.constant 32 : index
    %259 = vector.load %arg2[%c0_128, %c32] : memref<4x36xf32, #tpu.memory_space<vmem>>, vector<4x1xf32>
    %260 = vector.broadcast %258 : vector<1x288xf32> to vector<4x288xf32>
    %261 = vector.broadcast %259 : vector<4x1xf32> to vector<4x288xf32>
    %262 = arith.subf %260, %261 : vector<4x288xf32>
    %263 = math.absf %262 : vector<4x288xf32>
    %264 = arith.subf %256, %263 : vector<4x288xf32>
    %c0_129 = arith.constant 0 : index
    %c1_130 = arith.constant 1 : index
    %c38_131 = arith.constant 38 : index
    %265 = vector.load %arg1[%c0_129, %c1_130, %c38_131] : memref<1x4x342xf32, #tpu.memory_space<vmem>>, vector<1x1x288xf32>
    %266 = vector.shape_cast %265 : vector<1x1x288xf32> to vector<1x288xf32>
    %c0_132 = arith.constant 0 : index
    %c33 = arith.constant 33 : index
    %267 = vector.load %arg2[%c0_132, %c33] : memref<4x36xf32, #tpu.memory_space<vmem>>, vector<4x1xf32>
    %268 = vector.broadcast %266 : vector<1x288xf32> to vector<4x288xf32>
    %269 = vector.broadcast %267 : vector<4x1xf32> to vector<4x288xf32>
    %270 = arith.subf %268, %269 : vector<4x288xf32>
    %271 = math.absf %270 : vector<4x288xf32>
    %272 = arith.subf %264, %271 : vector<4x288xf32>
    %c0_133 = arith.constant 0 : index
    %c2_134 = arith.constant 2 : index
    %c38_135 = arith.constant 38 : index
    %273 = vector.load %arg1[%c0_133, %c2_134, %c38_135] : memref<1x4x342xf32, #tpu.memory_space<vmem>>, vector<1x1x288xf32>
    %274 = vector.shape_cast %273 : vector<1x1x288xf32> to vector<1x288xf32>
    %c0_136 = arith.constant 0 : index
    %c34 = arith.constant 34 : index
    %275 = vector.load %arg2[%c0_136, %c34] : memref<4x36xf32, #tpu.memory_space<vmem>>, vector<4x1xf32>
    %276 = vector.broadcast %274 : vector<1x288xf32> to vector<4x288xf32>
    %277 = vector.broadcast %275 : vector<4x1xf32> to vector<4x288xf32>
    %278 = arith.subf %276, %277 : vector<4x288xf32>
    %279 = math.absf %278 : vector<4x288xf32>
    %280 = arith.subf %272, %279 : vector<4x288xf32>
    %c0_137 = arith.constant 0 : index
    %c3_138 = arith.constant 3 : index
    %c38_139 = arith.constant 38 : index
    %281 = vector.load %arg1[%c0_137, %c3_138, %c38_139] : memref<1x4x342xf32, #tpu.memory_space<vmem>>, vector<1x1x288xf32>
    %282 = vector.shape_cast %281 : vector<1x1x288xf32> to vector<1x288xf32>
    %c0_140 = arith.constant 0 : index
    %c35 = arith.constant 35 : index
    %283 = vector.load %arg2[%c0_140, %c35] : memref<4x36xf32, #tpu.memory_space<vmem>>, vector<4x1xf32>
    %284 = vector.broadcast %282 : vector<1x288xf32> to vector<4x288xf32>
    %285 = vector.broadcast %283 : vector<4x1xf32> to vector<4x288xf32>
    %286 = arith.subf %284, %285 : vector<4x288xf32>
    %287 = math.absf %286 : vector<4x288xf32>
    %288 = arith.subf %280, %287 : vector<4x288xf32>
    %c0_141 = arith.constant 0 : index
    %c0_142 = arith.constant 0 : index
    %289 = vector.load %arg3[%c0_141, %c0_142] : memref<4x2xf32, #tpu.memory_space<vmem>>, vector<4x1xf32>
    %c0_143 = arith.constant 0 : index
    %c1_144 = arith.constant 1 : index
    %290 = vector.load %arg3[%c0_143, %c1_144] : memref<4x2xf32, #tpu.memory_space<vmem>>, vector<4x1xf32>
    %291 = vector.broadcast %289 : vector<4x1xf32> to vector<4x288xf32>
    %292 = arith.mulf %288, %291 : vector<4x288xf32>
    %293 = vector.broadcast %290 : vector<4x1xf32> to vector<4x288xf32>
    %294 = arith.addf %292, %293 : vector<4x288xf32>
    %cst_145 = arith.constant 0.000000e+00 : f32
    %295 = vector.broadcast %cst_145 : f32 to vector<4x288xf32>
    %296 = arith.maximumf %294, %295 : vector<4x288xf32>
    %c0_146 = arith.constant 0 : index
    %c0_147 = arith.constant 0 : index
    %c0_148 = arith.constant 0 : index
    %297 = vector.load %arg4[%c0_146, %c0_147, %c0_148] : memref<1x4x288xf32, #tpu.memory_space<vmem>>, vector<1x4x288xf32>
    %298 = vector.shape_cast %297 : vector<1x4x288xf32> to vector<4x288xf32>
    %299 = vector.shape_cast %296 : vector<4x288xf32> to vector<1x4x288xf32>
    tpu.vector_store %arg4[%c0_146, %c0_147, %c0_148], %299 {strides = array<i32>} : memref<1x4x288xf32, #tpu.memory_space<vmem>>, vector<1x4x288xf32>,
    return
  }
  func.func @transform_0(%arg0: i32) -> (i32, i32, i32) {
    %c0_i32 = arith.constant 0 : i32
    %c0_i32_0 = arith.constant 0 : i32
    %c0_i32_1 = arith.constant 0 : i32
    return %arg0, %c0_i32, %c0_i32_0 : i32, i32, i32
  }
  func.func @transform_1(%arg0: i32) -> (i32, i32) {
    %c0_i32 = arith.constant 0 : i32
    %c0_i32_0 = arith.constant 0 : i32
    %c0_i32_1 = arith.constant 0 : i32
    return %c0_i32, %c0_i32_0 : i32, i32
  }
  func.func @transform_2(%arg0: i32) -> (i32, i32) {
    %c0_i32 = arith.constant 0 : i32
    %c0_i32_0 = arith.constant 0 : i32
    %c0_i32_1 = arith.constant 0 : i32
    return %c0_i32, %c0_i32_0 : i32, i32
  }
  func.func @transform_3(%arg0: i32) -> (i32, i32, i32) {
    %c0_i32 = arith.constant 0 : i32
    %c0_i32_0 = arith.constant 0 : i32
    %c0_i32_1 = arith.constant 0 : i32
    return %arg0, %c0_i32, %c0_i32_0 : i32, i32, i32
  }
}

module attributes {stable_mosaic.version = 11 : i64} {
  func.func @kernel(%arg0: i32, %arg1: memref<1x4x342xf32, #tpu.memory_space<vmem>>, %arg2: memref<4x36xf32, #tpu.memory_space<vmem>>, %arg3: memref<4x2xf32, #tpu.memory_space<vmem>>, %arg4: memref<1x4x288xf32, #tpu.memory_space<vmem>>, %arg5: memref<1x4x288xf32, #tpu.memory_space<vmem>>) attributes {dimension_semantics = [#tpu.dimension_semantics<parallel>], iteration_bounds = array<i64: 2>, scalar_prefetch = 0 : i64, scratch_operands = 0 : i64, tpu.core_type = #tpu.core_type<tc>, window_params = [{transform_indices = @transform_0, window_bounds = array<i64: 1, 4, 342>}, {pipeline_mode = #tpu.pipeline_mode<synchronous>, transform_indices = @transform_1, window_bounds = array<i64: 4, 36>}, {pipeline_mode = #tpu.pipeline_mode<synchronous>, transform_indices = @transform_2, window_bounds = array<i64: 4, 2>}, {transform_indices = @transform_3, window_bounds = array<i64: 1, 4, 288>}, {transform_indices = @transform_4, window_bounds = array<i64: 1, 4, 288>}]} {
    %cst = arith.constant 0.000000e+00 : f32
    %0 = vector.broadcast %cst : f32 to vector<4x288xf32>
    %c0 = arith.constant 0 : index
    %c0_0 = arith.constant 0 : index
    %c0_1 = arith.constant 0 : index
    %1 = vector.load %arg1[%c0, %c0_0, %c0_1] : memref<1x4x342xf32, #tpu.memory_space<vmem>>, vector<1x1x288xf32>
    %2 = vector.shape_cast %1 : vector<1x1x288xf32> to vector<1x288xf32>
    %c0_2 = arith.constant 0 : index
    %c0_3 = arith.constant 0 : index
    %3 = vector.load %arg2[%c0_2, %c0_3] : memref<4x36xf32, #tpu.memory_space<vmem>>, vector<4x1xf32>
    %4 = vector.broadcast %2 : vector<1x288xf32> to vector<4x288xf32>
    %5 = vector.broadcast %3 : vector<4x1xf32> to vector<4x288xf32>
    %6 = arith.subf %4, %5 : vector<4x288xf32>
    %7 = math.absf %6 : vector<4x288xf32>
    %8 = arith.subf %0, %7 : vector<4x288xf32>
    %c0_4 = arith.constant 0 : index
    %c1 = arith.constant 1 : index
    %c0_5 = arith.constant 0 : index
    %9 = vector.load %arg1[%c0_4, %c1, %c0_5] : memref<1x4x342xf32, #tpu.memory_space<vmem>>, vector<1x1x288xf32>
    %10 = vector.shape_cast %9 : vector<1x1x288xf32> to vector<1x288xf32>
    %c0_6 = arith.constant 0 : index
    %c1_7 = arith.constant 1 : index
    %11 = vector.load %arg2[%c0_6, %c1_7] : memref<4x36xf32, #tpu.memory_space<vmem>>, vector<4x1xf32>
    %12 = vector.broadcast %10 : vector<1x288xf32> to vector<4x288xf32>
    %13 = vector.broadcast %11 : vector<4x1xf32> to vector<4x288xf32>
    %14 = arith.subf %12, %13 : vector<4x288xf32>
    %15 = math.absf %14 : vector<4x288xf32>
    %16 = arith.subf %8, %15 : vector<4x288xf32>
    %c0_8 = arith.constant 0 : index
    %c2 = arith.constant 2 : index
    %c0_9 = arith.constant 0 : index
    %17 = vector.load %arg1[%c0_8, %c2, %c0_9] : memref<1x4x342xf32, #tpu.memory_space<vmem>>, vector<1x1x288xf32>
    %18 = vector.shape_cast %17 : vector<1x1x288xf32> to vector<1x288xf32>
    %c0_10 = arith.constant 0 : index
    %c2_11 = arith.constant 2 : index
    %19 = vector.load %arg2[%c0_10, %c2_11] : memref<4x36xf32, #tpu.memory_space<vmem>>, vector<4x1xf32>
    %20 = vector.broadcast %18 : vector<1x288xf32> to vector<4x288xf32>
    %21 = vector.broadcast %19 : vector<4x1xf32> to vector<4x288xf32>
    %22 = arith.subf %20, %21 : vector<4x288xf32>
    %23 = math.absf %22 : vector<4x288xf32>
    %24 = arith.subf %16, %23 : vector<4x288xf32>
    %c0_12 = arith.constant 0 : index
    %c3 = arith.constant 3 : index
    %c0_13 = arith.constant 0 : index
    %25 = vector.load %arg1[%c0_12, %c3, %c0_13] : memref<1x4x342xf32, #tpu.memory_space<vmem>>, vector<1x1x288xf32>
    %26 = vector.shape_cast %25 : vector<1x1x288xf32> to vector<1x288xf32>
    %c0_14 = arith.constant 0 : index
    %c3_15 = arith.constant 3 : index
    %27 = vector.load %arg2[%c0_14, %c3_15] : memref<4x36xf32, #tpu.memory_space<vmem>>, vector<4x1xf32>
    %28 = vector.broadcast %26 : vector<1x288xf32> to vector<4x288xf32>
    %29 = vector.broadcast %27 : vector<4x1xf32> to vector<4x288xf32>
    %30 = arith.subf %28, %29 : vector<4x288xf32>
    %31 = math.absf %30 : vector<4x288xf32>
    %32 = arith.subf %24, %31 : vector<4x288xf32>
    %c0_16 = arith.constant 0 : index
    %c0_17 = arith.constant 0 : index
    %c1_18 = arith.constant 1 : index
    %33 = vector.load %arg1[%c0_16, %c0_17, %c1_18] : memref<1x4x342xf32, #tpu.memory_space<vmem>>, vector<1x1x288xf32>
    %34 = vector.shape_cast %33 : vector<1x1x288xf32> to vector<1x288xf32>
    %c0_19 = arith.constant 0 : index
    %c4 = arith.constant 4 : index
    %35 = vector.load %arg2[%c0_19, %c4] : memref<4x36xf32, #tpu.memory_space<vmem>>, vector<4x1xf32>
    %36 = vector.broadcast %34 : vector<1x288xf32> to vector<4x288xf32>
    %37 = vector.broadcast %35 : vector<4x1xf32> to vector<4x288xf32>
    %38 = arith.subf %36, %37 : vector<4x288xf32>
    %39 = math.absf %38 : vector<4x288xf32>
    %40 = arith.subf %32, %39 : vector<4x288xf32>
    %c0_20 = arith.constant 0 : index
    %c1_21 = arith.constant 1 : index
    %c1_22 = arith.constant 1 : index
    %41 = vector.load %arg1[%c0_20, %c1_21, %c1_22] : memref<1x4x342xf32, #tpu.memory_space<vmem>>, vector<1x1x288xf32>
    %42 = vector.shape_cast %41 : vector<1x1x288xf32> to vector<1x288xf32>
    %c0_23 = arith.constant 0 : index
    %c5 = arith.constant 5 : index
    %43 = vector.load %arg2[%c0_23, %c5] : memref<4x36xf32, #tpu.memory_space<vmem>>, vector<4x1xf32>
    %44 = vector.broadcast %42 : vector<1x288xf32> to vector<4x288xf32>
    %45 = vector.broadcast %43 : vector<4x1xf32> to vector<4x288xf32>
    %46 = arith.subf %44, %45 : vector<4x288xf32>
    %47 = math.absf %46 : vector<4x288xf32>
    %48 = arith.subf %40, %47 : vector<4x288xf32>
    %c0_24 = arith.constant 0 : index
    %c2_25 = arith.constant 2 : index
    %c1_26 = arith.constant 1 : index
    %49 = vector.load %arg1[%c0_24, %c2_25, %c1_26] : memref<1x4x342xf32, #tpu.memory_space<vmem>>, vector<1x1x288xf32>
    %50 = vector.shape_cast %49 : vector<1x1x288xf32> to vector<1x288xf32>
    %c0_27 = arith.constant 0 : index
    %c6 = arith.constant 6 : index
    %51 = vector.load %arg2[%c0_27, %c6] : memref<4x36xf32, #tpu.memory_space<vmem>>, vector<4x1xf32>
    %52 = vector.broadcast %50 : vector<1x288xf32> to vector<4x288xf32>
    %53 = vector.broadcast %51 : vector<4x1xf32> to vector<4x288xf32>
    %54 = arith.subf %52, %53 : vector<4x288xf32>
    %55 = math.absf %54 : vector<4x288xf32>
    %56 = arith.subf %48, %55 : vector<4x288xf32>
    %c0_28 = arith.constant 0 : index
    %c3_29 = arith.constant 3 : index
    %c1_30 = arith.constant 1 : index
    %57 = vector.load %arg1[%c0_28, %c3_29, %c1_30] : memref<1x4x342xf32, #tpu.memory_space<vmem>>, vector<1x1x288xf32>
    %58 = vector.shape_cast %57 : vector<1x1x288xf32> to vector<1x288xf32>
    %c0_31 = arith.constant 0 : index
    %c7 = arith.constant 7 : index
    %59 = vector.load %arg2[%c0_31, %c7] : memref<4x36xf32, #tpu.memory_space<vmem>>, vector<4x1xf32>
    %60 = vector.broadcast %58 : vector<1x288xf32> to vector<4x288xf32>
    %61 = vector.broadcast %59 : vector<4x1xf32> to vector<4x288xf32>
    %62 = arith.subf %60, %61 : vector<4x288xf32>
    %63 = math.absf %62 : vector<4x288xf32>
    %64 = arith.subf %56, %63 : vector<4x288xf32>
    %c0_32 = arith.constant 0 : index
    %c0_33 = arith.constant 0 : index
    %c2_34 = arith.constant 2 : index
    %65 = vector.load %arg1[%c0_32, %c0_33, %c2_34] : memref<1x4x342xf32, #tpu.memory_space<vmem>>, vector<1x1x288xf32>
    %66 = vector.shape_cast %65 : vector<1x1x288xf32> to vector<1x288xf32>
    %c0_35 = arith.constant 0 : index
    %c8 = arith.constant 8 : index
    %67 = vector.load %arg2[%c0_35, %c8] : memref<4x36xf32, #tpu.memory_space<vmem>>, vector<4x1xf32>
    %68 = vector.broadcast %66 : vector<1x288xf32> to vector<4x288xf32>
    %69 = vector.broadcast %67 : vector<4x1xf32> to vector<4x288xf32>
    %70 = arith.subf %68, %69 : vector<4x288xf32>
    %71 = math.absf %70 : vector<4x288xf32>
    %72 = arith.subf %64, %71 : vector<4x288xf32>
    %c0_36 = arith.constant 0 : index
    %c1_37 = arith.constant 1 : index
    %c2_38 = arith.constant 2 : index
    %73 = vector.load %arg1[%c0_36, %c1_37, %c2_38] : memref<1x4x342xf32, #tpu.memory_space<vmem>>, vector<1x1x288xf32>
    %74 = vector.shape_cast %73 : vector<1x1x288xf32> to vector<1x288xf32>
    %c0_39 = arith.constant 0 : index
    %c9 = arith.constant 9 : index
    %75 = vector.load %arg2[%c0_39, %c9] : memref<4x36xf32, #tpu.memory_space<vmem>>, vector<4x1xf32>
    %76 = vector.broadcast %74 : vector<1x288xf32> to vector<4x288xf32>
    %77 = vector.broadcast %75 : vector<4x1xf32> to vector<4x288xf32>
    %78 = arith.subf %76, %77 : vector<4x288xf32>
    %79 = math.absf %78 : vector<4x288xf32>
    %80 = arith.subf %72, %79 : vector<4x288xf32>
    %c0_40 = arith.constant 0 : index
    %c2_41 = arith.constant 2 : index
    %c2_42 = arith.constant 2 : index
    %81 = vector.load %arg1[%c0_40, %c2_41, %c2_42] : memref<1x4x342xf32, #tpu.memory_space<vmem>>, vector<1x1x288xf32>
    %82 = vector.shape_cast %81 : vector<1x1x288xf32> to vector<1x288xf32>
    %c0_43 = arith.constant 0 : index
    %c10 = arith.constant 10 : index
    %83 = vector.load %arg2[%c0_43, %c10] : memref<4x36xf32, #tpu.memory_space<vmem>>, vector<4x1xf32>
    %84 = vector.broadcast %82 : vector<1x288xf32> to vector<4x288xf32>
    %85 = vector.broadcast %83 : vector<4x1xf32> to vector<4x288xf32>
    %86 = arith.subf %84, %85 : vector<4x288xf32>
    %87 = math.absf %86 : vector<4x288xf32>
    %88 = arith.subf %80, %87 : vector<4x288xf32>
    %c0_44 = arith.constant 0 : index
    %c3_45 = arith.constant 3 : index
    %c2_46 = arith.constant 2 : index
    %89 = vector.load %arg1[%c0_44, %c3_45, %c2_46] : memref<1x4x342xf32, #tpu.memory_space<vmem>>, vector<1x1x288xf32>
    %90 = vector.shape_cast %89 : vector<1x1x288xf32> to vector<1x288xf32>
    %c0_47 = arith.constant 0 : index
    %c11 = arith.constant 11 : index
    %91 = vector.load %arg2[%c0_47, %c11] : memref<4x36xf32, #tpu.memory_space<vmem>>, vector<4x1xf32>
    %92 = vector.broadcast %90 : vector<1x288xf32> to vector<4x288xf32>
    %93 = vector.broadcast %91 : vector<4x1xf32> to vector<4x288xf32>
    %94 = arith.subf %92, %93 : vector<4x288xf32>
    %95 = math.absf %94 : vector<4x288xf32>
    %96 = arith.subf %88, %95 : vector<4x288xf32>
    %c0_48 = arith.constant 0 : index
    %c0_49 = arith.constant 0 : index
    %c18 = arith.constant 18 : index
    %97 = vector.load %arg1[%c0_48, %c0_49, %c18] : memref<1x4x342xf32, #tpu.memory_space<vmem>>, vector<1x1x288xf32>
    %98 = vector.shape_cast %97 : vector<1x1x288xf32> to vector<1x288xf32>
    %c0_50 = arith.constant 0 : index
    %c12 = arith.constant 12 : index
    %99 = vector.load %arg2[%c0_50, %c12] : memref<4x36xf32, #tpu.memory_space<vmem>>, vector<4x1xf32>
    %100 = vector.broadcast %98 : vector<1x288xf32> to vector<4x288xf32>
    %101 = vector.broadcast %99 : vector<4x1xf32> to vector<4x288xf32>
    %102 = arith.subf %100, %101 : vector<4x288xf32>
    %103 = math.absf %102 : vector<4x288xf32>
    %104 = arith.subf %96, %103 : vector<4x288xf32>
    %c0_51 = arith.constant 0 : index
    %c1_52 = arith.constant 1 : index
    %c18_53 = arith.constant 18 : index
    %105 = vector.load %arg1[%c0_51, %c1_52, %c18_53] : memref<1x4x342xf32, #tpu.memory_space<vmem>>, vector<1x1x288xf32>
    %106 = vector.shape_cast %105 : vector<1x1x288xf32> to vector<1x288xf32>
    %c0_54 = arith.constant 0 : index
    %c13 = arith.constant 13 : index
    %107 = vector.load %arg2[%c0_54, %c13] : memref<4x36xf32, #tpu.memory_space<vmem>>, vector<4x1xf32>
    %108 = vector.broadcast %106 : vector<1x288xf32> to vector<4x288xf32>
    %109 = vector.broadcast %107 : vector<4x1xf32> to vector<4x288xf32>
    %110 = arith.subf %108, %109 : vector<4x288xf32>
    %111 = math.absf %110 : vector<4x288xf32>
    %112 = arith.subf %104, %111 : vector<4x288xf32>
    %c0_55 = arith.constant 0 : index
    %c2_56 = arith.constant 2 : index
    %c18_57 = arith.constant 18 : index
    %113 = vector.load %arg1[%c0_55, %c2_56, %c18_57] : memref<1x4x342xf32, #tpu.memory_space<vmem>>, vector<1x1x288xf32>
    %114 = vector.shape_cast %113 : vector<1x1x288xf32> to vector<1x288xf32>
    %c0_58 = arith.constant 0 : index
    %c14 = arith.constant 14 : index
    %115 = vector.load %arg2[%c0_58, %c14] : memref<4x36xf32, #tpu.memory_space<vmem>>, vector<4x1xf32>
    %116 = vector.broadcast %114 : vector<1x288xf32> to vector<4x288xf32>
    %117 = vector.broadcast %115 : vector<4x1xf32> to vector<4x288xf32>
    %118 = arith.subf %116, %117 : vector<4x288xf32>
    %119 = math.absf %118 : vector<4x288xf32>
    %120 = arith.subf %112, %119 : vector<4x288xf32>
    %c0_59 = arith.constant 0 : index
    %c3_60 = arith.constant 3 : index
    %c18_61 = arith.constant 18 : index
    %121 = vector.load %arg1[%c0_59, %c3_60, %c18_61] : memref<1x4x342xf32, #tpu.memory_space<vmem>>, vector<1x1x288xf32>
    %122 = vector.shape_cast %121 : vector<1x1x288xf32> to vector<1x288xf32>
    %c0_62 = arith.constant 0 : index
    %c15 = arith.constant 15 : index
    %123 = vector.load %arg2[%c0_62, %c15] : memref<4x36xf32, #tpu.memory_space<vmem>>, vector<4x1xf32>
    %124 = vector.broadcast %122 : vector<1x288xf32> to vector<4x288xf32>
    %125 = vector.broadcast %123 : vector<4x1xf32> to vector<4x288xf32>
    %126 = arith.subf %124, %125 : vector<4x288xf32>
    %127 = math.absf %126 : vector<4x288xf32>
    %128 = arith.subf %120, %127 : vector<4x288xf32>
    %c0_63 = arith.constant 0 : index
    %c0_64 = arith.constant 0 : index
    %c19 = arith.constant 19 : index
    %129 = vector.load %arg1[%c0_63, %c0_64, %c19] : memref<1x4x342xf32, #tpu.memory_space<vmem>>, vector<1x1x288xf32>
    %130 = vector.shape_cast %129 : vector<1x1x288xf32> to vector<1x288xf32>
    %c0_65 = arith.constant 0 : index
    %c16 = arith.constant 16 : index
    %131 = vector.load %arg2[%c0_65, %c16] : memref<4x36xf32, #tpu.memory_space<vmem>>, vector<4x1xf32>
    %132 = vector.broadcast %130 : vector<1x288xf32> to vector<4x288xf32>
    %133 = vector.broadcast %131 : vector<4x1xf32> to vector<4x288xf32>
    %134 = arith.subf %132, %133 : vector<4x288xf32>
    %135 = math.absf %134 : vector<4x288xf32>
    %136 = arith.subf %128, %135 : vector<4x288xf32>
    %c0_66 = arith.constant 0 : index
    %c1_67 = arith.constant 1 : index
    %c19_68 = arith.constant 19 : index
    %137 = vector.load %arg1[%c0_66, %c1_67, %c19_68] : memref<1x4x342xf32, #tpu.memory_space<vmem>>, vector<1x1x288xf32>
    %138 = vector.shape_cast %137 : vector<1x1x288xf32> to vector<1x288xf32>
    %c0_69 = arith.constant 0 : index
    %c17 = arith.constant 17 : index
    %139 = vector.load %arg2[%c0_69, %c17] : memref<4x36xf32, #tpu.memory_space<vmem>>, vector<4x1xf32>
    %140 = vector.broadcast %138 : vector<1x288xf32> to vector<4x288xf32>
    %141 = vector.broadcast %139 : vector<4x1xf32> to vector<4x288xf32>
    %142 = arith.subf %140, %141 : vector<4x288xf32>
    %143 = math.absf %142 : vector<4x288xf32>
    %144 = arith.subf %136, %143 : vector<4x288xf32>
    %c0_70 = arith.constant 0 : index
    %c2_71 = arith.constant 2 : index
    %c19_72 = arith.constant 19 : index
    %145 = vector.load %arg1[%c0_70, %c2_71, %c19_72] : memref<1x4x342xf32, #tpu.memory_space<vmem>>, vector<1x1x288xf32>
    %146 = vector.shape_cast %145 : vector<1x1x288xf32> to vector<1x288xf32>
    %c0_73 = arith.constant 0 : index
    %c18_74 = arith.constant 18 : index
    %147 = vector.load %arg2[%c0_73, %c18_74] : memref<4x36xf32, #tpu.memory_space<vmem>>, vector<4x1xf32>
    %148 = vector.broadcast %146 : vector<1x288xf32> to vector<4x288xf32>
    %149 = vector.broadcast %147 : vector<4x1xf32> to vector<4x288xf32>
    %150 = arith.subf %148, %149 : vector<4x288xf32>
    %151 = math.absf %150 : vector<4x288xf32>
    %152 = arith.subf %144, %151 : vector<4x288xf32>
    %c0_75 = arith.constant 0 : index
    %c3_76 = arith.constant 3 : index
    %c19_77 = arith.constant 19 : index
    %153 = vector.load %arg1[%c0_75, %c3_76, %c19_77] : memref<1x4x342xf32, #tpu.memory_space<vmem>>, vector<1x1x288xf32>
    %154 = vector.shape_cast %153 : vector<1x1x288xf32> to vector<1x288xf32>
    %c0_78 = arith.constant 0 : index
    %c19_79 = arith.constant 19 : index
    %155 = vector.load %arg2[%c0_78, %c19_79] : memref<4x36xf32, #tpu.memory_space<vmem>>, vector<4x1xf32>
    %156 = vector.broadcast %154 : vector<1x288xf32> to vector<4x288xf32>
    %157 = vector.broadcast %155 : vector<4x1xf32> to vector<4x288xf32>
    %158 = arith.subf %156, %157 : vector<4x288xf32>
    %159 = math.absf %158 : vector<4x288xf32>
    %160 = arith.subf %152, %159 : vector<4x288xf32>
    %c0_80 = arith.constant 0 : index
    %c0_81 = arith.constant 0 : index
    %c20 = arith.constant 20 : index
    %161 = vector.load %arg1[%c0_80, %c0_81, %c20] : memref<1x4x342xf32, #tpu.memory_space<vmem>>, vector<1x1x288xf32>
    %162 = vector.shape_cast %161 : vector<1x1x288xf32> to vector<1x288xf32>
    %c0_82 = arith.constant 0 : index
    %c20_83 = arith.constant 20 : index
    %163 = vector.load %arg2[%c0_82, %c20_83] : memref<4x36xf32, #tpu.memory_space<vmem>>, vector<4x1xf32>
    %164 = vector.broadcast %162 : vector<1x288xf32> to vector<4x288xf32>
    %165 = vector.broadcast %163 : vector<4x1xf32> to vector<4x288xf32>
    %166 = arith.subf %164, %165 : vector<4x288xf32>
    %167 = math.absf %166 : vector<4x288xf32>
    %168 = arith.subf %160, %167 : vector<4x288xf32>
    %c0_84 = arith.constant 0 : index
    %c1_85 = arith.constant 1 : index
    %c20_86 = arith.constant 20 : index
    %169 = vector.load %arg1[%c0_84, %c1_85, %c20_86] : memref<1x4x342xf32, #tpu.memory_space<vmem>>, vector<1x1x288xf32>
    %170 = vector.shape_cast %169 : vector<1x1x288xf32> to vector<1x288xf32>
    %c0_87 = arith.constant 0 : index
    %c21 = arith.constant 21 : index
    %171 = vector.load %arg2[%c0_87, %c21] : memref<4x36xf32, #tpu.memory_space<vmem>>, vector<4x1xf32>
    %172 = vector.broadcast %170 : vector<1x288xf32> to vector<4x288xf32>
    %173 = vector.broadcast %171 : vector<4x1xf32> to vector<4x288xf32>
    %174 = arith.subf %172, %173 : vector<4x288xf32>
    %175 = math.absf %174 : vector<4x288xf32>
    %176 = arith.subf %168, %175 : vector<4x288xf32>
    %c0_88 = arith.constant 0 : index
    %c2_89 = arith.constant 2 : index
    %c20_90 = arith.constant 20 : index
    %177 = vector.load %arg1[%c0_88, %c2_89, %c20_90] : memref<1x4x342xf32, #tpu.memory_space<vmem>>, vector<1x1x288xf32>
    %178 = vector.shape_cast %177 : vector<1x1x288xf32> to vector<1x288xf32>
    %c0_91 = arith.constant 0 : index
    %c22 = arith.constant 22 : index
    %179 = vector.load %arg2[%c0_91, %c22] : memref<4x36xf32, #tpu.memory_space<vmem>>, vector<4x1xf32>
    %180 = vector.broadcast %178 : vector<1x288xf32> to vector<4x288xf32>
    %181 = vector.broadcast %179 : vector<4x1xf32> to vector<4x288xf32>
    %182 = arith.subf %180, %181 : vector<4x288xf32>
    %183 = math.absf %182 : vector<4x288xf32>
    %184 = arith.subf %176, %183 : vector<4x288xf32>
    %c0_92 = arith.constant 0 : index
    %c3_93 = arith.constant 3 : index
    %c20_94 = arith.constant 20 : index
    %185 = vector.load %arg1[%c0_92, %c3_93, %c20_94] : memref<1x4x342xf32, #tpu.memory_space<vmem>>, vector<1x1x288xf32>
    %186 = vector.shape_cast %185 : vector<1x1x288xf32> to vector<1x288xf32>
    %c0_95 = arith.constant 0 : index
    %c23 = arith.constant 23 : index
    %187 = vector.load %arg2[%c0_95, %c23] : memref<4x36xf32, #tpu.memory_space<vmem>>, vector<4x1xf32>
    %188 = vector.broadcast %186 : vector<1x288xf32> to vector<4x288xf32>
    %189 = vector.broadcast %187 : vector<4x1xf32> to vector<4x288xf32>
    %190 = arith.subf %188, %189 : vector<4x288xf32>
    %191 = math.absf %190 : vector<4x288xf32>
    %192 = arith.subf %184, %191 : vector<4x288xf32>
    %c0_96 = arith.constant 0 : index
    %c0_97 = arith.constant 0 : index
    %c36 = arith.constant 36 : index
    %193 = vector.load %arg1[%c0_96, %c0_97, %c36] : memref<1x4x342xf32, #tpu.memory_space<vmem>>, vector<1x1x288xf32>
    %194 = vector.shape_cast %193 : vector<1x1x288xf32> to vector<1x288xf32>
    %c0_98 = arith.constant 0 : index
    %c24 = arith.constant 24 : index
    %195 = vector.load %arg2[%c0_98, %c24] : memref<4x36xf32, #tpu.memory_space<vmem>>, vector<4x1xf32>
    %196 = vector.broadcast %194 : vector<1x288xf32> to vector<4x288xf32>
    %197 = vector.broadcast %195 : vector<4x1xf32> to vector<4x288xf32>
    %198 = arith.subf %196, %197 : vector<4x288xf32>
    %199 = math.absf %198 : vector<4x288xf32>
    %200 = arith.subf %192, %199 : vector<4x288xf32>
    %c0_99 = arith.constant 0 : index
    %c1_100 = arith.constant 1 : index
    %c36_101 = arith.constant 36 : index
    %201 = vector.load %arg1[%c0_99, %c1_100, %c36_101] : memref<1x4x342xf32, #tpu.memory_space<vmem>>, vector<1x1x288xf32>
    %202 = vector.shape_cast %201 : vector<1x1x288xf32> to vector<1x288xf32>
    %c0_102 = arith.constant 0 : index
    %c25 = arith.constant 25 : index
    %203 = vector.load %arg2[%c0_102, %c25] : memref<4x36xf32, #tpu.memory_space<vmem>>, vector<4x1xf32>
    %204 = vector.broadcast %202 : vector<1x288xf32> to vector<4x288xf32>
    %205 = vector.broadcast %203 : vector<4x1xf32> to vector<4x288xf32>
    %206 = arith.subf %204, %205 : vector<4x288xf32>
    %207 = math.absf %206 : vector<4x288xf32>
    %208 = arith.subf %200, %207 : vector<4x288xf32>
    %c0_103 = arith.constant 0 : index
    %c2_104 = arith.constant 2 : index
    %c36_105 = arith.constant 36 : index
    %209 = vector.load %arg1[%c0_103, %c2_104, %c36_105] : memref<1x4x342xf32, #tpu.memory_space<vmem>>, vector<1x1x288xf32>
    %210 = vector.shape_cast %209 : vector<1x1x288xf32> to vector<1x288xf32>
    %c0_106 = arith.constant 0 : index
    %c26 = arith.constant 26 : index
    %211 = vector.load %arg2[%c0_106, %c26] : memref<4x36xf32, #tpu.memory_space<vmem>>, vector<4x1xf32>
    %212 = vector.broadcast %210 : vector<1x288xf32> to vector<4x288xf32>
    %213 = vector.broadcast %211 : vector<4x1xf32> to vector<4x288xf32>
    %214 = arith.subf %212, %213 : vector<4x288xf32>
    %215 = math.absf %214 : vector<4x288xf32>
    %216 = arith.subf %208, %215 : vector<4x288xf32>
    %c0_107 = arith.constant 0 : index
    %c3_108 = arith.constant 3 : index
    %c36_109 = arith.constant 36 : index
    %217 = vector.load %arg1[%c0_107, %c3_108, %c36_109] : memref<1x4x342xf32, #tpu.memory_space<vmem>>, vector<1x1x288xf32>
    %218 = vector.shape_cast %217 : vector<1x1x288xf32> to vector<1x288xf32>
    %c0_110 = arith.constant 0 : index
    %c27 = arith.constant 27 : index
    %219 = vector.load %arg2[%c0_110, %c27] : memref<4x36xf32, #tpu.memory_space<vmem>>, vector<4x1xf32>
    %220 = vector.broadcast %218 : vector<1x288xf32> to vector<4x288xf32>
    %221 = vector.broadcast %219 : vector<4x1xf32> to vector<4x288xf32>
    %222 = arith.subf %220, %221 : vector<4x288xf32>
    %223 = math.absf %222 : vector<4x288xf32>
    %224 = arith.subf %216, %223 : vector<4x288xf32>
    %c0_111 = arith.constant 0 : index
    %c0_112 = arith.constant 0 : index
    %c37 = arith.constant 37 : index
    %225 = vector.load %arg1[%c0_111, %c0_112, %c37] : memref<1x4x342xf32, #tpu.memory_space<vmem>>, vector<1x1x288xf32>
    %226 = vector.shape_cast %225 : vector<1x1x288xf32> to vector<1x288xf32>
    %c0_113 = arith.constant 0 : index
    %c28 = arith.constant 28 : index
    %227 = vector.load %arg2[%c0_113, %c28] : memref<4x36xf32, #tpu.memory_space<vmem>>, vector<4x1xf32>
    %228 = vector.broadcast %226 : vector<1x288xf32> to vector<4x288xf32>
    %229 = vector.broadcast %227 : vector<4x1xf32> to vector<4x288xf32>
    %230 = arith.subf %228, %229 : vector<4x288xf32>
    %231 = math.absf %230 : vector<4x288xf32>
    %232 = arith.subf %224, %231 : vector<4x288xf32>
    %c0_114 = arith.constant 0 : index
    %c1_115 = arith.constant 1 : index
    %c37_116 = arith.constant 37 : index
    %233 = vector.load %arg1[%c0_114, %c1_115, %c37_116] : memref<1x4x342xf32, #tpu.memory_space<vmem>>, vector<1x1x288xf32>
    %234 = vector.shape_cast %233 : vector<1x1x288xf32> to vector<1x288xf32>
    %c0_117 = arith.constant 0 : index
    %c29 = arith.constant 29 : index
    %235 = vector.load %arg2[%c0_117, %c29] : memref<4x36xf32, #tpu.memory_space<vmem>>, vector<4x1xf32>
    %236 = vector.broadcast %234 : vector<1x288xf32> to vector<4x288xf32>
    %237 = vector.broadcast %235 : vector<4x1xf32> to vector<4x288xf32>
    %238 = arith.subf %236, %237 : vector<4x288xf32>
    %239 = math.absf %238 : vector<4x288xf32>
    %240 = arith.subf %232, %239 : vector<4x288xf32>
    %c0_118 = arith.constant 0 : index
    %c2_119 = arith.constant 2 : index
    %c37_120 = arith.constant 37 : index
    %241 = vector.load %arg1[%c0_118, %c2_119, %c37_120] : memref<1x4x342xf32, #tpu.memory_space<vmem>>, vector<1x1x288xf32>
    %242 = vector.shape_cast %241 : vector<1x1x288xf32> to vector<1x288xf32>
    %c0_121 = arith.constant 0 : index
    %c30 = arith.constant 30 : index
    %243 = vector.load %arg2[%c0_121, %c30] : memref<4x36xf32, #tpu.memory_space<vmem>>, vector<4x1xf32>
    %244 = vector.broadcast %242 : vector<1x288xf32> to vector<4x288xf32>
    %245 = vector.broadcast %243 : vector<4x1xf32> to vector<4x288xf32>
    %246 = arith.subf %244, %245 : vector<4x288xf32>
    %247 = math.absf %246 : vector<4x288xf32>
    %248 = arith.subf %240, %247 : vector<4x288xf32>
    %c0_122 = arith.constant 0 : index
    %c3_123 = arith.constant 3 : index
    %c37_124 = arith.constant 37 : index
    %249 = vector.load %arg1[%c0_122, %c3_123, %c37_124] : memref<1x4x342xf32, #tpu.memory_space<vmem>>, vector<1x1x288xf32>
    %250 = vector.shape_cast %249 : vector<1x1x288xf32> to vector<1x288xf32>
    %c0_125 = arith.constant 0 : index
    %c31 = arith.constant 31 : index
    %251 = vector.load %arg2[%c0_125, %c31] : memref<4x36xf32, #tpu.memory_space<vmem>>, vector<4x1xf32>
    %252 = vector.broadcast %250 : vector<1x288xf32> to vector<4x288xf32>
    %253 = vector.broadcast %251 : vector<4x1xf32> to vector<4x288xf32>
    %254 = arith.subf %252, %253 : vector<4x288xf32>
    %255 = math.absf %254 : vector<4x288xf32>
    %256 = arith.subf %248, %255 : vector<4x288xf32>
    %c0_126 = arith.constant 0 : index
    %c0_127 = arith.constant 0 : index
    %c38 = arith.constant 38 : index
    %257 = vector.load %arg1[%c0_126, %c0_127, %c38] : memref<1x4x342xf32, #tpu.memory_space<vmem>>, vector<1x1x288xf32>
    %258 = vector.shape_cast %257 : vector<1x1x288xf32> to vector<1x288xf32>
    %c0_128 = arith.constant 0 : index
    %c32 = arith.constant 32 : index
    %259 = vector.load %arg2[%c0_128, %c32] : memref<4x36xf32, #tpu.memory_space<vmem>>, vector<4x1xf32>
    %260 = vector.broadcast %258 : vector<1x288xf32> to vector<4x288xf32>
    %261 = vector.broadcast %259 : vector<4x1xf32> to vector<4x288xf32>
    %262 = arith.subf %260, %261 : vector<4x288xf32>
    %263 = math.absf %262 : vector<4x288xf32>
    %264 = arith.subf %256, %263 : vector<4x288xf32>
    %c0_129 = arith.constant 0 : index
    %c1_130 = arith.constant 1 : index
    %c38_131 = arith.constant 38 : index
    %265 = vector.load %arg1[%c0_129, %c1_130, %c38_131] : memref<1x4x342xf32, #tpu.memory_space<vmem>>, vector<1x1x288xf32>
    %266 = vector.shape_cast %265 : vector<1x1x288xf32> to vector<1x288xf32>
    %c0_132 = arith.constant 0 : index
    %c33 = arith.constant 33 : index
    %267 = vector.load %arg2[%c0_132, %c33] : memref<4x36xf32, #tpu.memory_space<vmem>>, vector<4x1xf32>
    %268 = vector.broadcast %266 : vector<1x288xf32> to vector<4x288xf32>
    %269 = vector.broadcast %267 : vector<4x1xf32> to vector<4x288xf32>
    %270 = arith.subf %268, %269 : vector<4x288xf32>
    %271 = math.absf %270 : vector<4x288xf32>
    %272 = arith.subf %264, %271 : vector<4x288xf32>
    %c0_133 = arith.constant 0 : index
    %c2_134 = arith.constant 2 : index
    %c38_135 = arith.constant 38 : index
    %273 = vector.load %arg1[%c0_133, %c2_134, %c38_135] : memref<1x4x342xf32, #tpu.memory_space<vmem>>, vector<1x1x288xf32>
    %274 = vector.shape_cast %273 : vector<1x1x288xf32> to vector<1x288xf32>
    %c0_136 = arith.constant 0 : index
    %c34 = arith.constant 34 : index
    %275 = vector.load %arg2[%c0_136, %c34] : memref<4x36xf32, #tpu.memory_space<vmem>>, vector<4x1xf32>
    %276 = vector.broadcast %274 : vector<1x288xf32> to vector<4x288xf32>
    %277 = vector.broadcast %275 : vector<4x1xf32> to vector<4x288xf32>
    %278 = arith.subf %276, %277 : vector<4x288xf32>
    %279 = math.absf %278 : vector<4x288xf32>
    %280 = arith.subf %272, %279 : vector<4x288xf32>
    %c0_137 = arith.constant 0 : index
    %c3_138 = arith.constant 3 : index
    %c38_139 = arith.constant 38 : index
    %281 = vector.load %arg1[%c0_137, %c3_138, %c38_139] : memref<1x4x342xf32, #tpu.memory_space<vmem>>, vector<1x1x288xf32>
    %282 = vector.shape_cast %281 : vector<1x1x288xf32> to vector<1x288xf32>
    %c0_140 = arith.constant 0 : index
    %c35 = arith.constant 35 : index
    %283 = vector.load %arg2[%c0_140, %c35] : memref<4x36xf32, #tpu.memory_space<vmem>>, vector<4x1xf32>
    %284 = vector.broadcast %282 : vector<1x288xf32> to vector<4x288xf32>
    %285 = vector.broadcast %283 : vector<4x1xf32> to vector<4x288xf32>
    %286 = arith.subf %284, %285 : vector<4x288xf32>
    %287 = math.absf %286 : vector<4x288xf32>
    %288 = arith.subf %280, %287 : vector<4x288xf32>
    %c0_141 = arith.constant 0 : index
    %c0_142 = arith.constant 0 : index
    %289 = vector.load %arg3[%c0_141, %c0_142] : memref<4x2xf32, #tpu.memory_space<vmem>>, vector<4x1xf32>
    %c0_143 = arith.constant 0 : index
    %c1_144 = arith.constant 1 : index
    %290 = vector.load %arg3[%c0_143, %c1_144] : memref<4x2xf32, #tpu.memory_space<vmem>>, vector<4x1xf32>
    %291 = vector.broadcast %289 : vector<4x1xf32> to vector<4x288xf32>
    %292 = arith.mulf %288, %291 : vector<4x288xf32>
    %293 = vector.broadcast %290 : vector<4x1xf32> to vector<4x288xf32>
    %294 = arith.addf %292, %293 : vector<4x288xf32>
    %c0_145 = arith.constant 0 : index
    %c0_146 = arith.constant 0 : index
    %c0_147 = arith.constant 0 : index
    %295 = vector.load %arg4[%c0_145, %c0_146, %c0_147] : memref<1x4x288xf32, #tpu.memory_space<vmem>>, vector<1x4x288xf32>
    %296 = vector.shape_cast %295 : vector<1x4x288xf32> to vector<4x288xf32>
    %297 = arith.addf %294, %296 : vector<4x288xf32>
    %cst_148 = arith.constant 0.000000e+00 : f32
    %298 = vector.broadcast %cst_148 : f32 to vector<4x288xf32>
    %299 = arith.maximumf %297, %298 : vector<4x288xf32>
    %c0_149 = arith.constant 0 : index
    %c0_150 = arith.constant 0 : index
    %c0_151 = arith.constant 0 : index
    %300 = vector.load %arg5[%c0_149, %c0_150, %c0_151] : memref<1x4x288xf32, #tpu.memory_space<vmem>>, vector<1x4x288xf32>
    %301 = vector.shape_cast %300 : vector<1x4x288xf32> to vector<4x288xf32>
    %302 = vector.shape_cast %299 : vector<4x288xf32> to vector<1x4x288xf32>
    tpu.vector_store %arg5[%c0_149, %c0_150, %c0_151], %302 {strides = array<i32>} : memref<1x4x288xf32, #tpu.memory_space<vmem>>, vector<1x4x288xf32>,
    return
  }
  func.func @transform_0(%arg0: i32) -> (i32, i32, i32) {
    %c0_i32 = arith.constant 0 : i32
    %c0_i32_0 = arith.constant 0 : i32
    %c0_i32_1 = arith.constant 0 : i32
    return %arg0, %c0_i32, %c0_i32_0 : i32, i32, i32
  }
  func.func @transform_1(%arg0: i32) -> (i32, i32) {
    %c0_i32 = arith.constant 0 : i32
    %c0_i32_0 = arith.constant 0 : i32
    %c0_i32_1 = arith.constant 0 : i32
    return %c0_i32, %c0_i32_0 : i32, i32
  }
  func.func @transform_2(%arg0: i32) -> (i32, i32) {
    %c0_i32 = arith.constant 0 : i32
    %c0_i32_0 = arith.constant 0 : i32
    %c0_i32_1 = arith.constant 0 : i32
    return %c0_i32, %c0_i32_0 : i32, i32
  }
  func.func @transform_3(%arg0: i32) -> (i32, i32, i32) {
    %c0_i32 = arith.constant 0 : i32
    %c0_i32_0 = arith.constant 0 : i32
    %c0_i32_1 = arith.constant 0 : i32
    return %arg0, %c0_i32, %c0_i32_0 : i32, i32, i32
  }
  func.func @transform_4(%arg0: i32) -> (i32, i32, i32) {
    %c0_i32 = arith.constant 0 : i32
    %c0_i32_0 = arith.constant 0 : i32
    %c0_i32_1 = arith.constant 0 : i32
    return %arg0, %c0_i32, %c0_i32_0 : i32, i32, i32
  }
}

</mosaic_0001>

<bundles_post_ra>
// kernel: basic_block_forward.2
= control target key start
LH: loop header
LB: loop body
LE: loop exit
PB: predicated region body
PF: predicated region fallthrough
CT: control target
= control target key end

     0   :  { %s1424_s12 = smov 0   ;;  %s2067_s0 = inlined_call_operand.vmem [shape: f32[2,4,342], index: 0, kind: input, shape index: {}]   ;;  %s2068_s1 = inlined_call_operand.vmem [shape: f32[4,36], index: 1, kind: input, shape index: {}]   ;;  %s2069_s2 = inlined_call_operand.vmem [shape: f32[4,2], index: 2, kind: input, shape index: {}]   ;;  %s2070_s3 = inlined_call_operand.vmem [shape: f32[2,4,288], index: 3, kind: output, shape index: {}]  }
   0x1 LB: > { %s1249_s13 = sadd.s32 4294967295, %s1358_s12   ;;  %p1253_p0 = scmp.ge.s32.totalorder %s1358_s12, 1  ;;  %s1358_s12 = sphi %s1424_s12, %s13_s12  }
   0x2   : > { %p137_p1 = scmp.lt.s32.totalorder %s1358_s12, 3 }
   0x4   : > { %p138_p2 = pnand %p1253_p0, %p137_p1 }
   0x6   : > { %141 = sbr.rel (%p138_p2) target bundleno = 649 (0x289), region = 32 }
   0xd   : > { %v1435_v0 = vld [vmem:[%s2068_s1] sm:$0xf]  ;;  %v1360_v1 = vmov 2   ;;  %v2071_v2 = vmov 1   ;;  %v1362_v3 = vmov 3   ;;  %v1363_v4 = vmov 4  }
   0xe   : > { %1315 = vset.pattern.permute.xlu1 %v1360_v1  ;;  %1314 = vset.pattern.permute.xlu0 %v2071_v2  ;;  %v1364_v5 = vmov 5   ;;  %v1365_v6 = vmov 6   ;;  %v1366_v7 = vmov 7   ;;  %v1367_v8 = vmov 8   ;;  %p161_p3 = scmp.lt.s32.totalorder %s1249_s13, 1  ;;  %s1380_s20 = smov 127  }
   0xf   : > { %253 = vperm.xlu1 %1315, %v1435_v0   ;;  %222 = vperm.xlu0 %1314, %v1435_v0   ;;  %v1368_v9 = vmov 9   ;;  %v1369_v10 = vmov 10   ;;  %v1370_v11 = vmov 11   ;;  %v1371_v12 = vmov 12   ;;  %s1382_s21 = smov 126   ;;  %s1383_s22 = smov 110  }
  0x10   : > { %v1372_v13 = vmov 13   ;;  %v1373_v14 = vmov 14   ;;  %v1374_v15 = vmov 15   ;;  %v1375_v16 = vmov 16   ;;  %s2157_s13 = smov (!%p161_p3, %s1249_s13), 1  ;;  %s1384_s23 = smov 109  }
  0x11   : > { %v1376_v17 = vmov 17   ;;  %v1377_v18 = vmov 18   ;;  %v1378_v19 = vmov 19   ;;  %v1379_v20 = vmov 20   ;;  %s1261_s16 = smul.u32 12, %s2157_s13  ;;  %s1400_s24 = smov 108  }
  0x12   : > { %v174_v21 = vlaneseq  ;;  %v1381_v45 = vmov 21   ;;  %vm424_vm0 = vcmask 1031168   ;;  %vm533_vm1 = vcmask 900096   ;;  %s1401_s25 = smov 92   ;;  %s1402_s26 = smov 91  }
  0x13   : > { %1316 = vset.pattern.permute.xlu1 %v1362_v3  ;;  %s1471_s19 = scalar_lea.vmem %s2067_s0, %s1261_s16  ;;  %1334 = vset.pattern.permute.xlu0 %v1381_v45  ;;  %vm642_vm2 = vcmask 891904   ;;  %vm315_vm3 = vcmask 1039360   ;;  %vm751_vm4 = vcmask 883712   ;;  %s1403_s27 = smov 90   ;;  %vm860_vm5 = vcmask 752640  }
  0x14   : > { %284 = vperm.xlu1 %1316, %v1435_v0   ;;  %v175_v23 = vshrl.u32 %v174_v21, 7  ;;  %v171_v24 = vld [vmem:[%s1471_s19] ss:$4 sm:$0x7]  ;;  %vm969_vm6 = vcmask 744448   ;;  %vm1078_vm7 = vcmask 736256   ;;  %s170_s5 = scalar_lea.vmem %s2070_s3, %s1261_s16 }
  0x15   : > { %v1256_v32 = vld [vmem:[%s1471_s19 + $0x1] ss:$4 sm:$0x7]  ;;  %v1257_v42 = vld [vmem:[%s1471_s19 + $0x2] ss:$4 sm:$0x7] }
  0x16   : > { %v176_v25 = vsub.s32 0, %v175_v23  ;;  %v180_v26 = vsub.s32 1, %v175_v23  ;;  %v184_v28 = vsub.s32 2, %v175_v23  ;;  %v1258_v53 = vld [vmem:[%s1471_s19 + $0x3] ss:$4 sm:$0x7] }
  0x17   : > { %vm1192_vm8 = vcmask 257024  }
  0x18   : > { %1317 = vset.pattern.permute.xlu1 %v1363_v4  ;;  %v1476_v29 = vrot.slane %v171_v24, %v180_v26  ;;  %v1478_v30 = vrot.slane %v171_v24, %v176_v25  ;;  %v1480_v31 = vrot.slane %v171_v24, %v184_v28  ;;  %v1485_v36 = vrot.slane %v1256_v32, %v180_v26 }
  0x19   : > { %297 = vperm.xlu1 %1317, %v1435_v0   ;;  %v1487_v37 = vrot.slane %v1256_v32, %v176_v25  ;;  %v1495_v47 = vrot.slane %v1256_v32, %v184_v28  ;;  %v1497_v49 = vrot.slane %v1257_v42, %v180_v26  ;;  %v1501_v52 = vrot.slane %v1257_v42, %v176_v25 }
  0x1a   : > { %v1508_v58 = vrot.slane %v1258_v53, %v180_v26  ;;  %v1512_v62 = vrot.slane %v1257_v42, %v184_v28  ;;  %v1515_v3 = vrot.slane %v1258_v53, %v176_v25 }
  0x1c   : > { %2097 = vst [vmem:[#allocation4_spill] sm:$0xff] %v1512_v62 }
  0x1d   : > { %1318 = vset.pattern.permute.xlu1 %v1364_v5 }
  0x1e   : > { %325 = vperm.xlu1 %1318, %v1435_v0  }
  0x22   : > { %1319 = vset.pattern.permute.xlu1 %v1365_v6 }
  0x23   : > { %352 = vperm.xlu1 %1319, %v1435_v0  }
  0x27   : > { %1320 = vset.pattern.permute.xlu1 %v1366_v7 }
  0x28   : > { %379 = vperm.xlu1 %1320, %v1435_v0  }
  0x2c   : > { %1321 = vset.pattern.permute.xlu1 %v1367_v8 }
  0x2d   : > { %406 = vperm.xlu1 %1321, %v1435_v0  }
  0x31   : > { %1322 = vset.pattern.permute.xlu1 %v1368_v9 }
  0x32   : > { %434 = vperm.xlu1 %1322, %v1435_v0  }
  0x36   : > { %1323 = vset.pattern.permute.xlu1 %v1369_v10  ;;  %v1522_v10 = vrot.slane %v1258_v53, %v184_v28 }
  0x37   : > { %461 = vperm.xlu1 %1323, %v1435_v0  }
  0x3b   : > { %1324 = vset.pattern.permute.xlu1 %v1370_v11 }
  0x3c   : > { %488 = vperm.xlu1 %1324, %v1435_v0  }
  0x40   : > { %1325 = vset.pattern.permute.xlu1 %v1371_v12 }
  0x41   : > { %515 = vperm.xlu1 %1325, %v1435_v0  }
  0x45   : > { %1326 = vset.pattern.permute.xlu1 %v1372_v13 }
  0x46   : > { %543 = vperm.xlu1 %1326, %v1435_v0  }
  0x4a   : > { %1327 = vset.pattern.permute.xlu1 %v1373_v14 }
  0x4b   : > { %570 = vperm.xlu1 %1327, %v1435_v0  }
  0x4f   : > { %1328 = vset.pattern.permute.xlu1 %v1374_v15 }
  0x50   : > { %597 = vperm.xlu1 %1328, %v1435_v0  }
  0x54   : > { %1329 = vset.pattern.permute.xlu1 %v1375_v16 }
  0x55   : > { %624 = vperm.xlu1 %1329, %v1435_v0  }
  0x59   : > { %1330 = vset.pattern.permute.xlu1 %v1376_v17 }
  0x5a   : > { %652 = vperm.xlu1 %1330, %v1435_v0  }
  0x5e   : > { %1331 = vset.pattern.permute.xlu1 %v1377_v18 }
  0x5f   : > { %679 = vperm.xlu1 %1331, %v1435_v0  }
  0x63   : > { %1332 = vset.pattern.permute.xlu1 %v1378_v19 }
  0x64   : > { %706 = vperm.xlu1 %1332, %v1435_v0  }
  0x68   : > { %1333 = vset.pattern.permute.xlu1 %v1379_v20 }
  0x8e   : > { %v1464_v22 = vpop.permute.xlu1 %253 }
  0x8f   : > { %2095 = vst [vmem:[#allocation2_spill] sm:$0xff] %v1464_v22 }
  0x93   : > { %v1474_v27 = vpop.permute.xlu1 %284 }
  0x94   : > { %2096 = vst [vmem:[#allocation3_spill] sm:$0xff] %v1474_v27 }
  0x98   : > { %v298_v33 = vpop.permute.xlu1 %297 }
  0x99   : > { %v301_v34 = vsub.f32 %v1476_v29, %v298_v33  ;;  %v300_v35 = vsub.f32 %v1478_v30, %v298_v33  ;;  %v302_v40 = vsub.f32 %v1480_v31, %v298_v33 }
  0x9b   : > { %v304_v38 = vand.u32 2147483647, %v301_v34  ;;  %v303_v39 = vand.u32 2147483647, %v300_v35  ;;  %v305_v46 = vand.u32 2147483647, %v302_v40 }
  0x9d   : > { %311 = vrot.lane.b32.xlu1 %v304_v38, %s1380_s20  ;;  %309 = vrot.lane.b32.xlu0 %v303_v39, %s1380_s20  ;;  %v326_v41 = vpop.permute.xlu1 %325 }
  0x9e   : > { %v329_v43 = vsub.f32 %v1485_v36, %v326_v41  ;;  %v328_v44 = vsub.f32 %v1487_v37, %v326_v41  ;;  %v330_v54 = vsub.f32 %v1495_v47, %v326_v41 }
  0xa0   : > { %v332_v48 = vand.u32 2147483647, %v329_v43  ;;  %v331_v50 = vand.u32 2147483647, %v328_v44  ;;  %v333_v59 = vand.u32 2147483647, %v330_v54 }
  0xa1   : > { %313 = vrot.lane.b32.xlu0 %v305_v46, %s1380_s20 }
  0xa2   : > { %339 = vrot.lane.b32.xlu1 %v332_v48, %s1380_s20  ;;  %v353_v51 = vpop.permute.xlu1 %352 }
  0xa3   : > { %v356_v55 = vsub.f32 %v1497_v49, %v353_v51  ;;  %v355_v57 = vsub.f32 %v1501_v52, %v353_v51  ;;  %v357_v4 = vsub.f32 %v1512_v62, %v353_v51 }
  0xa5   : > { %337 = vrot.lane.b32.xlu0 %v331_v50, %s1380_s20  ;;  %v359_v56 = vand.u32 2147483647, %v356_v55  ;;  %v358_v63 = vand.u32 2147483647, %v355_v57  ;;  %v360_v8 = vand.u32 2147483647, %v357_v4 }
  0xa7   : > { %366 = vrot.lane.b32.xlu1 %v359_v56, %s1380_s20  ;;  %v380_v60 = vpop.permute.xlu1 %379 }
  0xa8   : > { %v383_v61 = vsub.f32 %v1508_v58, %v380_v60  ;;  %v382_v6 = vsub.f32 %v1515_v3, %v380_v60  ;;  %v384_v14 = vsub.f32 %v1522_v10, %v380_v60 }
  0xa9   : > { %341 = vrot.lane.b32.xlu0 %v333_v59, %s1380_s20 }
  0xaa   : > { %v386_v1 = vand.u32 2147483647, %v383_v61  ;;  %v385_v11 = vand.u32 2147483647, %v382_v6  ;;  %v387_v18 = vand.u32 2147483647, %v384_v14 }
  0xac   : > { %393 = vrot.lane.b32.xlu1 %v386_v1, %s1380_s20  ;;  %v407_v5 = vpop.permute.xlu1 %406 }
  0xad   : > { %364 = vrot.lane.b32.xlu0 %v358_v63, %s1380_s20  ;;  %v410_v7 = vsub.f32 %v1476_v29, %v407_v5  ;;  %v409_v16 = vsub.f32 %v1478_v30, %v407_v5  ;;  %v411_v23 = vsub.f32 %v1480_v31, %v407_v5 }
  0xaf   : > { %v413_v9 = vand.u32 2147483647, %v410_v7  ;;  %v412_v20 = vand.u32 2147483647, %v409_v16  ;;  %v414_v32 = vand.u32 2147483647, %v411_v23 }
  0xb1   : > { %368 = vrot.lane.b32.xlu0 %v360_v8, %s1380_s20  ;;  %v435_v12 = vpop.permute.xlu1 %434  ;;  %420 = vrot.lane.b32.xlu1 %v413_v9, %s1382_s21 }
  0xb2   : > { %v438_v13 = vsub.f32 %v1485_v36, %v435_v12  ;;  %v437_v26 = vsub.f32 %v1487_v37, %v435_v12  ;;  %v439_v38 = vsub.f32 %v1495_v47, %v435_v12 }
  0xb4   : > { %v441_v15 = vand.u32 2147483647, %v438_v13  ;;  %v440_v34 = vand.u32 2147483647, %v437_v26  ;;  %v442_v43 = vand.u32 2147483647, %v439_v38 }
  0xb5   : > { %391 = vrot.lane.b32.xlu0 %v385_v11, %s1380_s20 }
  0xb6   : > { %v462_v17 = vpop.permute.xlu1 %461  ;;  %448 = vrot.lane.b32.xlu1 %v441_v15, %s1382_s21 }
  0xb7   : > { %v465_v19 = vsub.f32 %v1497_v49, %v462_v17  ;;  %v464_v41 = vsub.f32 %v1501_v52, %v462_v17  ;;  %v466_v48 = vsub.f32 %v1512_v62, %v462_v17 }
  0xb9   : > { %395 = vrot.lane.b32.xlu0 %v387_v18, %s1380_s20  ;;  %v468_v21 = vand.u32 2147483647, %v465_v19  ;;  %v467_v45 = vand.u32 2147483647, %v464_v41  ;;  %v469_v54 = vand.u32 2147483647, %v466_v48 }
  0xbb   : > { %v489_v24 = vpop.permute.xlu1 %488  ;;  %475 = vrot.lane.b32.xlu1 %v468_v21, %s1382_s21 }
  0xbc   : > { %v492_v25 = vsub.f32 %v1508_v58, %v489_v24  ;;  %v491_v53 = vsub.f32 %v1515_v3, %v489_v24  ;;  %v493_v60 = vsub.f32 %v1522_v10, %v489_v24 }
  0xbd   : > { %418 = vrot.lane.b32.xlu0 %v412_v20, %s1382_s21 }
  0xbe   : > { %v495_v28 = vand.u32 2147483647, %v492_v25  ;;  %v494_v57 = vand.u32 2147483647, %v491_v53  ;;  %v496_v4 = vand.u32 2147483647, %v493_v60 }
  0xc0   : > { %v516_v33 = vpop.permute.xlu1 %515  ;;  %502 = vrot.lane.b32.xlu1 %v495_v28, %s1382_s21 }
  0xc1   : > { %422 = vrot.lane.b32.xlu0 %v414_v32, %s1382_s21  ;;  %v519_v35 = vsub.f32 %v1476_v29, %v516_v33  ;;  %v518_v1 = vsub.f32 %v1478_v30, %v516_v33  ;;  %v520_v9 = vsub.f32 %v1480_v31, %v516_v33  ;;  %v1385_v33 = vmov 22  }
  0xc3   : > { %v522_v39 = vand.u32 2147483647, %v519_v35  ;;  %v521_v7 = vand.u32 2147483647, %v518_v1  ;;  %v523_v14 = vand.u32 2147483647, %v520_v9 }
  0xc5   : > { %446 = vrot.lane.b32.xlu0 %v440_v34, %s1382_s21  ;;  %v544_v40 = vpop.permute.xlu1 %543  ;;  %529 = vrot.lane.b32.xlu1 %v522_v39, %s1383_s22  ;;  %v1386_v39 = vmov 23  }
  0xc6   : > { %v547_v42 = vsub.f32 %v1485_v36, %v544_v40  ;;  %v546_v12 = vsub.f32 %v1487_v37, %v544_v40  ;;  %v548_v19 = vsub.f32 %v1495_v47, %v544_v40 }
  0xc8   : > { %v550_v44 = vand.u32 2147483647, %v547_v42  ;;  %v549_v17 = vand.u32 2147483647, %v546_v12  ;;  %v551_v24 = vand.u32 2147483647, %v548_v19 }
  0xc9   : > { %450 = vrot.lane.b32.xlu0 %v442_v43, %s1382_s21  ;;  %v1387_v42 = vmov 25  }
  0xca   : > { %v571_v46 = vpop.permute.xlu1 %570  ;;  %557 = vrot.lane.b32.xlu1 %v550_v44, %s1383_s22 }
  0xcb   : > { %v574_v50 = vsub.f32 %v1497_v49, %v571_v46  ;;  %v573_v21 = vsub.f32 %v1501_v52, %v571_v46  ;;  %v575_v26 = vsub.f32 %v1512_v62, %v571_v46  ;;  %v1388_v46 = vmov 26  }
  0xcd   : > { %473 = vrot.lane.b32.xlu0 %v467_v45, %s1382_s21  ;;  %v577_v51 = vand.u32 2147483647, %v574_v50  ;;  %v576_v25 = vand.u32 2147483647, %v573_v21  ;;  %v578_v32 = vand.u32 2147483647, %v575_v26 }
  0xce   : > { %v1396_v21 = vmov 27  }
  0xcf   : > { %v598_v55 = vpop.permute.xlu1 %597  ;;  %584 = vrot.lane.b32.xlu1 %v577_v51, %s1383_s22  ;;  %v1389_v51 = vmov 28  }
  0xd0   : > { %v601_v56 = vsub.f32 %v1508_v58, %v598_v55  ;;  %v600_v28 = vsub.f32 %v1515_v3, %v598_v55  ;;  %v602_v35 = vsub.f32 %v1522_v10, %v598_v55  ;;  %v1610_v55 = vpop.permute.xlu0 %222 }
  0xd1   : > { %477 = vrot.lane.b32.xlu0 %v469_v54, %s1382_s21  ;;  %2098 = vst [vmem:[#allocation5_spill] sm:$0xff] %v1610_v55 }
  0xd2   : > { %v604_v59 = vand.u32 2147483647, %v601_v56  ;;  %v603_v34 = vand.u32 2147483647, %v600_v28  ;;  %v605_v40 = vand.u32 2147483647, %v602_v35 }
  0xd4   : > { %v625_v61 = vpop.permute.xlu1 %624  ;;  %611 = vrot.lane.b32.xlu1 %v604_v59, %s1383_s22 }
  0xd5   : > { %500 = vrot.lane.b32.xlu0 %v494_v57, %s1382_s21  ;;  %v628_v63 = vsub.f32 %v1476_v29, %v625_v61  ;;  %v627_v38 = vsub.f32 %v1478_v30, %v625_v61  ;;  %v629_v43 = vsub.f32 %v1480_v31, %v625_v61  ;;  %v1390_v57 = vmov 29  }
  0xd6   : > { %v1391_v61 = vmov 31  }
  0xd7   : > { %v631_v5 = vand.u32 2147483647, %v628_v63  ;;  %v630_v41 = vand.u32 2147483647, %v627_v38  ;;  %v632_v45 = vand.u32 2147483647, %v629_v43 }
  0xd8   : > { %v1399_v38 = vmov 0  }
  0xd9   : > { %504 = vrot.lane.b32.xlu0 %v496_v4, %s1382_s21  ;;  %v1561_v6 = vpop.permute.xlu1 %652  ;;  %638 = vrot.lane.b32.xlu1 %v631_v5, %s1384_s23 }
  0xda   : > { %v656_v8 = vsub.f32 %v1485_v36, %v1561_v6  ;;  %v655_v44 = vsub.f32 %v1487_v37, %v1561_v6  ;;  %v657_v50 = vsub.f32 %v1495_v47, %v1561_v6 }
  0xdc   : > { %v659_v11 = vand.u32 2147483647, %v656_v8  ;;  %v658_v48 = vand.u32 2147483647, %v655_v44  ;;  %v660_v54 = vand.u32 2147483647, %v657_v50 }
  0xdd   : > { %527 = vrot.lane.b32.xlu0 %v521_v7, %s1383_s22  ;;  %v1392_v7 = vmov 32  }
  0xde   : > { %v1569_v13 = vpop.permute.xlu1 %679  ;;  %666 = vrot.lane.b32.xlu1 %v659_v11, %s1384_s23  ;;  %v1393_v11 = vmov 34  }
  0xdf   : > { %v683_v15 = vsub.f32 %v1497_v49, %v1569_v13  ;;  %v682_v53 = vsub.f32 %v1501_v52, %v1569_v13  ;;  %v684_v59 = vsub.f32 %v1512_v62, %v1569_v13 }
  0xe1   : > { %531 = vrot.lane.b32.xlu0 %v523_v14, %s1383_s22  ;;  %v686_v16 = vand.u32 2147483647, %v683_v15  ;;  %v685_v56 = vand.u32 2147483647, %v682_v53  ;;  %v687_v1 = vand.u32 2147483647, %v684_v59 }
  0xe2   : > { %v1394_v15 = vmov 35  }
  0xe3   : > { %v1575_v18 = vpop.permute.xlu1 %706  ;;  %693 = vrot.lane.b32.xlu1 %v686_v16, %s1384_s23 }
  0xe4   : > { %v710_v20 = vsub.f32 %v1508_v58, %v1575_v18  ;;  %v709_v60 = vsub.f32 %v1515_v3, %v1575_v18  ;;  %v711_v6 = vsub.f32 %v1522_v10, %v1575_v18  ;;  %v1395_v18 = vmov 24  }
  0xe5   : > { %555 = vrot.lane.b32.xlu0 %v549_v17, %s1383_s22 }
  0xe6   : > { %v713_v23 = vand.u32 2147483647, %v710_v20  ;;  %v712_v4 = vand.u32 2147483647, %v709_v60  ;;  %v714_v9 = vand.u32 2147483647, %v711_v6 }
  0xe8   : > { %720 = vrot.lane.b32.xlu1 %v713_v23, %s1384_s23 }
  0xe9   : > { %559 = vrot.lane.b32.xlu0 %v551_v24, %s1383_s22 }
  0xec   : > { %733 = vperm.xlu1 %1333, %v1435_v0  }
  0xed   : > { %582 = vrot.lane.b32.xlu0 %v576_v25, %s1383_s22  ;;  %v1397_v25 = vmov 30  }
  0xf0   : > { %1335 = vset.pattern.permute.xlu1 %v1385_v33  ;;  %v1398_v33 = vmov 33  }
  0xf1   : > { %586 = vrot.lane.b32.xlu0 %v578_v32, %s1383_s22  ;;  %788 = vperm.xlu1 %1335, %v1435_v0  }
  0xf5   : > { %609 = vrot.lane.b32.xlu0 %v603_v34, %s1383_s22  ;;  %1336 = vset.pattern.permute.xlu1 %v1386_v39 }
  0xf6   : > { %815 = vperm.xlu1 %1336, %v1435_v0  }
  0xf9   : > { %613 = vrot.lane.b32.xlu0 %v605_v40, %s1383_s22 }
  0xfa   : > { %1338 = vset.pattern.permute.xlu1 %v1387_v42 }
  0xfb   : > { %870 = vperm.xlu1 %1338, %v1435_v0  }
  0xfd   : > { %636 = vrot.lane.b32.xlu0 %v630_v41, %s1384_s23 }
  0xff   : > { %1339 = vset.pattern.permute.xlu1 %v1388_v46 }
 0x100   : > { %897 = vperm.xlu1 %1339, %v1435_v0  }
 0x101   : > { %640 = vrot.lane.b32.xlu0 %v632_v45, %s1384_s23 }
 0x104   : > { %1341 = vset.pattern.permute.xlu1 %v1389_v51 }
 0x105   : > { %664 = vrot.lane.b32.xlu0 %v658_v48, %s1384_s23  ;;  %951 = vperm.xlu1 %1341, %v1435_v0  }
 0x109   : > { %668 = vrot.lane.b32.xlu0 %v660_v54, %s1384_s23  ;;  %1342 = vset.pattern.permute.xlu1 %v1390_v57 }
 0x10a   : > { %979 = vperm.xlu1 %1342, %v1435_v0  }
 0x10d   : > { %691 = vrot.lane.b32.xlu0 %v685_v56, %s1384_s23 }
 0x10e   : > { %1344 = vset.pattern.permute.xlu1 %v1391_v61 }
 0x10f   : > { %v1618_v63 = vpop.permute.xlu0 %309  ;;  %1033 = vperm.xlu1 %1344, %v1435_v0   ;;  %v1630_v12 = vpop.permute.xlu1 %311 }
 0x111   : > { %695 = vrot.lane.b32.xlu0 %v687_v1, %s1384_s23 }
 0x113   : > { %v1622_v5 = vpop.permute.xlu0 %313  ;;  %1345 = vset.pattern.permute.xlu1 %v1392_v7 }
 0x114   : > { %1060 = vperm.xlu1 %1345, %v1435_v0   ;;  %v1636_v14 = vpop.permute.xlu1 %339 }
 0x115   : > { %718 = vrot.lane.b32.xlu0 %v712_v4, %s1384_s23 }
 0x117   : > { %v1628_v8 = vpop.permute.xlu0 %337 }
 0x118   : > { %1348 = vset.pattern.permute.xlu1 %v1393_v11 }
 0x119   : > { %722 = vrot.lane.b32.xlu0 %v714_v9, %s1384_s23  ;;  %1115 = vperm.xlu1 %1348, %v1435_v0   ;;  %v1642_v17 = vpop.permute.xlu1 %366 }
 0x11b   : > { %v1634_v13 = vpop.permute.xlu0 %341 }
 0x11d   : > { %761 = vperm.xlu0 %1334, %v1435_v0   ;;  %1349 = vset.pattern.permute.xlu1 %v1394_v15 }
 0x11e   : > { %1142 = vperm.xlu1 %1349, %v1435_v0   ;;  %v1648_v20 = vpop.permute.xlu1 %393 }
 0x11f   : > { %v1640_v16 = vpop.permute.xlu0 %364 }
 0x121   : > { %1337 = vset.pattern.permute.xlu0 %v1395_v18 }
 0x122   : > { %842 = vperm.xlu0 %1337, %v1435_v0   ;;  %1350 = vset.pattern.permute.xlu1 %v2071_v2 }
 0x123   : > { %v1646_v19 = vpop.permute.xlu0 %368  ;;  %v1653_v24 = vpop.permute.xlu1 %420 }
 0x126   : > { %1340 = vset.pattern.permute.xlu0 %v1396_v21 }
 0x127   : > { %924 = vperm.xlu0 %1340, %v1435_v0   ;;  %v1651_v23 = vpop.permute.xlu0 %391 }
 0x128   : > { %v1658_v28 = vpop.permute.xlu1 %448 }
 0x12b   : > { %1343 = vset.pattern.permute.xlu0 %v1397_v25  ;;  %v1655_v26 = vpop.permute.xlu0 %395 }
 0x12c   : > { %1006 = vperm.xlu0 %1343, %v1435_v0  }
 0x12d   : > { %v1663_v34 = vpop.permute.xlu1 %475 }
 0x12f   : > { %v1660_v32 = vpop.permute.xlu0 %418 }
 0x130   : > { %1346 = vset.pattern.permute.xlu0 %v1398_v33 }
 0x131   : > { %1088 = vperm.xlu0 %1346, %v1435_v0  }
 0x132   : > { %v1667_v39 = vpop.permute.xlu1 %502 }
 0x133   : > { %v1665_v35 = vpop.permute.xlu0 %422 }
 0x135   : > { %1347 = vset.pattern.permute.xlu0 %v1399_v38 }
 0x136   : > { %191 = vperm.xlu0 %1347, %v1435_v0  }
 0x137   : > { %v1670_v40 = vpop.permute.xlu0 %446  ;;  %v1674_v42 = vpop.permute.xlu1 %529 }
 0x138   : > { %2099 = vst [vmem:[#allocation6_spill] sm:$0xff] %v1674_v42 }
 0x13b   : > { %v1672_v41 = vpop.permute.xlu0 %450 }
 0x13c   : > { %v1678_v44 = vpop.permute.xlu1 %557 }
 0x13d   : > { %2100 = vst [vmem:[#allocation7_spill] sm:$0xff] %v1678_v44 }
 0x13f   : > { %v1676_v43 = vpop.permute.xlu0 %473 }
 0x141   : > { %v1682_v48 = vpop.permute.xlu1 %584 }
 0x142   : > { %2101 = vst [vmem:[#allocation8_spill] sm:$0xff] %v1682_v48 }
 0x143   : > { %v1680_v45 = vpop.permute.xlu0 %477 }
 0x146   : > { %v1690_v51 = vpop.permute.xlu1 %611 }
 0x147   : > { %v501_v46 = vpop.permute.xlu0 %500  ;;  %2102 = vst [vmem:[#allocation9_spill] sm:$0xff] %v1690_v51 }
 0x148   : > { %v1686_v50 = vsel %vm424_vm0, %v501_v46, %v1667_v39 }
 0x14b   : > { %v1688_v0 = vpop.permute.xlu0 %504  ;;  %v1698_v57 = vpop.permute.xlu1 %638 }
 0x14c   : > { %2105 = vst [vmem:[#allocation12_spill] sm:$0xff] %v1698_v57 }
 0x14f   : > { %v528_v53 = vpop.permute.xlu0 %527 }
 0x150   : > { %v1694_v54 = vsel %vm533_vm1, %v528_v53, %v1674_v42  ;;  %v1704_v61 = vpop.permute.xlu1 %666 }
 0x151   : > { %2103 = vst [vmem:[#allocation10_spill] sm:$0xff] %v1694_v54  ;;  %2107 = vst [vmem:[#allocation14_spill] sm:$0xff] %v1704_v61 }
 0x153   : > { %v1696_v56 = vpop.permute.xlu0 %531 }
 0x154   : > { %2104 = vst [vmem:[#allocation11_spill] sm:$0xff] %v1696_v56 }
 0x155   : > { %v1708_v6 = vpop.permute.xlu1 %693 }
 0x156   : > { %2109 = vst [vmem:[#allocation16_spill] sm:$0xff] %v1708_v6 }
 0x157   : > { %v556_v59 = vpop.permute.xlu0 %555 }
 0x158   : > { %v1702_v60 = vsel %vm533_vm1, %v556_v59, %v1678_v44 }
 0x159   : > { %2106 = vst [vmem:[#allocation13_spill] sm:$0xff] %v1702_v60 }
 0x15a   : > { %v1716_v11 = vpop.permute.xlu1 %720 }
 0x15b   : > { %v1706_v1 = vpop.permute.xlu0 %559  ;;  %2112 = vst [vmem:[#allocation19_spill] sm:$0xff] %v1716_v11 }
 0x15c   : > { %2108 = vst [vmem:[#allocation15_spill] sm:$0xff] %v1706_v1 }
 0x15f   : > { %v583_v4 = vpop.permute.xlu0 %582 }
 0x160   : > { %v1712_v7 = vsel %vm533_vm1, %v583_v4, %v1682_v48 }
 0x161   : > { %2110 = vst [vmem:[#allocation17_spill] sm:$0xff] %v1712_v7 }
 0x163   : > { %v1714_v9 = vpop.permute.xlu0 %586 }
 0x164   : > { %2111 = vst [vmem:[#allocation18_spill] sm:$0xff] %v1714_v9 }
 0x167   : > { %v610_v15 = vpop.permute.xlu0 %609 }
 0x168   : > { %v1720_v18 = vsel %vm533_vm1, %v610_v15, %v1690_v51 }
 0x169   : > { %2113 = vst [vmem:[#allocation20_spill] sm:$0xff] %v1720_v18 }
 0x16b   : > { %v734_v21 = vpop.permute.xlu1 %733  ;;  %v1722_v25 = vpop.permute.xlu0 %613 }
 0x16c   : > { %2114 = vst [vmem:[#allocation21_spill] sm:$0xff] %v1722_v25  ;;  %v736_v33 = vsub.f32 %v1478_v30, %v734_v21  ;;  %v737_v38 = vsub.f32 %v1476_v29, %v734_v21  ;;  %v738_v46 = vsub.f32 %v1480_v31, %v734_v21 }
 0x16e   : > { %v740_v53 = vand.u32 2147483647, %v737_v38  ;;  %v739_v59 = vand.u32 2147483647, %v736_v33  ;;  %v741_v15 = vand.u32 2147483647, %v738_v46 }
 0x16f   : > { %v637_v4 = vpop.permute.xlu0 %636 }
 0x170   : > { %v1729_v2 = vsel %vm642_vm2, %v637_v4, %v1698_v57  ;;  %747 = vrot.lane.b32.xlu1 %v740_v53, %s1400_s24  ;;  %745 = vrot.lane.b32.xlu0 %v739_v59, %s1400_s24 }
 0x171   : > { %2115 = vst [vmem:[#allocation22_spill] sm:$0xff] %v1729_v2  ;;  %v789_v2 = vpop.permute.xlu1 %788 }
 0x173   : > { %v1733_v18 = vpop.permute.xlu0 %640 }
 0x174   : > { %2116 = vst [vmem:[#allocation23_spill] sm:$0xff] %v1733_v18  ;;  %749 = vrot.lane.b32.xlu0 %v741_v15, %s1400_s24 }
 0x177   : > { %v665_v51 = vpop.permute.xlu0 %664 }
 0x178   : > { %v1738_v21 = vsel %vm642_vm2, %v665_v51, %v1704_v61  ;;  %v791_v61 = vsub.f32 %v1501_v52, %v789_v2 }
 0x179   : > { %2117 = vst [vmem:[#allocation24_spill] sm:$0xff] %v1738_v21 }
 0x17b   : > { %v1740_v33 = vpop.permute.xlu0 %668 }
 0x17c   : > { %2118 = vst [vmem:[#allocation25_spill] sm:$0xff] %v1740_v33  ;;  %v793_v33 = vsub.f32 %v1512_v62, %v789_v2 }
 0x17f   : > { %v692_v38 = vpop.permute.xlu0 %691 }
 0x180   : > { %v1744_v4 = vsel %vm642_vm2, %v692_v38, %v1708_v6 }
 0x181   : > { %2119 = vst [vmem:[#allocation26_spill] sm:$0xff] %v1744_v4 }
 0x183   : > { %v1746_v53 = vpop.permute.xlu0 %695 }
 0x184   : > { %2120 = vst [vmem:[#allocation27_spill] sm:$0xff] %v1746_v53  ;;  %v792_v53 = vsub.f32 %v1497_v49, %v789_v2 }
 0x186   : > { %v795_v18 = vand.u32 2147483647, %v792_v53 }
 0x187   : > { %v719_v59 = vpop.permute.xlu0 %718 }
 0x188   : > { %v1750_v46 = vsel %vm642_vm2, %v719_v59, %v1716_v11  ;;  %v794_v59 = vand.u32 2147483647, %v791_v61  ;;  %v816_v11 = vpop.permute.xlu1 %815 }
 0x189   : > { %2121 = vst [vmem:[#allocation28_spill] sm:$0xff] %v1750_v46 }
 0x18b   : > { %v1752_v15 = vpop.permute.xlu0 %722 }
 0x18c   : > { %2122 = vst [vmem:[#allocation29_spill] sm:$0xff] %v1752_v15 }
 0x19c   : > { %v762_v57 = vpop.permute.xlu0 %761 }
 0x19d   : > { %v764_v51 = vsub.f32 %v1487_v37, %v762_v57  ;;  %v765_v21 = vsub.f32 %v1485_v36, %v762_v57  ;;  %v766_v38 = vsub.f32 %v1495_v47, %v762_v57  ;;  %v818_v57 = vsub.f32 %v1515_v3, %v816_v11 }
 0x19f   : > { %v768_v4 = vand.u32 2147483647, %v765_v21  ;;  %v767_v6 = vand.u32 2147483647, %v764_v51  ;;  %v769_v15 = vand.u32 2147483647, %v766_v38  ;;  %v819_v21 = vsub.f32 %v1508_v58, %v816_v11 }
 0x1a0   : > { %v796_v51 = vand.u32 2147483647, %v793_v33 }
 0x1a1   : > { %775 = vrot.lane.b32.xlu0 %v768_v4, %s1400_s24  ;;  %773 = vrot.lane.b32.xlu1 %v767_v6, %s1400_s24  ;;  %v843_v46 = vpop.permute.xlu0 %842  ;;  %v821_v4 = vand.u32 2147483647, %v818_v57  ;;  %v822_v61 = vand.u32 2147483647, %v819_v21  ;;  %v820_v6 = vsub.f32 %v1522_v10, %v816_v11 }
 0x1a2   : > { %v845_v2 = vsub.f32 %v1478_v30, %v843_v46  ;;  %v847_v33 = vsub.f32 %v1480_v31, %v843_v46 }
 0x1a3   : > { %v823_v57 = vand.u32 2147483647, %v820_v6  ;;  %v225_v6 = vsub.f32 %v1487_v37, %v1610_v55 }
 0x1a4   : > { %v848_v53 = vand.u32 2147483647, %v845_v2  ;;  %v850_v21 = vand.u32 2147483647, %v847_v33 }
 0x1a5   : > { %800 = vrot.lane.b32.xlu0 %v794_v59, %s1400_s24  ;;  %777 = vrot.lane.b32.xlu1 %v769_v15, %s1400_s24  ;;  %v871_v15 = vpop.permute.xlu1 %870  ;;  %v846_v59 = vsub.f32 %v1476_v29, %v843_v46  ;;  %v228_v9 = vand.u32 2147483647, %v225_v6 }
 0x1a6   : > { %v1766_v25 = vpop.permute.xlu0 %924  ;;  %v873_v11 = vsub.f32 %v1487_v37, %v871_v15 }
 0x1a8   : > { %v876_v60 = vand.u32 2147483647, %v873_v11  ;;  %v257_v11 = vsub.f32 %v1497_v49, %v1464_v22 }
 0x1a9   : > { %804 = vrot.lane.b32.xlu0 %v796_v51, %s1400_s24  ;;  %802 = vrot.lane.b32.xlu1 %v795_v18, %s1400_s24  ;;  %v849_v51 = vand.u32 2147483647, %v846_v59  ;;  %v874_v18 = vsub.f32 %v1485_v36, %v871_v15  ;;  %v898_v46 = vpop.permute.xlu1 %897  ;;  %v226_v59 = vsub.f32 %v1485_v36, %v1610_v55  ;;  %v288_v55 = vsub.f32 %v1508_v58, %v1474_v27 }
 0x1aa   : > { %v901_v48 = vsub.f32 %v1497_v49, %v898_v46 }
 0x1ab   : > { %v1772_v38 = vpop.permute.xlu0 %1006  ;;  %v229_v44 = vand.u32 2147483647, %v226_v59 }
 0x1ad   : > { %829 = vrot.lane.b32.xlu0 %v822_v61, %s1400_s24  ;;  %827 = vrot.lane.b32.xlu1 %v821_v4, %s1400_s24  ;;  %v900_v4 = vsub.f32 %v1501_v52, %v898_v46  ;;  %v877_v61 = vand.u32 2147483647, %v874_v18  ;;  %v287_v18 = vsub.f32 %v1515_v3, %v1474_v27  ;;  %v927_v27 = vsub.f32 %v1515_v3, %v1766_v25  ;;  %v952_v59 = vpop.permute.xlu1 %951 }
 0x1b0   : > { %v1778_v7 = vpop.permute.xlu0 %1088 }
 0x1b1   : > { %2123 = vst [vmem:[#allocation30_spill] sm:$0xff] %v1778_v7  ;;  %831 = vrot.lane.b32.xlu1 %v823_v57, %s1400_s24  ;;  %854 = vrot.lane.b32.xlu0 %v848_v53, %s1401_s25  ;;  %v256_v57 = vsub.f32 %v1501_v52, %v1464_v22 }
 0x1b5   : > { %856 = vrot.lane.b32.xlu1 %v849_v51, %s1401_s25  ;;  %858 = vrot.lane.b32.xlu0 %v850_v21, %s1401_s25  ;;  %v1786_v2 = vpop.permute.xlu0 %191  ;;  %v875_v51 = vsub.f32 %v1495_v47, %v871_v15  ;;  %v903_v15 = vand.u32 2147483647, %v900_v4  ;;  %v290_v4 = vand.u32 2147483647, %v287_v18 }
 0x1b6   : > { %2124 = vst [vmem:[#allocation31_spill] sm:$0xff] %v1786_v2  ;;  %v194_v33 = vsub.f32 %v1478_v30, %v1786_v2  ;;  %v195_v53 = vsub.f32 %v1476_v29, %v1786_v2  ;;  %v902_v2 = vsub.f32 %v1512_v62, %v898_v46  ;;  %v928_v46 = vsub.f32 %v1508_v58, %v1766_v25 }
 0x1b7   : > { %v878_v54 = vand.u32 2147483647, %v875_v51  ;;  %v371_v51 = vsel %vm315_vm3, %v1642_v17, %v1646_v19 }
 0x1b8   : > { %v197_v21 = vand.u32 2147483647, %v194_v33  ;;  %v198_v7 = vand.u32 2147483647, %v195_v53  ;;  %v259_v33 = vand.u32 2147483647, %v256_v57 }
 0x1b9   : > { %882 = vrot.lane.b32.xlu1 %v876_v60, %s1401_s25  ;;  %884 = vrot.lane.b32.xlu0 %v877_v61, %s1401_s25  ;;  %v260_v53 = vand.u32 2147483647, %v257_v11  ;;  %v904_v60 = vand.u32 2147483647, %v901_v48  ;;  %v905_v62 = vand.u32 2147483647, %v902_v2  ;;  %v317_v48 = vsel %vm315_vm3, %v1630_v12, %v1622_v5 }
 0x1ba   : > { %v200_v22 = vsub.f32 0.0, %v197_v21  ;;  %v201_v1 = vsub.f32 0.0, %v198_v7  ;;  %v291_v7 = vand.u32 2147483647, %v288_v55  ;;  %v931_v2 = vand.u32 2147483647, %v928_v46  ;;  %v980_v21 = vpop.permute.xlu1 %979 }
 0x1bb   : > { %v954_v55 = vsub.f32 %v1478_v30, %v952_v59  ;;  %v955_v11 = vsub.f32 %v1476_v29, %v952_v59 }
 0x1bc   : > { %v231_v42 = vsub.f32 %v200_v22, %v228_v9  ;;  %v232_v56 = vsub.f32 %v201_v1, %v229_v44  ;;  %v316_v22 = vsel %vm315_vm3, %v1618_v63, %v1630_v12  ;;  %v930_v9 = vand.u32 2147483647, %v927_v27 }
 0x1bd   : > { %886 = vrot.lane.b32.xlu1 %v878_v54, %s1401_s25  ;;  %909 = vrot.lane.b32.xlu0 %v903_v15, %s1401_s25  ;;  %v343_v63 = vsel %vm315_vm3, %v1628_v8, %v1636_v14  ;;  %v929_v27 = vsub.f32 %v1522_v10, %v1766_v25  ;;  %v370_v12 = vsel %vm315_vm3, %v1640_v16, %v1642_v17  ;;  %v957_v18 = vand.u32 2147483647, %v954_v55 }
 0x1be   : > { %v262_v61 = vsub.f32 %v231_v42, %v259_v33  ;;  %v263_v6 = vsub.f32 %v232_v56, %v260_v53  ;;  %v344_v56 = vsel %vm315_vm3, %v1636_v14, %v1634_v13  ;;  %v956_v8 = vsub.f32 %v1480_v31, %v952_v59 }
 0x1bf   : > { %v397_v16 = vsel %vm315_vm3, %v1651_v23, %v1648_v20  ;;  %v398_v17 = vsel %vm315_vm3, %v1648_v20, %v1655_v26  ;;  %v932_v15 = vand.u32 2147483647, %v929_v27  ;;  %v425_v33 = vsel %vm424_vm0, %v1660_v32, %v1653_v24  ;;  %v1859_v32 = vpop.permute.xlu1 %1033  ;;  %v2126_v27 = vld [vmem:[#allocation6_spill] sm:$0xff] }
 0x1c0   : > { %v293_v44 = vsub.f32 %v262_v61, %v290_v4  ;;  %v294_v1 = vsub.f32 %v263_v6, %v291_v7  ;;  %v426_v53 = vsel %vm424_vm0, %v1653_v24, %v1665_v35  ;;  %v958_v4 = vand.u32 2147483647, %v955_v11 }
 0x1c1   : > { %911 = vrot.lane.b32.xlu1 %v904_v60, %s1401_s25  ;;  %913 = vrot.lane.b32.xlu0 %v905_v62, %s1401_s25  ;;  %v959_v7 = vand.u32 2147483647, %v956_v8  ;;  %v982_v20 = vsub.f32 %v1487_v37, %v980_v21  ;;  %v983_v23 = vsub.f32 %v1485_v36, %v980_v21  ;;  %v452_v24 = vsel %vm424_vm0, %v1670_v40, %v1658_v28 }
 0x1c2   : > { %v321_v42 = vsub.f32 %v293_v44, %v316_v22  ;;  %v322_v54 = vsub.f32 %v294_v1, %v317_v48  ;;  %v453_v59 = vsel %vm424_vm0, %v1658_v28, %v1672_v41  ;;  %v479_v22 = vsel %vm424_vm0, %v1676_v43, %v1663_v34 }
 0x1c3   : > { %v480_v48 = vsel %vm424_vm0, %v1663_v34, %v1680_v45  ;;  %v986_v55 = vand.u32 2147483647, %v983_v23  ;;  %v507_v43 = vsel %vm424_vm0, %v1667_v39, %v1688_v0  ;;  %v2128_v39 = vld [vmem:[#allocation10_spill] sm:$0xff]  ;;  %v2134_v23 = vld [vmem:[#allocation17_spill] sm:$0xff] }
 0x1c4   : > { %v348_v62 = vsub.f32 %v321_v42, %v343_v63  ;;  %v349_v57 = vsub.f32 %v322_v54, %v344_v56  ;;  %v984_v42 = vsub.f32 %v1495_v47, %v980_v21  ;;  %v1061_v54 = vpop.permute.xlu1 %1060  ;;  %v2125_v56 = vld [vmem:[#allocation11_spill] sm:$0xff] }
 0x1c5   : > { %938 = vrot.lane.b32.xlu0 %v931_v2, %s1401_s25  ;;  %936 = vrot.lane.b32.xlu1 %v930_v9, %s1401_s25  ;;  %v1009_v9 = vsub.f32 %v1501_v52, %v1772_v38  ;;  %v985_v2 = vand.u32 2147483647, %v982_v20 }
 0x1c6   : > { %v375_v14 = vsub.f32 %v348_v62, %v370_v12  ;;  %v376_v25 = vsub.f32 %v349_v57, %v371_v51  ;;  %v535_v12 = vsel %vm533_vm1, %v2126_v27, %v2125_v56  ;;  %v1010_v62 = vsub.f32 %v1497_v49, %v1772_v38  ;;  %v2127_v57 = vld [vmem:[#allocation4_spill] sm:$0xff]  ;;  %v2141_v27 = vld [vmem:[#allocation25_spill] sm:$0xff] }
 0x1c7   : > { %v1011_v51 = vsub.f32 %v2127_v57, %v1772_v38  ;;  %v1012_v11 = vand.u32 2147483647, %v1009_v9  ;;  %v987_v21 = vand.u32 2147483647, %v984_v42  ;;  %v2138_v9 = vld [vmem:[#allocation23_spill] sm:$0xff]  ;;  %v2140_v42 = vld [vmem:[#allocation22_spill] sm:$0xff] }
 0x1c8   : > { %v402_v46 = vsub.f32 %v375_v14, %v397_v16  ;;  %v403_v60 = vsub.f32 %v376_v25, %v398_v17  ;;  %v2130_v14 = vld [vmem:[#allocation7_spill] sm:$0xff]  ;;  %v2131_v16 = vld [vmem:[#allocation18_spill] sm:$0xff]  ;;  %v2132_v17 = vld [vmem:[#allocation8_spill] sm:$0xff]  ;;  %v1905_v20 = vpop.permute.xlu1 %1115 }
 0x1c9   : > { %963 = vrot.lane.b32.xlu0 %v957_v18, %s1402_s26  ;;  %940 = vrot.lane.b32.xlu1 %v932_v15, %s1401_s25  ;;  %v589_v15 = vsel %vm533_vm1, %v2132_v17, %v2131_v16  ;;  %v1065_v17 = vsub.f32 %v1480_v31, %v1061_v54 }
 0x1ca   : > { %v430_v61 = vsub.f32 %v402_v46, %v425_v33  ;;  %v431_v6 = vsub.f32 %v403_v60, %v426_v53  ;;  %v2133_v33 = vld [vmem:[#allocation13_spill] sm:$0xff]  ;;  %v1013_v46 = vand.u32 2147483647, %v1010_v62  ;;  %v1014_v60 = vand.u32 2147483647, %v1011_v51 }
 0x1cb   : > { %v1038_v51 = vsub.f32 %v1522_v10, %v1859_v32 }
 0x1cc   : > { %v457_v44 = vsub.f32 %v430_v61, %v452_v24  ;;  %v458_v1 = vsub.f32 %v431_v6, %v453_v59  ;;  %v2135_v24 = vld [vmem:[#allocation21_spill] sm:$0xff] }
 0x1cd   : > { %967 = vrot.lane.b32.xlu0 %v959_v7, %s1402_s26  ;;  %965 = vrot.lane.b32.xlu1 %v958_v4, %s1402_s26  ;;  %v1036_v4 = vsub.f32 %v1515_v3, %v1859_v32  ;;  %v1037_v7 = vsub.f32 %v1508_v58, %v1859_v32  ;;  %v2136_v59 = vld [vmem:[#allocation9_spill] sm:$0xff] }
 0x1ce   : > { %v484_v28 = vsub.f32 %v457_v44, %v479_v22  ;;  %v485_v40 = vsub.f32 %v458_v1, %v480_v48  ;;  %v616_v22 = vsel %vm533_vm1, %v2136_v59, %v2135_v24  ;;  %v2137_v44 = vld [vmem:[#allocation20_spill] sm:$0xff] }
 0x1d0   : > { %v511_v34 = vsub.f32 %v484_v28, %v1686_v50  ;;  %v512_v63 = vsub.f32 %v485_v40, %v507_v43  ;;  %v2129_v50 = vld [vmem:[#allocation15_spill] sm:$0xff]  ;;  %v1039_v28 = vand.u32 2147483647, %v1036_v4  ;;  %v1040_v40 = vand.u32 2147483647, %v1037_v7  ;;  %v2149_v7 = vld [vmem:[#allocation28_spill] sm:$0xff] }
 0x1d1   : > { %993 = vrot.lane.b32.xlu0 %v986_v55, %s1402_s26  ;;  %991 = vrot.lane.b32.xlu1 %v985_v2, %s1402_s26  ;;  %v562_v25 = vsel %vm533_vm1, %v2130_v14, %v2129_v50  ;;  %v2139_v2 = vld [vmem:[#allocation12_spill] sm:$0xff]  ;;  %v1063_v43 = vsub.f32 %v1478_v30, %v1061_v54  ;;  %v2144_v14 = vld [vmem:[#allocation27_spill] sm:$0xff]  ;;  %v1041_v4 = vand.u32 2147483647, %v1038_v51 }
 0x1d2   : > { %v539_v8 = vsub.f32 %v511_v34, %v2128_v39  ;;  %v540_v18 = vsub.f32 %v512_v63, %v535_v12  ;;  %v644_v55 = vsel %vm642_vm2, %v2139_v2, %v2138_v9  ;;  %v2142_v12 = vld [vmem:[#allocation14_spill] sm:$0xff]  ;;  %v2143_v39 = vld [vmem:[#allocation24_spill] sm:$0xff] }
 0x1d3   : > { %v671_v62 = vsel %vm642_vm2, %v2142_v12, %v2141_v27  ;;  %v2145_v30 = vld [vmem:[#allocation16_spill] sm:$0xff] }
 0x1d4   : > { %v566_v53 = vsub.f32 %v539_v8, %v2133_v33  ;;  %v567_v38 = vsub.f32 %v540_v18, %v562_v25  ;;  %v698_v25 = vsel %vm642_vm2, %v2145_v30, %v2144_v14  ;;  %v2146_v33 = vld [vmem:[#allocation26_spill] sm:$0xff]  ;;  %v2151_v30 = vmov 1  }
 0x1d5   : > { %995 = vrot.lane.b32.xlu1 %v987_v21, %s1402_s26  ;;  %1018 = vrot.lane.b32.xlu0 %v1012_v11, %s1402_s26  ;;  %v1143_v11 = vpop.permute.xlu1 %1142  ;;  %v1064_v21 = vsub.f32 %v1476_v29, %v1061_v54  ;;  %v2150_v29 = vld [vmem:[#allocation30_spill] sm:$0xff] }
 0x1d6   : > { %v593_v61 = vsub.f32 %v566_v53, %v2134_v23  ;;  %v594_v6 = vsub.f32 %v567_v38, %v589_v15  ;;  %v1066_v15 = vand.u32 2147483647, %v1063_v43  ;;  %v2147_v38 = vld [vmem:[#allocation29_spill] sm:$0xff]  ;;  %v1091_v54 = vsub.f32 %v1487_v37, %v2150_v29 }
 0x1d7   : > { %v1067_v59 = vand.u32 2147483647, %v1064_v21  ;;  %v1146_v21 = vsub.f32 %v1508_v58, %v1143_v11  ;;  %v2154_v58 = vld [vmem:[#allocation2_spill] sm:$0xff] }
 0x1d8   : > { %v620_v1 = vsub.f32 %v593_v61, %v2137_v44  ;;  %v621_v48 = vsub.f32 %v594_v6, %v616_v22  ;;  %v1092_v6 = vsub.f32 %v1485_v36, %v2150_v29  ;;  %v1068_v22 = vand.u32 2147483647, %v1065_v17 }
 0x1d9   : > { %1020 = vrot.lane.b32.xlu1 %v1013_v46, %s1402_s26  ;;  %1022 = vrot.lane.b32.xlu0 %v1014_v60, %s1402_s26  ;;  %v2148_v46 = vld [vmem:[#allocation19_spill] sm:$0xff]  ;;  %v1093_v36 = vsub.f32 %v1495_v47, %v2150_v29 }
 0x1da   : > { %v648_v34 = vsub.f32 %v620_v1, %v2140_v42  ;;  %v649_v63 = vsub.f32 %v621_v48, %v644_v55  ;;  %v725_v60 = vsel %vm642_vm2, %v2148_v46, %v2147_v38  ;;  %v1094_v55 = vand.u32 2147483647, %v1091_v54 }
 0x1db   : > { %v1118_v42 = vsub.f32 %v1501_v52, %v1905_v20  ;;  %v1096_v12 = vand.u32 2147483647, %v1093_v36  ;;  %v1119_v52 = vsub.f32 %v1497_v49, %v1905_v20  ;;  %v2152_v49 = vld [vmem:[#allocation31_spill] sm:$0xff] }
 0x1dc   : > { %v675_v8 = vsub.f32 %v648_v34, %v2143_v39  ;;  %v676_v18 = vsub.f32 %v649_v63, %v671_v62  ;;  %v1120_v34 = vsub.f32 %v2127_v57, %v1905_v20  ;;  %v1168_v63 = vld [vmem:[%s2069_s2] sm:$0xf]  ;;  %v1145_v39 = vsub.f32 %v1515_v3, %v1143_v11 }
 0x1dd   : > { %1045 = vrot.lane.b32.xlu1 %v1039_v28, %s1402_s26  ;;  %1047 = vrot.lane.b32.xlu0 %v1040_v40, %s1402_s26  ;;  %v1095_v28 = vand.u32 2147483647, %v1092_v6  ;;  %v1121_v62 = vand.u32 2147483647, %v1118_v42  ;;  %v1149_v3 = vand.u32 2147483647, %v1146_v21  ;;  %v196_v20 = vsub.f32 %v1480_v31, %v2152_v49 }
 0x1de   : > { %v702_v53 = vsub.f32 %v675_v8, %v2146_v33  ;;  %v703_v32 = vsub.f32 %v676_v18, %v698_v25  ;;  %v1123_v51 = vand.u32 2147483647, %v1120_v34  ;;  %v1147_v8 = vsub.f32 %v1522_v10, %v1143_v11  ;;  %v2153_v33 = vld [vmem:[#allocation5_spill] sm:$0xff] }
 0x1df   : > { %v1148_v18 = vand.u32 2147483647, %v1145_v39  ;;  %v1122_v25 = vand.u32 2147483647, %v1119_v52  ;;  %v258_v11 = vsub.f32 %v2127_v57, %v2154_v58 }
 0x1e0   : > { %v729_v23 = vsub.f32 %v702_v53, %v2149_v7  ;;  %v1937_v61 = vsub.f32 %v703_v32, %v725_v60  ;;  %v1150_v17 = vand.u32 2147483647, %v1147_v8  ;;  %v227_v53 = vsub.f32 %v1495_v47, %v2153_v33  ;;  %v2155_v7 = vld [vmem:[#allocation3_spill] sm:$0xff] }
 0x1e1   : > { %1049 = vrot.lane.b32.xlu1 %v1041_v4, %s1402_s26  ;;  %1072 = vrot.lane.b32.xlu0 %v1066_v15, %s1403_s27  ;;  %v199_v15 = vand.u32 2147483647, %v196_v20  ;;  %v261_v4 = vand.u32 2147483647, %v258_v11 }
 0x1e2   : > { %v748_v44 = vpop.permute.xlu1 %747  ;;  %v746_v1 = vpop.permute.xlu0 %745  ;;  %v230_v46 = vand.u32 2147483647, %v227_v53 }
 0x1e3   : > { %v752_v48 = vsel %vm751_vm4, %v746_v1, %v748_v44  ;;  %v202_v32 = vsub.f32 0.0, %v199_v15 }
 0x1e4   : > { %v757_v2 = vsub.f32 %v729_v23, %v752_v48  ;;  %v289_v23 = vsub.f32 %v1522_v10, %v2155_v7 }
 0x1e5   : > { %1074 = vrot.lane.b32.xlu1 %v1067_v59, %s1403_s27  ;;  %1076 = vrot.lane.b32.xlu0 %v1068_v22, %s1403_s27  ;;  %v233_v60 = vsub.f32 %v202_v32, %v230_v46 }
 0x1e6   : > { %v1948_v37 = vpop.permute.xlu0 %749  ;;  %v292_v59 = vand.u32 2147483647, %v289_v23 }
 0x1e7   : > { %v753_v40 = vsel %vm751_vm4, %v748_v44, %v1948_v37  ;;  %v264_v6 = vsub.f32 %v233_v60, %v261_v4 }
 0x1e8   : > { %v758_v43 = vsub.f32 %v1937_v61, %v753_v40 }
 0x1e9   : > { %1102 = vrot.lane.b32.xlu0 %v1095_v28, %s1403_s27  ;;  %1100 = vrot.lane.b32.xlu1 %v1094_v55, %s1403_s27  ;;  %v295_v1 = vsub.f32 %v264_v6, %v292_v59 }
 0x1eb   : > { %v323_v28 = vsub.f32 %v295_v1, %v1622_v5 }
 0x1ed   : > { %1171 = vperm.xlu0 %1347, %v1168_v63   ;;  %1104 = vrot.lane.b32.xlu1 %v1096_v12, %s1403_s27  ;;  %v350_v40 = vsub.f32 %v323_v28, %v1634_v13 }
 0x1f1   : > { %1131 = vrot.lane.b32.xlu0 %v1123_v51, %s1403_s27  ;;  %1127 = vrot.lane.b32.xlu1 %v1121_v62, %s1403_s27 }
 0x1f2   : > { %1351 = vset.pattern.permute.xlu0 %v2151_v30 }
 0x1f5   : > { %1129 = vrot.lane.b32.xlu1 %v1122_v25, %s1403_s27  ;;  %1154 = vrot.lane.b32.xlu0 %v1148_v18, %s1403_s27 }
 0x1f9   : > { %1178 = vperm.xlu1 %1350, %v1168_v63   ;;  %1158 = vrot.lane.b32.xlu0 %v1150_v17, %s1403_s27 }
 0x1fd   : > { %1156 = vrot.lane.b32.xlu1 %v1149_v3, %s1403_s27 }
 0x213   : > { %v774_v61 = vpop.permute.xlu1 %773  ;;  %v776_v29 = vpop.permute.xlu0 %775 }
 0x214   : > { %v779_v54 = vsel %vm751_vm4, %v774_v61, %v776_v29 }
 0x215   : > { %v1986_v31 = vsub.f32 %v757_v2, %v779_v54  ;;  %v377_v2 = vsub.f32 %v350_v40, %v1646_v19 }
 0x217   : > { %v778_v22 = vpop.permute.xlu1 %777  ;;  %v801_v47 = vpop.permute.xlu0 %800  ;;  %v404_v62 = vsub.f32 %v377_v2, %v1655_v26 }
 0x218   : > { %v780_v44 = vsel %vm751_vm4, %v776_v29, %v778_v22 }
 0x219   : > { %v1989_v57 = vsub.f32 %v758_v43, %v780_v44  ;;  %v432_v43 = vsub.f32 %v404_v62, %v1665_v35 }
 0x21b   : > { %v803_v48 = vpop.permute.xlu1 %802  ;;  %v805_v55 = vpop.permute.xlu0 %804  ;;  %v459_v5 = vsub.f32 %v432_v43, %v1672_v41 }
 0x21c   : > { %v806_v29 = vsel %vm751_vm4, %v801_v47, %v803_v48  ;;  %v807_v54 = vsel %vm751_vm4, %v803_v48, %v805_v55 }
 0x21d   : > { %v486_v13 = vsub.f32 %v459_v5, %v1680_v45  ;;  %v812_v1 = vsub.f32 %v1989_v57, %v807_v54 }
 0x21f   : > { %v828_v10 = vpop.permute.xlu1 %827  ;;  %v830_v36 = vpop.permute.xlu0 %829  ;;  %v513_v19 = vsub.f32 %v486_v13, %v1688_v0 }
 0x220   : > { %v833_v59 = vsel %vm751_vm4, %v828_v10, %v830_v36 }
 0x221   : > { %v541_v26 = vsub.f32 %v513_v19, %v2125_v56 }
 0x223   : > { %v832_v42 = vpop.permute.xlu1 %831  ;;  %v855_v34 = vpop.permute.xlu0 %854  ;;  %v568_v35 = vsub.f32 %v541_v26, %v2129_v50 }
 0x225   : > { %v595_v41 = vsub.f32 %v568_v35, %v2131_v16 }
 0x227   : > { %v857_v63 = vpop.permute.xlu1 %856  ;;  %v859_v12 = vpop.permute.xlu0 %858  ;;  %v622_v32 = vsub.f32 %v595_v41, %v2135_v24 }
 0x228   : > { %v862_v28 = vsel %vm860_vm5, %v857_v63, %v859_v12 }
 0x229   : > { %v650_v0 = vsub.f32 %v622_v32, %v2138_v9 }
 0x22b   : > { %v883_v51 = vpop.permute.xlu1 %882  ;;  %v885_v39 = vpop.permute.xlu0 %884  ;;  %v677_v56 = vsub.f32 %v650_v0, %v2141_v27 }
 0x22d   : > { %v704_v50 = vsub.f32 %v677_v56, %v2144_v14 }
 0x22f   : > { %v887_v52 = vpop.permute.xlu1 %886  ;;  %v910_v8 = vpop.permute.xlu0 %909  ;;  %v731_v16 = vsub.f32 %v704_v50, %v2147_v38  ;;  %v834_v38 = vsel %vm751_vm4, %v830_v36, %v832_v42 }
 0x230   : > { %v839_v48 = vsub.f32 %v812_v1, %v834_v38  ;;  %v889_v2 = vsel %vm860_vm5, %v885_v39, %v887_v52 }
 0x231   : > { %v759_v24 = vsub.f32 %v731_v16, %v1948_v37  ;;  %v811_v37 = vsub.f32 %v1986_v31, %v806_v29 }
 0x232   : > { %v867_v43 = vsub.f32 %v839_v48, %v862_v28 }
 0x233   : > { %v912_v18 = vpop.permute.xlu1 %911  ;;  %v914_v30 = vpop.permute.xlu0 %913  ;;  %v786_v61 = vsub.f32 %v759_v24, %v778_v22  ;;  %v861_v22 = vsel %vm860_vm5, %v855_v34, %v857_v63  ;;  %v838_v40 = vsub.f32 %v811_v37, %v833_v59 }
 0x234   : > { %v915_v31 = vsel %vm860_vm5, %v910_v8, %v912_v18  ;;  %v916_v57 = vsel %vm860_vm5, %v912_v18, %v914_v30  ;;  %v894_v13 = vsub.f32 %v867_v43, %v889_v2 }
 0x235   : > { %v813_v9 = vsub.f32 %v786_v61, %v805_v55  ;;  %v888_v55 = vsel %vm860_vm5, %v883_v51, %v885_v39  ;;  %v866_v10 = vsub.f32 %v838_v40, %v861_v22 }
 0x236   : > { %v921_v39 = vsub.f32 %v894_v13, %v916_v57 }
 0x237   : > { %v937_v25 = vpop.permute.xlu1 %936  ;;  %v939_v21 = vpop.permute.xlu0 %938  ;;  %v840_v27 = vsub.f32 %v813_v9, %v832_v42  ;;  %v893_v34 = vsub.f32 %v866_v10, %v888_v55 }
 0x238   : > { %v942_v63 = vsel %vm860_vm5, %v937_v25, %v939_v21 }
 0x239   : > { %v868_v44 = vsub.f32 %v840_v27, %v859_v12  ;;  %v920_v19 = vsub.f32 %v893_v34, %v915_v31 }
 0x23b   : > { %v941_v17 = vpop.permute.xlu1 %940  ;;  %v964_v3 = vpop.permute.xlu0 %963  ;;  %v895_v47 = vsub.f32 %v868_v44, %v887_v52  ;;  %v947_v8 = vsub.f32 %v920_v19, %v942_v63 }
 0x23c   : > { %v943_v12 = vsel %vm860_vm5, %v939_v21, %v941_v17 }
 0x23d   : > { %v922_v62 = vsub.f32 %v895_v47, %v914_v30  ;;  %v948_v32 = vsub.f32 %v921_v39, %v943_v12 }
 0x23f   : > { %v966_v49 = vpop.permute.xlu1 %965  ;;  %v968_v20 = vpop.permute.xlu0 %967  ;;  %v949_v5 = vsub.f32 %v922_v62, %v941_v17 }
 0x240   : > { %v970_v26 = vsel %vm969_vm6, %v964_v3, %v966_v49  ;;  %v971_v35 = vsel %vm969_vm6, %v966_v49, %v968_v20 }
 0x241   : > { %v977_v51 = vsub.f32 %v949_v5, %v968_v20  ;;  %v975_v25 = vsub.f32 %v947_v8, %v970_v26  ;;  %v976_v50 = vsub.f32 %v948_v32, %v971_v35 }
 0x243   : > { %v992_v15 = vpop.permute.xlu1 %991  ;;  %v994_v33 = vpop.permute.xlu0 %993 }
 0x244   : > { %v997_v30 = vsel %vm969_vm6, %v992_v15, %v994_v33 }
 0x245   : > { %v1002_v20 = vsub.f32 %v975_v25, %v997_v30 }
 0x247   : > { %v996_v53 = vpop.permute.xlu1 %995  ;;  %v2003_v45 = vpop.permute.xlu0 %1018 }
 0x248   : > { %v1004_v41 = vsub.f32 %v977_v51, %v996_v53  ;;  %v998_v0 = vsel %vm969_vm6, %v994_v33, %v996_v53 }
 0x249   : > { %v1003_v16 = vsub.f32 %v976_v50, %v998_v0 }
 0x24b   : > { %v2005_v58 = vpop.permute.xlu1 %1020  ;;  %v1023_v11 = vpop.permute.xlu0 %1022 }
 0x24c   : > { %v1031_v56 = vsub.f32 %v1004_v41, %v1023_v11  ;;  %v1024_v17 = vsel %vm969_vm6, %v2003_v45, %v2005_v58  ;;  %v1025_v3 = vsel %vm969_vm6, %v2005_v58, %v1023_v11 }
 0x24d   : > { %v1029_v24 = vsub.f32 %v1002_v20, %v1024_v17  ;;  %v1030_v61 = vsub.f32 %v1003_v16, %v1025_v3 }
 0x24f   : > { %v2008_v46 = vpop.permute.xlu1 %1045  ;;  %v2012_v60 = vpop.permute.xlu0 %1047 }
 0x250   : > { %v1051_v15 = vsel %vm969_vm6, %v2008_v46, %v2012_v60 }
 0x251   : > { %v1056_v54 = vsub.f32 %v1029_v24, %v1051_v15 }
 0x253   : > { %v1050_v4 = vpop.permute.xlu1 %1049  ;;  %v2016_v7 = vpop.permute.xlu0 %1072 }
 0x254   : > { %v1058_v49 = vsub.f32 %v1031_v56, %v1050_v4  ;;  %v1052_v33 = vsel %vm969_vm6, %v2012_v60, %v1050_v4 }
 0x255   : > { %v1057_v27 = vsub.f32 %v1030_v61, %v1052_v33 }
 0x257   : > { %v2018_v23 = vpop.permute.xlu1 %1074  ;;  %v1077_v14 = vpop.permute.xlu0 %1076 }
 0x258   : > { %v1086_v53 = vsub.f32 %v1058_v49, %v1077_v14  ;;  %v1079_v45 = vsel %vm1078_vm7, %v2016_v7, %v2018_v23  ;;  %v1080_v58 = vsel %vm1078_vm7, %v2018_v23, %v1077_v14 }
 0x259   : > { %v1084_v4 = vsub.f32 %v1056_v54, %v1079_v45  ;;  %v1085_v38 = vsub.f32 %v1057_v27, %v1080_v58 }
 0x25b   : > { %v1101_v6 = vpop.permute.xlu1 %1100  ;;  %v1103_v36 = vpop.permute.xlu0 %1102 }
 0x25c   : > { %v1106_v46 = vsel %vm1078_vm7, %v1101_v6, %v1103_v36 }
 0x25d   : > { %v1111_v28 = vsub.f32 %v1084_v4, %v1106_v46 }
 0x25f   : > { %v1105_v42 = vpop.permute.xlu1 %1104 }
 0x260   : > { %v1113_v11 = vsub.f32 %v1086_v53, %v1105_v42  ;;  %v1107_v59 = vsel %vm1078_vm7, %v1103_v36, %v1105_v42 }
 0x261   : > { %v1112_v23 = vsub.f32 %v1085_v38, %v1107_v59 }
 0x263   : > { %v1128_v18 = vpop.permute.xlu1 %1127 }
 0x267   : > { %v1130_v9 = vpop.permute.xlu1 %1129 }
 0x268   : > { %v1133_v1 = vsel %vm1078_vm7, %v1128_v18, %v1130_v9 }
 0x269   : > { %v1138_v47 = vsub.f32 %v1111_v28, %v1133_v1 }
 0x26c   : > { %v1172_v52 = vpop.permute.xlu0 %1171 }
 0x270   : > { %v1132_v21 = vpop.permute.xlu0 %1131 }
 0x271   : > { %v1140_v60 = vsub.f32 %v1113_v11, %v1132_v21  ;;  %v1134_v7 = vsel %vm1078_vm7, %v1130_v9, %v1132_v21 }
 0x272   : > { %v1139_v40 = vsub.f32 %v1112_v23, %v1134_v7 }
 0x274   : > { %v1155_v29 = vpop.permute.xlu0 %1154 }
 0x278   : > { %v1179_v44 = vpop.permute.xlu1 %1178  ;;  %v1159_v37 = vpop.permute.xlu0 %1158 }
 0x279   : > { %v1167_v22 = vsub.f32 %v1140_v60, %v1159_v37 }
 0x27b   : > { %v1176_v14 = vmul.f32 %v1172_v52, %v1167_v22 }
 0x27c   : > { %v1157_v48 = vpop.permute.xlu1 %1156 }
 0x27d   : > { %v1183_v6 = vadd.f32 %v1179_v44, %v1176_v14  ;;  %v1160_v55 = vsel %vm1078_vm7, %v1155_v29, %v1157_v48  ;;  %v1161_v2 = vsel %vm1078_vm7, %v1157_v48, %v1159_v37 }
 0x27e   : > { %v1165_v62 = vsub.f32 %v1138_v47, %v1160_v55  ;;  %v1166_v10 = vsub.f32 %v1139_v40, %v1161_v2 }
 0x27f   : > { %v1186_v43 = vmax.f32 %v1183_v6, 0.0 }
 0x280   : > { %v1174_v36 = vmul.f32 %v1172_v52, %v1165_v62  ;;  %v1175_v42 = vmul.f32 %v1172_v52, %v1166_v10 }
 0x281   : > { %1193 = vst.msk [vmem:[%s170_s5 + $0x8] sm:$0xf] %vm1192_vm8, %v1186_v43 }
 0x282   : > { %v1181_v31 = vadd.f32 %v1179_v44, %v1174_v36  ;;  %v1182_v57 = vadd.f32 %v1179_v44, %v1175_v42 }
 0x284   : > { %v1184_v5 = vmax.f32 %v1181_v31, 0.0  ;;  %v1185_v34 = vmax.f32 %v1182_v57, 0.0 }
 0x286   : > { %v1189_v13 = vcombine.low %v1184_v5, %v1185_v34 }
 0x288   : > { %1191 = vst [vmem:[%s170_s5] sm:$0xff] %v1189_v13 }
 0x289 PF: > { %s13_s12 = sadd.s32 1, %s1358_s12  }
 0x28a   : > { %p10_p4 = scmp.ge.s32.totalorder %s13_s12, 4  }
 0x28c   :  { %12 = sbr.rel (!%p10_p4) target bundleno = 1 (0x1), region = 65 }

// kernel: basic_block_forward.3
= control target key start
LH: loop header
LB: loop body
LE: loop exit
PB: predicated region body
PF: predicated region fallthrough
CT: control target
= control target key end

     0   :  { %s1499_s15 = smov 0   ;;  %s1997_s0 = inlined_call_operand.vmem [shape: f32[2,4,342], index: 0, kind: input, shape index: {}]   ;;  %s1998_s1 = inlined_call_operand.vmem [shape: f32[4,36], index: 1, kind: input, shape index: {}]   ;;  %s1999_s2 = inlined_call_operand.vmem [shape: f32[4,2], index: 2, kind: input, shape index: {}]   ;;  %s2000_s3 = inlined_call_operand.vmem [shape: f32[2,4,288], index: 3, kind: input, shape index: {}]   ;;  %s2001_s4 = inlined_call_operand.vmem [shape: f32[2,4,288], index: 4, kind: output, shape index: {}]  }
   0x1 LB: > { %s1316_s16 = sadd.s32 4294967295, %s1428_s15   ;;  %p1320_p0 = scmp.ge.s32.totalorder %s1428_s15, 1  ;;  %s1428_s15 = sphi %s1499_s15, %s14_s15  }
   0x2   : > { %p172_p1 = scmp.lt.s32.totalorder %s1428_s15, 3 }
   0x4   : > { %p173_p2 = pnand %p1320_p0, %p172_p1 }
   0x5   : > { %v1510_v0 = vld [vmem:[%s1998_s1] sm:$0xf] (!%p173_p2)  ;;  %v1430_v1 = vmov (!%p173_p2), 2   ;;  %v1431_v2 = vmov (!%p173_p2), 0   ;;  %v1432_v3 = vmov (!%p173_p2), 3   ;;  %v1433_v4 = vmov (!%p173_p2), 1  }
   0x6   : > { %176 = sbr.rel (%p173_p2) target bundleno = 643 (0x283), region = 36  ;;  %1384 = vset.pattern.permute.xlu1 (!%p173_p2), %v1430_v1  ;;  %1382 = vset.pattern.permute.xlu0 (!%p173_p2), %v1431_v2  ;;  %v1434_v5 = vmov (!%p173_p2), 4   ;;  %v1435_v6 = vmov (!%p173_p2), 5   ;;  %v1436_v7 = vmov (!%p173_p2), 6   ;;  %v1437_v8 = vmov (!%p173_p2), 7   ;;  %p203_p3 = scmp.lt.s32.totalorder (!%p173_p2), %s1316_s16, 1 }
   0x7   : > { %300 = vperm.xlu1 (!%p173_p2), %1384, %v1510_v0   ;;  %238 = vperm.xlu0 (!%p173_p2), %1382, %v1510_v0   ;;  %v1438_v9 = vmov (!%p173_p2), 8   ;;  %v1439_v10 = vmov (!%p173_p2), 9   ;;  %v1440_v11 = vmov (!%p173_p2), 10   ;;  %v1441_v12 = vmov (!%p173_p2), 11   ;;  %s1452_s23 = smov (!%p173_p2), 127   ;;  %s1453_s24 = smov (!%p173_p2), 126  }
   0x8   : > { %v1442_v13 = vmov (!%p173_p2), 12   ;;  %v1443_v14 = vmov (!%p173_p2), 13   ;;  %v1444_v15 = vmov (!%p173_p2), 14   ;;  %v1445_v16 = vmov (!%p173_p2), 15   ;;  %s1454_s25 = smov (!%p173_p2), 110   ;;  %s1455_s26 = smov (!%p173_p2), 109  }
   0x9   : > { %v1446_v17 = vmov (!%p173_p2), 16   ;;  %v1447_v18 = vmov (!%p173_p2), 17   ;;  %v1448_v19 = vmov (!%p173_p2), 18   ;;  %v1449_v20 = vmov (!%p173_p2), 19   ;;  %s1470_s27 = smov (!%p173_p2), 108   ;;  %s1471_s28 = smov (!%p173_p2), 92  }
   0xa   : > { %v1450_v21 = vmov (!%p173_p2), 21   ;;  %v221_v22 = vlaneseq (!%p173_p2)  ;;  %v1451_v40 = vmov (!%p173_p2), 20   ;;  %vm362_vm0 = vcmask (!%p173_p2), 1039360   ;;  %s1472_s29 = smov (!%p173_p2), 91   ;;  %s1473_s30 = smov (!%p173_p2), 90  }
   0xb   : > { %1385 = vset.pattern.permute.xlu1 (!%p173_p2), %v1432_v3  ;;  %1383 = vset.pattern.permute.xlu0 (!%p173_p2), %v1433_v4  ;;  %vm471_vm1 = vcmask (!%p173_p2), 1031168   ;;  %vm580_vm2 = vcmask (!%p173_p2), 900096   ;;  %vm689_vm3 = vcmask (!%p173_p2), 891904   ;;  %vm798_vm4 = vcmask (!%p173_p2), 883712  }
   0xc   : > { %331 = vperm.xlu1 (!%p173_p2), %1385, %v1510_v0   ;;  %269 = vperm.xlu0 (!%p173_p2), %1383, %v1510_v0   ;;  %v222_v24 = vshrl.u32 (!%p173_p2), %v221_v22, 7  ;;  %vm907_vm5 = vcmask (!%p173_p2), 752640   ;;  %vm1016_vm6 = vcmask (!%p173_p2), 744448   ;;  %vm1125_vm7 = vcmask (!%p173_p2), 736256  }
   0xd   : > { %s2003_s16 = smov (!%p203_p3, %s1316_s16), 1  ;;  %vm1247_vm8 = vcmask 257024  }
   0xe   : > { %s1540_s19 = smul.u32 12, %s2003_s16  ;;  %v223_v27 = vsub.s32 0, %v222_v24  ;;  %v227_v28 = vsub.s32 1, %v222_v24  ;;  %v231_v29 = vsub.s32 2, %v222_v24 }
  0x10   : > { %1386 = vset.pattern.permute.xlu1 %v1434_v5  ;;  %s1546_s22 = scalar_lea.vmem %s1997_s0, %s1540_s19  ;;  %1402 = vset.pattern.permute.xlu0 %v1451_v40  ;;  %s212_s9 = scalar_lea.vmem %s2000_s3, %s1540_s19 }
  0x11   : > { %344 = vperm.xlu1 %1386, %v1510_v0   ;;  %v218_v26 = vld [vmem:[%s1546_s22] ss:$4 sm:$0x7]  ;;  %v1324_v34 = vld [vmem:[%s1546_s22 + $0x1] ss:$4 sm:$0x7]  ;;  %s217_s12 = scalar_lea.vmem %s2001_s4, %s1540_s19 }
  0x12   : > { %v1551_v30 = vrot.slane %v218_v26, %v223_v27  ;;  %v1553_v31 = vrot.slane %v218_v26, %v227_v28  ;;  %v1555_v33 = vrot.slane %v218_v26, %v231_v29  ;;  %v1561_v41 = vrot.slane %v1324_v34, %v223_v27  ;;  %v1325_v44 = vld [vmem:[%s1546_s22 + $0x2] ss:$4 sm:$0x7]  ;;  %v1326_v54 = vld [vmem:[%s1546_s22 + $0x3] ss:$4 sm:$0x7] }
  0x13   : > { %v1563_v42 = vrot.slane %v1324_v34, %v227_v28  ;;  %v1570_v49 = vrot.slane %v1325_v44, %v227_v28  ;;  %v1572_v50 = vrot.slane %v1324_v34, %v231_v29  ;;  %v1576_v53 = vrot.slane %v1325_v44, %v223_v27 }
  0x14   : > { %v1583_v59 = vrot.slane %v1326_v54, %v227_v28  ;;  %v1587_v63 = vrot.slane %v1325_v44, %v231_v29  ;;  %v1590_v5 = vrot.slane %v1326_v54, %v223_v27 }
  0x15   : > { %1387 = vset.pattern.permute.xlu1 %v1435_v6 }
  0x16   : > { %372 = vperm.xlu1 %1387, %v1510_v0  }
  0x1a   : > { %1388 = vset.pattern.permute.xlu1 %v1436_v7 }
  0x1b   : > { %399 = vperm.xlu1 %1388, %v1510_v0  }
  0x1f   : > { %1389 = vset.pattern.permute.xlu1 %v1437_v8 }
  0x20   : > { %426 = vperm.xlu1 %1389, %v1510_v0  }
  0x24   : > { %1390 = vset.pattern.permute.xlu1 %v1438_v9 }
  0x25   : > { %453 = vperm.xlu1 %1390, %v1510_v0  }
  0x29   : > { %1391 = vset.pattern.permute.xlu1 %v1439_v10 }
  0x2a   : > { %481 = vperm.xlu1 %1391, %v1510_v0  }
  0x2e   : > { %1392 = vset.pattern.permute.xlu1 %v1440_v11 }
  0x2f   : > { %508 = vperm.xlu1 %1392, %v1510_v0  }
  0x33   : > { %1393 = vset.pattern.permute.xlu1 %v1441_v12  ;;  %v1597_v12 = vrot.slane %v1326_v54, %v231_v29 }
  0x34   : > { %535 = vperm.xlu1 %1393, %v1510_v0  }
  0x38   : > { %1394 = vset.pattern.permute.xlu1 %v1442_v13 }
  0x39   : > { %562 = vperm.xlu1 %1394, %v1510_v0  }
  0x3d   : > { %1395 = vset.pattern.permute.xlu1 %v1443_v14 }
  0x3e   : > { %590 = vperm.xlu1 %1395, %v1510_v0  }
  0x42   : > { %1396 = vset.pattern.permute.xlu1 %v1444_v15 }
  0x43   : > { %617 = vperm.xlu1 %1396, %v1510_v0  }
  0x47   : > { %1397 = vset.pattern.permute.xlu1 %v1445_v16 }
  0x48   : > { %644 = vperm.xlu1 %1397, %v1510_v0  }
  0x4c   : > { %1398 = vset.pattern.permute.xlu1 %v1446_v17 }
  0x4d   : > { %671 = vperm.xlu1 %1398, %v1510_v0  }
  0x51   : > { %1399 = vset.pattern.permute.xlu1 %v1447_v18 }
  0x52   : > { %699 = vperm.xlu1 %1399, %v1510_v0  }
  0x56   : > { %1400 = vset.pattern.permute.xlu1 %v1448_v19 }
  0x57   : > { %726 = vperm.xlu1 %1400, %v1510_v0  }
  0x5b   : > { %1401 = vset.pattern.permute.xlu1 %v1449_v20 }
  0x5c   : > { %753 = vperm.xlu1 %1401, %v1510_v0  }
  0x60   : > { %1403 = vset.pattern.permute.xlu1 %v1450_v21 }
  0x86   : > { %v1538_v23 = vpop.permute.xlu1 %300 }
  0x8b   : > { %v1548_v25 = vpop.permute.xlu1 %331 }
  0x90   : > { %v345_v32 = vpop.permute.xlu1 %344 }
  0x91   : > { %v348_v35 = vsub.f32 %v1553_v31, %v345_v32  ;;  %v347_v36 = vsub.f32 %v1551_v30, %v345_v32  ;;  %v349_v39 = vsub.f32 %v1555_v33, %v345_v32 }
  0x93   : > { %v351_v37 = vand.u32 2147483647, %v348_v35  ;;  %v350_v38 = vand.u32 2147483647, %v347_v36  ;;  %v352_v47 = vand.u32 2147483647, %v349_v39 }
  0x95   : > { %358 = vrot.lane.b32.xlu1 %v351_v37, %s1452_s23  ;;  %356 = vrot.lane.b32.xlu0 %v350_v38, %s1452_s23  ;;  %v373_v43 = vpop.permute.xlu1 %372 }
  0x96   : > { %v376_v45 = vsub.f32 %v1563_v42, %v373_v43  ;;  %v375_v46 = vsub.f32 %v1561_v41, %v373_v43  ;;  %v377_v55 = vsub.f32 %v1572_v50, %v373_v43 }
  0x98   : > { %v379_v48 = vand.u32 2147483647, %v376_v45  ;;  %v378_v51 = vand.u32 2147483647, %v375_v46  ;;  %v380_v60 = vand.u32 2147483647, %v377_v55 }
  0x99   : > { %360 = vrot.lane.b32.xlu0 %v352_v47, %s1452_s23 }
  0x9a   : > { %386 = vrot.lane.b32.xlu1 %v379_v48, %s1452_s23  ;;  %v400_v52 = vpop.permute.xlu1 %399 }
  0x9b   : > { %v403_v56 = vsub.f32 %v1570_v49, %v400_v52  ;;  %v402_v58 = vsub.f32 %v1576_v53, %v400_v52  ;;  %v404_v6 = vsub.f32 %v1587_v63, %v400_v52 }
  0x9d   : > { %384 = vrot.lane.b32.xlu0 %v378_v51, %s1452_s23  ;;  %v406_v57 = vand.u32 2147483647, %v403_v56  ;;  %v405_v1 = vand.u32 2147483647, %v402_v58  ;;  %v407_v10 = vand.u32 2147483647, %v404_v6 }
  0x9f   : > { %413 = vrot.lane.b32.xlu1 %v406_v57, %s1452_s23  ;;  %v427_v61 = vpop.permute.xlu1 %426 }
  0xa0   : > { %v430_v62 = vsub.f32 %v1583_v59, %v427_v61  ;;  %v429_v8 = vsub.f32 %v1590_v5, %v427_v61  ;;  %v431_v16 = vsub.f32 %v1597_v12, %v427_v61 }
  0xa1   : > { %388 = vrot.lane.b32.xlu0 %v380_v60, %s1452_s23 }
  0xa2   : > { %v433_v3 = vand.u32 2147483647, %v430_v62  ;;  %v432_v13 = vand.u32 2147483647, %v429_v8  ;;  %v434_v20 = vand.u32 2147483647, %v431_v16 }
  0xa4   : > { %440 = vrot.lane.b32.xlu1 %v433_v3, %s1452_s23  ;;  %v454_v7 = vpop.permute.xlu1 %453 }
  0xa5   : > { %411 = vrot.lane.b32.xlu0 %v405_v1, %s1452_s23  ;;  %v457_v9 = vsub.f32 %v1553_v31, %v454_v7  ;;  %v456_v18 = vsub.f32 %v1551_v30, %v454_v7  ;;  %v458_v26 = vsub.f32 %v1555_v33, %v454_v7 }
  0xa7   : > { %v460_v11 = vand.u32 2147483647, %v457_v9  ;;  %v459_v22 = vand.u32 2147483647, %v456_v18  ;;  %v461_v34 = vand.u32 2147483647, %v458_v26 }
  0xa9   : > { %415 = vrot.lane.b32.xlu0 %v407_v10, %s1452_s23  ;;  %v482_v14 = vpop.permute.xlu1 %481  ;;  %467 = vrot.lane.b32.xlu1 %v460_v11, %s1453_s24 }
  0xaa   : > { %v485_v15 = vsub.f32 %v1563_v42, %v482_v14  ;;  %v484_v29 = vsub.f32 %v1561_v41, %v482_v14  ;;  %v486_v38 = vsub.f32 %v1572_v50, %v482_v14 }
  0xac   : > { %v488_v17 = vand.u32 2147483647, %v485_v15  ;;  %v487_v36 = vand.u32 2147483647, %v484_v29  ;;  %v489_v45 = vand.u32 2147483647, %v486_v38 }
  0xad   : > { %438 = vrot.lane.b32.xlu0 %v432_v13, %s1452_s23 }
  0xae   : > { %v509_v19 = vpop.permute.xlu1 %508  ;;  %495 = vrot.lane.b32.xlu1 %v488_v17, %s1453_s24 }
  0xaf   : > { %v512_v21 = vsub.f32 %v1570_v49, %v509_v19  ;;  %v511_v43 = vsub.f32 %v1576_v53, %v509_v19  ;;  %v513_v51 = vsub.f32 %v1587_v63, %v509_v19 }
  0xb1   : > { %442 = vrot.lane.b32.xlu0 %v434_v20, %s1452_s23  ;;  %v515_v24 = vand.u32 2147483647, %v512_v21  ;;  %v514_v47 = vand.u32 2147483647, %v511_v43  ;;  %v516_v56 = vand.u32 2147483647, %v513_v51 }
  0xb3   : > { %v536_v27 = vpop.permute.xlu1 %535  ;;  %522 = vrot.lane.b32.xlu1 %v515_v24, %s1453_s24 }
  0xb4   : > { %v539_v28 = vsub.f32 %v1583_v59, %v536_v27  ;;  %v538_v55 = vsub.f32 %v1590_v5, %v536_v27  ;;  %v540_v62 = vsub.f32 %v1597_v12, %v536_v27 }
  0xb5   : > { %465 = vrot.lane.b32.xlu0 %v459_v22, %s1453_s24 }
  0xb6   : > { %v542_v32 = vand.u32 2147483647, %v539_v28  ;;  %v541_v60 = vand.u32 2147483647, %v538_v55  ;;  %v543_v7 = vand.u32 2147483647, %v540_v62 }
  0xb7   : > { %v1460_v55 = vmov 28  }
  0xb8   : > { %v563_v35 = vpop.permute.xlu1 %562  ;;  %549 = vrot.lane.b32.xlu1 %v542_v32, %s1453_s24 }
  0xb9   : > { %469 = vrot.lane.b32.xlu0 %v461_v34, %s1453_s24  ;;  %v566_v37 = vsub.f32 %v1553_v31, %v563_v35  ;;  %v565_v6 = vsub.f32 %v1551_v30, %v563_v35  ;;  %v567_v13 = vsub.f32 %v1555_v33, %v563_v35 }
  0xbb   : > { %v569_v39 = vand.u32 2147483647, %v566_v37  ;;  %v568_v10 = vand.u32 2147483647, %v565_v6  ;;  %v570_v17 = vand.u32 2147483647, %v567_v13 }
  0xbc   : > { %v1462_v6 = vmov 31  }
  0xbd   : > { %493 = vrot.lane.b32.xlu0 %v487_v36, %s1453_s24  ;;  %v591_v40 = vpop.permute.xlu1 %590  ;;  %576 = vrot.lane.b32.xlu1 %v569_v39, %s1454_s25  ;;  %v1456_v36 = vmov 22   ;;  %v1457_v39 = vmov 24  }
  0xbe   : > { %v594_v44 = vsub.f32 %v1563_v42, %v591_v40  ;;  %v593_v15 = vsub.f32 %v1561_v41, %v591_v40  ;;  %v595_v22 = vsub.f32 %v1572_v50, %v591_v40 }
  0xc0   : > { %v597_v46 = vand.u32 2147483647, %v594_v44  ;;  %v596_v20 = vand.u32 2147483647, %v593_v15  ;;  %v598_v28 = vand.u32 2147483647, %v595_v22 }
  0xc1   : > { %497 = vrot.lane.b32.xlu0 %v489_v45, %s1453_s24  ;;  %v1458_v45 = vmov 25  }
  0xc2   : > { %v618_v48 = vpop.permute.xlu1 %617  ;;  %604 = vrot.lane.b32.xlu1 %v597_v46, %s1454_s25 }
  0xc3   : > { %v621_v52 = vsub.f32 %v1570_v49, %v618_v48  ;;  %v620_v26 = vsub.f32 %v1576_v53, %v618_v48  ;;  %v622_v32 = vsub.f32 %v1587_v63, %v618_v48  ;;  %v1459_v48 = vmov 27  }
  0xc5   : > { %520 = vrot.lane.b32.xlu0 %v514_v47, %s1453_s24  ;;  %v624_v54 = vand.u32 2147483647, %v621_v52  ;;  %v623_v29 = vand.u32 2147483647, %v620_v26  ;;  %v625_v35 = vand.u32 2147483647, %v622_v32 }
  0xc7   : > { %v645_v57 = vpop.permute.xlu1 %644  ;;  %631 = vrot.lane.b32.xlu1 %v624_v54, %s1454_s25 }
  0xc8   : > { %v648_v58 = vsub.f32 %v1583_v59, %v645_v57  ;;  %v647_v34 = vsub.f32 %v1590_v5, %v645_v57  ;;  %v649_v38 = vsub.f32 %v1597_v12, %v645_v57 }
  0xc9   : > { %524 = vrot.lane.b32.xlu0 %v516_v56, %s1453_s24  ;;  %v1680_v56 = vpop.permute.xlu0 %238 }
  0xca   : > { %v651_v61 = vand.u32 2147483647, %v648_v58  ;;  %v650_v37 = vand.u32 2147483647, %v647_v34  ;;  %v652_v43 = vand.u32 2147483647, %v649_v38  ;;  %v304_v38 = vsub.f32 %v1570_v49, %v1538_v23 }
  0xcc   : > { %v672_v1 = vpop.permute.xlu1 %671  ;;  %658 = vrot.lane.b32.xlu1 %v651_v61, %s1454_s25 }
  0xcd   : > { %547 = vrot.lane.b32.xlu0 %v541_v60, %s1453_s24  ;;  %v675_v3 = vsub.f32 %v1553_v31, %v672_v1  ;;  %v674_v40 = vsub.f32 %v1551_v30, %v672_v1  ;;  %v676_v46 = vsub.f32 %v1555_v33, %v672_v1  ;;  %v1461_v60 = vmov 30   ;;  %v1688_v62 = vpop.permute.xlu0 %269 }
  0xcf   : > { %v678_v8 = vand.u32 2147483647, %v675_v3  ;;  %v677_v44 = vand.u32 2147483647, %v674_v40  ;;  %v679_v51 = vand.u32 2147483647, %v676_v46  ;;  %v334_v40 = vsub.f32 %v1590_v5, %v1548_v25 }
  0xd1   : > { %551 = vrot.lane.b32.xlu0 %v543_v7, %s1453_s24  ;;  %v1636_v9 = vpop.permute.xlu1 %699  ;;  %685 = vrot.lane.b32.xlu1 %v678_v8, %s1455_s26 }
  0xd2   : > { %v703_v11 = vsub.f32 %v1563_v42, %v1636_v9  ;;  %v702_v47 = vsub.f32 %v1561_v41, %v1636_v9  ;;  %v704_v54 = vsub.f32 %v1572_v50, %v1636_v9 }
  0xd4   : > { %v706_v14 = vand.u32 2147483647, %v703_v11  ;;  %v705_v52 = vand.u32 2147483647, %v702_v47  ;;  %v707_v58 = vand.u32 2147483647, %v704_v54 }
  0xd5   : > { %574 = vrot.lane.b32.xlu0 %v568_v10, %s1454_s25  ;;  %v241_v10 = vsub.f32 %v1551_v30, %v1680_v56  ;;  %v1463_v11 = vmov 33  }
  0xd6   : > { %v1644_v16 = vpop.permute.xlu1 %726  ;;  %713 = vrot.lane.b32.xlu1 %v706_v14, %s1455_s26  ;;  %v242_v14 = vsub.f32 %v1553_v31, %v1680_v56 }
  0xd7   : > { %v730_v18 = vsub.f32 %v1570_v49, %v1644_v16  ;;  %v729_v57 = vsub.f32 %v1576_v53, %v1644_v16  ;;  %v731_v1 = vsub.f32 %v1587_v63, %v1644_v16  ;;  %v244_v15 = vand.u32 2147483647, %v241_v10 }
  0xd8   : > { %v272_v16 = vsub.f32 %v1561_v41, %v1688_v62 }
  0xd9   : > { %578 = vrot.lane.b32.xlu0 %v570_v17, %s1454_s25  ;;  %v733_v19 = vand.u32 2147483647, %v730_v18  ;;  %v732_v61 = vand.u32 2147483647, %v729_v57  ;;  %v734_v8 = vand.u32 2147483647, %v731_v1 }
  0xda   : > { %v247_v22 = vsub.f32 0.0, %v244_v15  ;;  %v275_v26 = vand.u32 2147483647, %v272_v16  ;;  %v274_v16 = vsub.f32 %v1572_v50, %v1688_v62 }
  0xdb   : > { %v1650_v21 = vpop.permute.xlu1 %753  ;;  %740 = vrot.lane.b32.xlu1 %v733_v19, %s1455_s26  ;;  %v1464_v19 = vmov 34  }
  0xdc   : > { %v757_v24 = vsub.f32 %v1583_v59, %v1650_v21  ;;  %v756_v3 = vsub.f32 %v1590_v5, %v1650_v21  ;;  %v758_v18 = vsub.f32 %v1597_v12, %v1650_v21  ;;  %v1465_v21 = vmov 23  }
  0xdd   : > { %602 = vrot.lane.b32.xlu0 %v596_v20, %s1454_s25  ;;  %v245_v20 = vand.u32 2147483647, %v242_v14 }
  0xde   : > { %v760_v27 = vand.u32 2147483647, %v757_v24  ;;  %v759_v9 = vand.u32 2147483647, %v756_v3  ;;  %v273_v24 = vsub.f32 %v1563_v42, %v1688_v62 }
  0xdf   : > { %v248_v34 = vsub.f32 0.0, %v245_v20 }
  0xe0   : > { %767 = vrot.lane.b32.xlu1 %v760_v27, %s1455_s26 }
  0xe1   : > { %606 = vrot.lane.b32.xlu0 %v598_v28, %s1454_s25  ;;  %v761_v28 = vand.u32 2147483647, %v758_v18  ;;  %v1468_v18 = vmov 32  }
  0xe4   : > { %808 = vperm.xlu1 %1403, %v1510_v0  }
  0xe5   : > { %629 = vrot.lane.b32.xlu0 %v623_v29, %s1454_s25  ;;  %v303_v29 = vsub.f32 %v1576_v53, %v1538_v23 }
  0xe8   : > { %1404 = vset.pattern.permute.xlu1 %v1456_v36  ;;  %v278_v36 = vsub.f32 %v247_v22, %v275_v26 }
  0xe9   : > { %835 = vperm.xlu1 %1404, %v1510_v0   ;;  %633 = vrot.lane.b32.xlu0 %v625_v35, %s1454_s25  ;;  %v276_v35 = vand.u32 2147483647, %v273_v24 }
  0xed   : > { %1406 = vset.pattern.permute.xlu1 %v1457_v39  ;;  %656 = vrot.lane.b32.xlu0 %v650_v37, %s1454_s25  ;;  %v306_v39 = vand.u32 2147483647, %v303_v29 }
  0xee   : > { %889 = vperm.xlu1 %1406, %v1510_v0  }
  0xef   : > { %v309_v46 = vsub.f32 %v278_v36, %v306_v39  ;;  %v305_v39 = vsub.f32 %v1587_v63, %v1538_v23 }
  0xf1   : > { %660 = vrot.lane.b32.xlu0 %v652_v43, %s1454_s25 }
  0xf2   : > { %1407 = vset.pattern.permute.xlu1 %v1458_v45  ;;  %v279_v45 = vsub.f32 %v248_v34, %v276_v35 }
  0xf3   : > { %917 = vperm.xlu1 %1407, %v1510_v0  }
  0xf5   : > { %683 = vrot.lane.b32.xlu0 %v677_v44, %s1455_s26  ;;  %v1466_v44 = vmov 26  }
  0xf7   : > { %1409 = vset.pattern.permute.xlu1 %v1459_v48  ;;  %v335_v48 = vsub.f32 %v1583_v59, %v1548_v25 }
  0xf8   : > { %971 = vperm.xlu1 %1409, %v1510_v0  }
  0xf9   : > { %687 = vrot.lane.b32.xlu0 %v679_v51, %s1455_s26  ;;  %v337_v51 = vand.u32 2147483647, %v334_v40  ;;  %v338_v3 = vand.u32 2147483647, %v335_v48  ;;  %v308_v48 = vand.u32 2147483647, %v305_v39 }
  0xfb   : > { %v340_v57 = vsub.f32 %v309_v46, %v337_v51  ;;  %v336_v51 = vsub.f32 %v1597_v12, %v1548_v25 }
  0xfc   : > { %1410 = vset.pattern.permute.xlu1 %v1460_v55 }
  0xfd   : > { %998 = vperm.xlu1 %1410, %v1510_v0   ;;  %711 = vrot.lane.b32.xlu0 %v705_v52, %s1455_s26 }
 0x101   : > { %1412 = vset.pattern.permute.xlu1 %v1461_v60  ;;  %715 = vrot.lane.b32.xlu0 %v707_v58, %s1455_s26  ;;  %v1467_v60 = vmov 29  }
 0x102   : > { %1053 = vperm.xlu1 %1412, %v1510_v0  }
 0x105   : > { %738 = vrot.lane.b32.xlu0 %v732_v61, %s1455_s26  ;;  %v243_v61 = vsub.f32 %v1555_v33, %v1680_v56 }
 0x106   : > { %1413 = vset.pattern.permute.xlu1 %v1462_v6 }
 0x107   : > { %1080 = vperm.xlu1 %1413, %v1510_v0   ;;  %v357_v7 = vpop.permute.xlu0 %356  ;;  %v359_v32 = vpop.permute.xlu1 %358  ;;  %v246_v15 = vand.u32 2147483647, %v243_v61 }
 0x108   : > { %v363_v54 = vsel %vm362_vm0, %v357_v7, %v359_v32 }
 0x109   : > { %742 = vrot.lane.b32.xlu0 %v734_v8, %s1455_s26  ;;  %v368_v6 = vsub.f32 %v340_v57, %v363_v54  ;;  %v249_v62 = vsub.f32 0.0, %v246_v15 }
 0x10b   : > { %1415 = vset.pattern.permute.xlu1 %v1463_v11  ;;  %v1699_v13 = vpop.permute.xlu0 %360 }
 0x10c   : > { %1135 = vperm.xlu1 %1415, %v1510_v0   ;;  %v387_v43 = vpop.permute.xlu1 %386 }
 0x10d   : > { %765 = vrot.lane.b32.xlu0 %v759_v9, %s1455_s26  ;;  %v364_v9 = vsel %vm362_vm0, %v359_v32, %v1699_v13  ;;  %v277_v32 = vand.u32 2147483647, %v274_v16 }
 0x10f   : > { %v385_v17 = vpop.permute.xlu0 %384 }
 0x110   : > { %1416 = vset.pattern.permute.xlu1 %v1464_v19  ;;  %v390_v1 = vsel %vm362_vm0, %v385_v17, %v387_v43 }
 0x111   : > { %1162 = vperm.xlu1 %1416, %v1510_v0   ;;  %780 = vperm.xlu0 %1402, %v1510_v0   ;;  %v414_v52 = vpop.permute.xlu1 %413  ;;  %v395_v11 = vsub.f32 %v368_v6, %v390_v1 }
 0x113   : > { %v1713_v27 = vpop.permute.xlu0 %388 }
 0x114   : > { %v391_v56 = vsel %vm362_vm0, %v387_v43, %v1713_v27 }
 0x115   : > { %769 = vrot.lane.b32.xlu1 %v761_v28, %s1455_s26  ;;  %1405 = vset.pattern.permute.xlu0 %v1465_v21 }
 0x116   : > { %862 = vperm.xlu0 %1405, %v1510_v0   ;;  %1418 = vset.pattern.permute.xlu1 %v1431_v2  ;;  %v307_v2 = vand.u32 2147483647, %v304_v38  ;;  %v441_v8 = vpop.permute.xlu1 %440  ;;  %v1469_v38 = vmov 35  }
 0x117   : > { %v412_v37 = vpop.permute.xlu0 %411 }
 0x118   : > { %v310_v55 = vsub.f32 %v279_v45, %v307_v2  ;;  %v417_v7 = vsel %vm362_vm0, %v412_v37, %v414_v52 }
 0x119   : > { %v422_v20 = vsub.f32 %v395_v11, %v417_v7 }
 0x11a   : > { %1408 = vset.pattern.permute.xlu0 %v1466_v44  ;;  %v341_v10 = vsub.f32 %v310_v55, %v338_v3  ;;  %v280_v44 = vsub.f32 %v249_v62, %v277_v32 }
 0x11b   : > { %v1724_v47 = vpop.permute.xlu0 %415  ;;  %944 = vperm.xlu0 %1408, %v1510_v0   ;;  %v468_v22 = vpop.permute.xlu1 %467 }
 0x11c   : > { %v369_v19 = vsub.f32 %v341_v10, %v364_v9  ;;  %v418_v24 = vsel %vm362_vm0, %v414_v52, %v1724_v47  ;;  %v311_v54 = vsub.f32 %v280_v44, %v308_v48 }
 0x11e   : > { %v396_v26 = vsub.f32 %v369_v19, %v391_v56 }
 0x11f   : > { %v439_v58 = vpop.permute.xlu0 %438  ;;  %1411 = vset.pattern.permute.xlu0 %v1467_v60 }
 0x120   : > { %1026 = vperm.xlu0 %1411, %v1510_v0   ;;  %v444_v17 = vsel %vm362_vm0, %v439_v58, %v441_v8  ;;  %v423_v35 = vsub.f32 %v396_v26, %v418_v24  ;;  %v496_v37 = vpop.permute.xlu1 %495 }
 0x121   : > { %v449_v28 = vsub.f32 %v422_v20, %v444_v17 }
 0x123   : > { %v443_v14 = vpop.permute.xlu0 %442 }
 0x124   : > { %1414 = vset.pattern.permute.xlu0 %v1468_v18  ;;  %v445_v21 = vsel %vm362_vm0, %v441_v8, %v443_v14 }
 0x125   : > { %1107 = vperm.xlu0 %1414, %v1510_v0   ;;  %v450_v40 = vsub.f32 %v423_v35, %v445_v21  ;;  %v523_v2 = vpop.permute.xlu1 %522 }
 0x127   : > { %v466_v29 = vpop.permute.xlu0 %465 }
 0x128   : > { %v472_v34 = vsel %vm471_vm1, %v466_v29, %v468_v22 }
 0x129   : > { %v477_v36 = vsub.f32 %v449_v28, %v472_v34  ;;  %1417 = vset.pattern.permute.xlu0 %v1469_v38 }
 0x12a   : > { %1189 = vperm.xlu0 %1417, %v1510_v0   ;;  %v550_v57 = vpop.permute.xlu1 %549  ;;  %v339_v0 = vand.u32 2147483647, %v336_v51 }
 0x12b   : > { %v470_v43 = vpop.permute.xlu0 %469 }
 0x12c   : > { %v473_v45 = vsel %vm471_vm1, %v468_v22, %v470_v43  ;;  %v342_v60 = vsub.f32 %v311_v54, %v339_v0 }
 0x12d   : > { %v478_v46 = vsub.f32 %v450_v40, %v473_v45 }
 0x12e   : > { %1420 = vset.pattern.permute.xlu0 %v1433_v4  ;;  %v370_v6 = vsub.f32 %v342_v60, %v1699_v13 }
 0x12f   : > { %v494_v52 = vpop.permute.xlu0 %493  ;;  %v577_v3 = vpop.permute.xlu1 %576 }
 0x130   : > { %v499_v55 = vsel %vm471_vm1, %v494_v52, %v496_v37  ;;  %v397_v25 = vsub.f32 %v370_v6, %v1713_v27 }
 0x131   : > { %v504_v23 = vsub.f32 %v477_v36, %v499_v55 }
 0x132   : > { %v424_v11 = vsub.f32 %v397_v25, %v1724_v47 }
 0x133   : > { %v498_v58 = vpop.permute.xlu0 %497 }
 0x134   : > { %v500_v61 = vsel %vm471_vm1, %v496_v37, %v498_v58  ;;  %v605_v10 = vpop.permute.xlu1 %604  ;;  %v451_v16 = vsub.f32 %v424_v11, %v443_v14 }
 0x135   : > { %v505_v1 = vsub.f32 %v478_v46, %v500_v61 }
 0x136   : > { %v479_v18 = vsub.f32 %v451_v16, %v470_v43 }
 0x137   : > { %v521_v8 = vpop.permute.xlu0 %520 }
 0x138   : > { %v526_v9 = vsel %vm471_vm1, %v521_v8, %v523_v2  ;;  %v506_v22 = vsub.f32 %v479_v18, %v498_v58 }
 0x139   : > { %v531_v7 = vsub.f32 %v504_v23, %v526_v9  ;;  %v632_v20 = vpop.permute.xlu1 %631 }
 0x13b   : > { %v525_v15 = vpop.permute.xlu0 %524 }
 0x13c   : > { %v527_v56 = vsel %vm471_vm1, %v523_v2, %v525_v15  ;;  %v533_v26 = vsub.f32 %v506_v22, %v525_v15 }
 0x13d   : > { %v532_v17 = vsub.f32 %v505_v1, %v527_v56 }
 0x13e   : > { %v659_v47 = vpop.permute.xlu1 %658 }
 0x13f   : > { %v548_v19 = vpop.permute.xlu0 %547 }
 0x140   : > { %v553_v13 = vsel %vm471_vm1, %v548_v19, %v550_v57 }
 0x141   : > { %v558_v24 = vsub.f32 %v531_v7, %v553_v13 }
 0x143   : > { %v552_v27 = vpop.permute.xlu0 %551  ;;  %v686_v35 = vpop.permute.xlu1 %685 }
 0x144   : > { %v554_v28 = vsel %vm471_vm1, %v550_v57, %v552_v27  ;;  %v560_v29 = vsub.f32 %v533_v26, %v552_v27 }
 0x145   : > { %v559_v62 = vsub.f32 %v532_v17, %v554_v28 }
 0x147   : > { %v575_v32 = vpop.permute.xlu0 %574 }
 0x148   : > { %v581_v14 = vsel %vm580_vm2, %v575_v32, %v577_v3  ;;  %v714_v44 = vpop.permute.xlu1 %713 }
 0x149   : > { %v586_v21 = vsub.f32 %v558_v24, %v581_v14 }
 0x14b   : > { %v579_v34 = vpop.permute.xlu0 %578 }
 0x14c   : > { %v582_v36 = vsel %vm580_vm2, %v577_v3, %v579_v34  ;;  %v588_v37 = vsub.f32 %v560_v29, %v579_v34 }
 0x14d   : > { %v587_v38 = vsub.f32 %v559_v62, %v582_v36  ;;  %v741_v52 = vpop.permute.xlu1 %740 }
 0x14f   : > { %v603_v39 = vpop.permute.xlu0 %602 }
 0x150   : > { %v608_v40 = vsel %vm580_vm2, %v603_v39, %v605_v10 }
 0x151   : > { %v613_v43 = vsub.f32 %v586_v21, %v608_v40 }
 0x152   : > { %v768_v60 = vpop.permute.xlu1 %767 }
 0x153   : > { %v607_v45 = vpop.permute.xlu0 %606 }
 0x154   : > { %v609_v46 = vsel %vm580_vm2, %v605_v10, %v607_v45  ;;  %v615_v2 = vsub.f32 %v588_v37, %v607_v45 }
 0x155   : > { %v614_v48 = vsub.f32 %v587_v38, %v609_v46 }
 0x157   : > { %v630_v51 = vpop.permute.xlu0 %629 }
 0x158   : > { %v635_v54 = vsel %vm580_vm2, %v630_v51, %v632_v20 }
 0x159   : > { %v640_v55 = vsub.f32 %v613_v43, %v635_v54 }
 0x15b   : > { %v634_v23 = vpop.permute.xlu0 %633 }
 0x15c   : > { %v636_v57 = vsel %vm580_vm2, %v632_v20, %v634_v23  ;;  %v642_v0 = vsub.f32 %v615_v2, %v634_v23 }
 0x15d   : > { %v641_v58 = vsub.f32 %v614_v48, %v636_v57 }
 0x15f   : > { %v657_v61 = vpop.permute.xlu0 %656 }
 0x160   : > { %v662_v1 = vsel %vm580_vm2, %v657_v61, %v659_v47 }
 0x161   : > { %v667_v3 = vsub.f32 %v640_v55, %v662_v1 }
 0x163   : > { %v661_v6 = vpop.permute.xlu0 %660  ;;  %v809_v8 = vpop.permute.xlu1 %808 }
 0x164   : > { %v663_v25 = vsel %vm580_vm2, %v659_v47, %v661_v6  ;;  %v669_v9 = vsub.f32 %v642_v0, %v661_v6  ;;  %v812_v61 = vsub.f32 %v1563_v42, %v809_v8  ;;  %v813_v1 = vsub.f32 %v1572_v50, %v809_v8 }
 0x165   : > { %v668_v7 = vsub.f32 %v641_v58, %v663_v25 }
 0x167   : > { %v684_v10 = vpop.permute.xlu0 %683 }
 0x168   : > { %v690_v11 = vsel %vm689_vm3, %v684_v10, %v686_v35  ;;  %v1772_v15 = vpop.permute.xlu1 %835 }
 0x169   : > { %v695_v16 = vsub.f32 %v667_v3, %v690_v11 }
 0x16b   : > { %v688_v56 = vpop.permute.xlu0 %687 }
 0x16c   : > { %v691_v17 = vsel %vm689_vm3, %v686_v35, %v688_v56  ;;  %v697_v18 = vsub.f32 %v669_v9, %v688_v56  ;;  %v838_v9 = vsub.f32 %v1576_v53, %v1772_v15 }
 0x16d   : > { %v696_v19 = vsub.f32 %v668_v7, %v691_v17  ;;  %v1775_v20 = vpop.permute.xlu1 %889  ;;  %v839_v7 = vsub.f32 %v1570_v49, %v1772_v15  ;;  %v840_v17 = vsub.f32 %v1587_v63, %v1772_v15 }
 0x16e   : > { %v841_v56 = vand.u32 2147483647, %v838_v9 }
 0x16f   : > { %v712_v22 = vpop.permute.xlu0 %711 }
 0x170   : > { %v717_v13 = vsel %vm689_vm3, %v712_v22, %v714_v44 }
 0x171   : > { %v722_v24 = vsub.f32 %v695_v16, %v717_v13  ;;  %v842_v16 = vand.u32 2147483647, %v839_v7  ;;  %v843_v13 = vand.u32 2147483647, %v840_v17 }
 0x172   : > { %v1778_v26 = vpop.permute.xlu1 %917 }
 0x173   : > { %v716_v27 = vpop.permute.xlu0 %715 }
 0x174   : > { %v718_v28 = vsel %vm689_vm3, %v714_v44, %v716_v27  ;;  %v1781_v29 = vsub.f32 %v697_v18, %v716_v27  ;;  %v893_v27 = vsub.f32 %v1553_v31, %v1775_v20 }
 0x175   : > { %v723_v62 = vsub.f32 %v696_v19, %v718_v28 }
 0x177   : > { %v739_v47 = vpop.permute.xlu0 %738  ;;  %v1783_v32 = vpop.permute.xlu1 %971 }
 0x178   : > { %v744_v14 = vsel %vm689_vm3, %v739_v47, %v741_v52  ;;  %v920_v47 = vsub.f32 %v1561_v41, %v1778_v26 }
 0x179   : > { %v749_v21 = vsub.f32 %v722_v24, %v744_v14  ;;  %v892_v24 = vsub.f32 %v1551_v30, %v1775_v20  ;;  %v896_v14 = vand.u32 2147483647, %v893_v27 }
 0x17b   : > { %v1786_v34 = vpop.permute.xlu0 %742 }
 0x17c   : > { %v745_v35 = vsel %vm689_vm3, %v741_v52, %v1786_v34  ;;  %v751_v36 = vsub.f32 %v1781_v29, %v1786_v34  ;;  %v1792_v37 = vpop.permute.xlu1 %998  ;;  %v811_v52 = vsub.f32 %v1561_v41, %v809_v8  ;;  %v815_v8 = vand.u32 2147483647, %v812_v61 }
 0x17d   : > { %v750_v38 = vsub.f32 %v723_v62, %v745_v35  ;;  %v895_v62 = vand.u32 2147483647, %v892_v24  ;;  %v921_v35 = vsub.f32 %v1563_v42, %v1778_v26  ;;  %v976_v61 = vsub.f32 %v1597_v12, %v1783_v32 }
 0x17e   : > { %v814_v6 = vand.u32 2147483647, %v811_v52  ;;  %v1001_v7 = vsub.f32 %v1551_v30, %v1792_v37 }
 0x17f   : > { %v766_v39 = vpop.permute.xlu0 %765  ;;  %v979_v9 = vand.u32 2147483647, %v976_v61 }
 0x180   : > { %v771_v40 = vsel %vm689_vm3, %v766_v39, %v768_v60  ;;  %v923_v39 = vand.u32 2147483647, %v920_v47 }
 0x181   : > { %v1795_v43 = vsub.f32 %v749_v21, %v771_v40  ;;  %v1797_v44 = vpop.permute.xlu1 %1053  ;;  %v894_v21 = vsub.f32 %v1555_v33, %v1775_v20 }
 0x186   : > { %v1799_v45 = vpop.permute.xlu1 %1080 }
 0x187   : > { %v1084_v47 = vsub.f32 %v1583_v59, %v1799_v45 }
 0x18b   : > { %v1801_v46 = vpop.permute.xlu1 %1135 }
 0x190   : > { %v1803_v2 = vpop.permute.xlu1 %1162  ;;  %v781_v48 = vpop.permute.xlu0 %780 }
 0x191   : > { %v783_v51 = vsub.f32 %v1551_v30, %v781_v48  ;;  %v784_v54 = vsub.f32 %v1553_v31, %v781_v48  ;;  %v785_v55 = vsub.f32 %v1555_v33, %v781_v48  ;;  %v897_v48 = vand.u32 2147483647, %v894_v21 }
 0x193   : > { %v787_v57 = vand.u32 2147483647, %v784_v54  ;;  %v786_v0 = vand.u32 2147483647, %v783_v51  ;;  %v788_v25 = vand.u32 2147483647, %v785_v55 }
 0x194   : > { %v1809_v23 = vpop.permute.xlu1 %769  ;;  %v924_v51 = vand.u32 2147483647, %v921_v35 }
 0x195   : > { %v772_v58 = vsel %vm689_vm3, %v768_v60, %v1809_v23  ;;  %794 = vrot.lane.b32.xlu0 %v787_v57, %s1470_s27  ;;  %792 = vrot.lane.b32.xlu1 %v786_v0, %s1470_s27  ;;  %v816_v60 = vand.u32 2147483647, %v813_v1  ;;  %v863_v10 = vpop.permute.xlu0 %862 }
 0x196   : > { %v1815_v3 = vsub.f32 %v750_v38, %v772_v58  ;;  %v865_v11 = vsub.f32 %v1590_v5, %v863_v10  ;;  %v866_v18 = vsub.f32 %v1583_v59, %v863_v10  ;;  %v867_v19 = vsub.f32 %v1597_v12, %v863_v10 }
 0x197   : > { %v922_v38 = vsub.f32 %v1572_v50, %v1778_v26  ;;  %v974_v26 = vsub.f32 %v1590_v5, %v1783_v32  ;;  %v975_v58 = vsub.f32 %v1583_v59, %v1783_v32  ;;  %v1004_v32 = vand.u32 2147483647, %v1001_v7 }
 0x198   : > { %v868_v22 = vand.u32 2147483647, %v865_v11  ;;  %v869_v28 = vand.u32 2147483647, %v866_v18  ;;  %v870_v15 = vand.u32 2147483647, %v867_v19 }
 0x199   : > { %820 = vrot.lane.b32.xlu0 %v814_v6, %s1470_s27  ;;  %796 = vrot.lane.b32.xlu1 %v788_v25, %s1470_s27  ;;  %v925_v54 = vand.u32 2147483647, %v922_v38  ;;  %v977_v1 = vand.u32 2147483647, %v974_v26  ;;  %v978_v25 = vand.u32 2147483647, %v975_v58  ;;  %v1140_v26 = vsub.f32 %v1572_v50, %v1801_v46 }
 0x19a   : > { %v945_v40 = vpop.permute.xlu0 %944 }
 0x19b   : > { %v947_v20 = vsub.f32 %v1576_v53, %v945_v40  ;;  %v948_v52 = vsub.f32 %v1570_v49, %v945_v40  ;;  %v949_v0 = vsub.f32 %v1587_v63, %v945_v40 }
 0x19d   : > { %824 = vrot.lane.b32.xlu0 %v816_v60, %s1470_s27  ;;  %822 = vrot.lane.b32.xlu1 %v815_v8, %s1470_s27  ;;  %v950_v55 = vand.u32 2147483647, %v947_v20  ;;  %v951_v57 = vand.u32 2147483647, %v948_v52  ;;  %v952_v6 = vand.u32 2147483647, %v949_v0  ;;  %v1002_v60 = vsub.f32 %v1553_v31, %v1792_v37 }
 0x19f   : > { %v1027_v8 = vpop.permute.xlu0 %1026  ;;  %v1005_v10 = vand.u32 2147483647, %v1002_v60 }
 0x1a0   : > { %v1029_v11 = vsub.f32 %v1561_v41, %v1027_v8  ;;  %v1031_v17 = vsub.f32 %v1572_v50, %v1027_v8 }
 0x1a1   : > { %849 = vrot.lane.b32.xlu0 %v842_v16, %s1470_s27  ;;  %847 = vrot.lane.b32.xlu1 %v841_v56, %s1470_s27  ;;  %v1003_v16 = vsub.f32 %v1555_v33, %v1792_v37  ;;  %v1030_v56 = vsub.f32 %v1563_v42, %v1027_v8 }
 0x1a2   : > { %v1032_v18 = vand.u32 2147483647, %v1029_v11  ;;  %v1034_v27 = vand.u32 2147483647, %v1031_v17 }
 0x1a3   : > { %v1006_v19 = vand.u32 2147483647, %v1003_v16  ;;  %v1033_v24 = vand.u32 2147483647, %v1030_v56 }
 0x1a4   : > { %v1108_v35 = vpop.permute.xlu0 %1107 }
 0x1a5   : > { %851 = vrot.lane.b32.xlu1 %v843_v13, %s1470_s27  ;;  %874 = vrot.lane.b32.xlu0 %v868_v22, %s1470_s27  ;;  %v1056_v22 = vsub.f32 %v1576_v53, %v1797_v44  ;;  %v1057_v13 = vsub.f32 %v1570_v49, %v1797_v44  ;;  %v1112_v52 = vsub.f32 %v1555_v33, %v1108_v35 }
 0x1a6   : > { %v1166_v33 = vsub.f32 %v1570_v49, %v1803_v2 }
 0x1a7   : > { %v1059_v37 = vand.u32 2147483647, %v1056_v22 }
 0x1a8   : > { %v1169_v0 = vand.u32 2147483647, %v1166_v33  ;;  %v778_v33 = vsub.f32 %v751_v36, %v1809_v23 }
 0x1a9   : > { %876 = vrot.lane.b32.xlu1 %v869_v28, %s1470_s27  ;;  %878 = vrot.lane.b32.xlu0 %v870_v15, %s1470_s27  ;;  %v1060_v28 = vand.u32 2147483647, %v1057_v13  ;;  %v1083_v15 = vsub.f32 %v1590_v5, %v1799_v45 }
 0x1ab   : > { %v1086_v21 = vand.u32 2147483647, %v1083_v15 }
 0x1ad   : > { %901 = vrot.lane.b32.xlu1 %v895_v62, %s1471_s28  ;;  %903 = vrot.lane.b32.xlu0 %v896_v14, %s1471_s28  ;;  %v1058_v62 = vsub.f32 %v1587_v63, %v1797_v44  ;;  %v1085_v14 = vsub.f32 %v1597_v12, %v1799_v45  ;;  %v1110_v44 = vsub.f32 %v1551_v30, %v1108_v35 }
 0x1ae   : > { %v1138_v45 = vsub.f32 %v1561_v41, %v1801_v46 }
 0x1af   : > { %v1061_v38 = vand.u32 2147483647, %v1058_v62  ;;  %v1088_v40 = vand.u32 2147483647, %v1085_v14 }
 0x1b0   : > { %v1141_v30 = vand.u32 2147483647, %v1138_v45 }
 0x1b1   : > { %905 = vrot.lane.b32.xlu1 %v897_v48, %s1471_s28  ;;  %929 = vrot.lane.b32.xlu0 %v923_v39, %s1471_s28  ;;  %v1087_v39 = vand.u32 2147483647, %v1084_v47  ;;  %v1111_v48 = vsub.f32 %v1553_v31, %v1108_v35  ;;  %v1115_v31 = vand.u32 2147483647, %v1112_v52 }
 0x1b3   : > { %v1114_v20 = vand.u32 2147483647, %v1111_v48 }
 0x1b5   : > { %931 = vrot.lane.b32.xlu1 %v924_v51, %s1471_s28  ;;  %933 = vrot.lane.b32.xlu0 %v925_v54, %s1471_s28  ;;  %v1113_v51 = vand.u32 2147483647, %v1110_v44  ;;  %v1139_v54 = vsub.f32 %v1563_v42, %v1801_v46  ;;  %v1167_v42 = vsub.f32 %v1587_v63, %v1803_v2  ;;  %v1215_v46 = vld [vmem:[%s1999_s2] sm:$0xf] }
 0x1b7   : > { %v1142_v41 = vand.u32 2147483647, %v1139_v54  ;;  %v1170_v58 = vand.u32 2147483647, %v1167_v42 }
 0x1b9   : > { %958 = vrot.lane.b32.xlu0 %v951_v57, %s1471_s28  ;;  %956 = vrot.lane.b32.xlu1 %v950_v55, %s1471_s28  ;;  %v1143_v55 = vand.u32 2147483647, %v1140_v26  ;;  %v1165_v57 = vsub.f32 %v1576_v53, %v1803_v2  ;;  %v1190_v53 = vpop.permute.xlu0 %1189 }
 0x1ba   : > { %v1192_v49 = vsub.f32 %v1590_v5, %v1190_v53  ;;  %v1193_v61 = vsub.f32 %v1583_v59, %v1190_v53  ;;  %v1194_v63 = vsub.f32 %v1597_v12, %v1190_v53 }
 0x1bb   : > { %v1168_v50 = vand.u32 2147483647, %v1165_v57 }
 0x1bc   : > { %v1195_v2 = vand.u32 2147483647, %v1192_v49 }
 0x1bd   : > { %983 = vrot.lane.b32.xlu0 %v977_v1, %s1471_s28  ;;  %960 = vrot.lane.b32.xlu1 %v952_v6, %s1471_s28  ;;  %v1196_v1 = vand.u32 2147483647, %v1193_v61  ;;  %v1197_v6 = vand.u32 2147483647, %v1194_v63 }
 0x1c1   : > { %987 = vrot.lane.b32.xlu0 %v979_v9, %s1471_s28  ;;  %985 = vrot.lane.b32.xlu1 %v978_v25, %s1471_s28 }
 0x1c5   : > { %1012 = vrot.lane.b32.xlu0 %v1005_v10, %s1472_s29  ;;  %1010 = vrot.lane.b32.xlu1 %v1004_v32, %s1472_s29 }
 0x1c9   : > { %1014 = vrot.lane.b32.xlu1 %v1006_v19, %s1472_s29  ;;  %1038 = vrot.lane.b32.xlu0 %v1032_v18, %s1472_s29 }
 0x1cd   : > { %1040 = vrot.lane.b32.xlu1 %v1033_v24, %s1472_s29  ;;  %1042 = vrot.lane.b32.xlu0 %v1034_v27, %s1472_s29 }
 0x1d1   : > { %1065 = vrot.lane.b32.xlu1 %v1059_v37, %s1472_s29  ;;  %1067 = vrot.lane.b32.xlu0 %v1060_v28, %s1472_s29 }
 0x1d5   : > { %1069 = vrot.lane.b32.xlu1 %v1061_v38, %s1472_s29  ;;  %1092 = vrot.lane.b32.xlu0 %v1086_v21, %s1472_s29 }
 0x1d9   : > { %1094 = vrot.lane.b32.xlu1 %v1087_v39, %s1472_s29  ;;  %1096 = vrot.lane.b32.xlu0 %v1088_v40, %s1472_s29 }
 0x1dd   : > { %1121 = vrot.lane.b32.xlu0 %v1114_v20, %s1473_s30  ;;  %1119 = vrot.lane.b32.xlu1 %v1113_v51, %s1473_s30 }
 0x1e1   : > { %1147 = vrot.lane.b32.xlu0 %v1141_v30, %s1473_s30  ;;  %1123 = vrot.lane.b32.xlu1 %v1115_v31, %s1473_s30 }
 0x1e5   : > { %1151 = vrot.lane.b32.xlu0 %v1143_v55, %s1473_s30  ;;  %1149 = vrot.lane.b32.xlu1 %v1142_v41, %s1473_s30 }
 0x1e9   : > { %1174 = vrot.lane.b32.xlu0 %v1168_v50, %s1473_s30  ;;  %1218 = vperm.xlu1 %1418, %v1215_v46  }
 0x1ed   : > { %1178 = vrot.lane.b32.xlu0 %v1170_v58, %s1473_s30  ;;  %1176 = vrot.lane.b32.xlu1 %v1169_v0, %s1473_s30 }
 0x1ee   : > { %1419 = vset.pattern.permute.xlu1 %v1433_v4 }
 0x1f1   : > { %1225 = vperm.xlu1 %1419, %v1215_v46   ;;  %1201 = vrot.lane.b32.xlu0 %v1195_v2, %s1473_s30 }
 0x1f5   : > { %1205 = vrot.lane.b32.xlu0 %v1197_v6, %s1473_s30  ;;  %1203 = vrot.lane.b32.xlu1 %v1196_v1, %s1473_s30 }
 0x207   : > { %v793_v59 = vpop.permute.xlu1 %792  ;;  %v795_v5 = vpop.permute.xlu0 %794 }
 0x208   : > { %v799_v12 = vsel %vm798_vm4, %v793_v59, %v795_v5 }
 0x209   : > { %v804_v25 = vsub.f32 %v1795_v43, %v799_v12 }
 0x20b   : > { %v797_v9 = vpop.permute.xlu1 %796  ;;  %v821_v7 = vpop.permute.xlu0 %820 }
 0x20c   : > { %v800_v4 = vsel %vm798_vm4, %v795_v5, %v797_v9  ;;  %v806_v46 = vsub.f32 %v778_v33, %v797_v9 }
 0x20d   : > { %v805_v60 = vsub.f32 %v1815_v3, %v800_v4 }
 0x20f   : > { %v823_v8 = vpop.permute.xlu1 %822  ;;  %v825_v32 = vpop.permute.xlu0 %824 }
 0x210   : > { %v826_v10 = vsel %vm798_vm4, %v821_v7, %v823_v8  ;;  %v827_v11 = vsel %vm798_vm4, %v823_v8, %v825_v32  ;;  %v833_v53 = vsub.f32 %v806_v46, %v825_v32 }
 0x211   : > { %v831_v16 = vsub.f32 %v804_v25, %v826_v10  ;;  %v832_v56 = vsub.f32 %v805_v60, %v827_v11 }
 0x213   : > { %v848_v17 = vpop.permute.xlu1 %847  ;;  %v850_v18 = vpop.permute.xlu0 %849 }
 0x214   : > { %v853_v19 = vsel %vm798_vm4, %v848_v17, %v850_v18 }
 0x215   : > { %v858_v22 = vsub.f32 %v831_v16, %v853_v19 }
 0x217   : > { %v852_v43 = vpop.permute.xlu1 %851  ;;  %v875_v13 = vpop.permute.xlu0 %874 }
 0x218   : > { %v854_v24 = vsel %vm798_vm4, %v850_v18, %v852_v43  ;;  %v860_v58 = vsub.f32 %v833_v53, %v852_v43 }
 0x219   : > { %v859_v27 = vsub.f32 %v832_v56, %v854_v24 }
 0x21b   : > { %v877_v37 = vpop.permute.xlu1 %876  ;;  %v879_v3 = vpop.permute.xlu0 %878 }
 0x21c   : > { %v880_v28 = vsel %vm798_vm4, %v875_v13, %v877_v37  ;;  %v887_v61 = vsub.f32 %v860_v58, %v879_v3  ;;  %v881_v29 = vsel %vm798_vm4, %v877_v37, %v879_v3 }
 0x21d   : > { %v885_v15 = vsub.f32 %v858_v22, %v880_v28  ;;  %v886_v9 = vsub.f32 %v859_v27, %v881_v29 }
 0x21f   : > { %v902_v62 = vpop.permute.xlu1 %901  ;;  %v904_v47 = vpop.permute.xlu0 %903 }
 0x220   : > { %v908_v23 = vsel %vm907_vm5, %v902_v62, %v904_v47 }
 0x221   : > { %v913_v10 = vsub.f32 %v885_v15, %v908_v23 }
 0x223   : > { %v906_v14 = vpop.permute.xlu1 %905  ;;  %v930_v21 = vpop.permute.xlu0 %929 }
 0x224   : > { %v915_v2 = vsub.f32 %v887_v61, %v906_v14  ;;  %v909_v12 = vsel %vm907_vm5, %v904_v47, %v906_v14 }
 0x225   : > { %v914_v11 = vsub.f32 %v886_v9, %v909_v12 }
 0x227   : > { %v932_v35 = vpop.permute.xlu1 %931  ;;  %v934_v38 = vpop.permute.xlu0 %933 }
 0x228   : > { %v942_v1 = vsub.f32 %v915_v2, %v934_v38  ;;  %v935_v4 = vsel %vm907_vm5, %v930_v21, %v932_v35  ;;  %v936_v60 = vsel %vm907_vm5, %v932_v35, %v934_v38 }
 0x229   : > { %v940_v18 = vsub.f32 %v913_v10, %v935_v4  ;;  %v941_v19 = vsub.f32 %v914_v11, %v936_v60 }
 0x22b   : > { %v957_v39 = vpop.permute.xlu1 %956  ;;  %v959_v40 = vpop.permute.xlu0 %958 }
 0x22c   : > { %v962_v16 = vsel %vm907_vm5, %v957_v39, %v959_v40 }
 0x22d   : > { %v967_v27 = vsub.f32 %v940_v18, %v962_v16 }
 0x22f   : > { %v961_v44 = vpop.permute.xlu1 %960  ;;  %v984_v48 = vpop.permute.xlu0 %983 }
 0x230   : > { %v969_v5 = vsub.f32 %v942_v1, %v961_v44  ;;  %v963_v56 = vsel %vm907_vm5, %v959_v40, %v961_v44  ;;  %v1232_v1 = vld [vmem:[%s212_s9 + $0x8] sm:$0xf] }
 0x231   : > { %v968_v37 = vsub.f32 %v941_v19, %v963_v56 }
 0x233   : > { %v986_v45 = vpop.permute.xlu1 %985  ;;  %v988_v51 = vpop.permute.xlu0 %987 }
 0x234   : > { %v996_v34 = vsub.f32 %v969_v5, %v988_v51  ;;  %v989_v22 = vsel %vm907_vm5, %v984_v48, %v986_v45  ;;  %v990_v43 = vsel %vm907_vm5, %v986_v45, %v988_v51 }
 0x235   : > { %v994_v47 = vsub.f32 %v967_v27, %v989_v22  ;;  %v995_v14 = vsub.f32 %v968_v37, %v990_v43 }
 0x237   : > { %v1011_v20 = vpop.permute.xlu1 %1010  ;;  %v1013_v52 = vpop.permute.xlu0 %1012 }
 0x238   : > { %v1017_v28 = vsel %vm1016_vm6, %v1011_v20, %v1013_v52 }
 0x239   : > { %v1022_v39 = vsub.f32 %v994_v47, %v1017_v28 }
 0x23b   : > { %v1015_v54 = vpop.permute.xlu1 %1014  ;;  %v1039_v26 = vpop.permute.xlu0 %1038 }
 0x23c   : > { %v1024_v25 = vsub.f32 %v996_v34, %v1015_v54  ;;  %v1018_v15 = vsel %vm1016_vm6, %v1013_v52, %v1015_v54 }
 0x23d   : > { %v1023_v40 = vsub.f32 %v995_v14, %v1018_v15 }
 0x23f   : > { %v1043_v30 = vpop.permute.xlu0 %1042  ;;  %v1041_v31 = vpop.permute.xlu1 %1040 }
 0x240   : > { %v1051_v8 = vsub.f32 %v1024_v25, %v1043_v30  ;;  %v1044_v21 = vsel %vm1016_vm6, %v1039_v26, %v1041_v31  ;;  %v1045_v35 = vsel %vm1016_vm6, %v1041_v31, %v1043_v30 }
 0x241   : > { %v1049_v33 = vsub.f32 %v1022_v39, %v1044_v21  ;;  %v1050_v52 = vsub.f32 %v1023_v40, %v1045_v35 }
 0x243   : > { %v1068_v41 = vpop.permute.xlu0 %1067  ;;  %v1066_v55 = vpop.permute.xlu1 %1065 }
 0x244   : > { %v1071_v45 = vsel %vm1016_vm6, %v1066_v55, %v1068_v41 }
 0x245   : > { %v1076_v31 = vsub.f32 %v1049_v33, %v1071_v45 }
 0x247   : > { %v1947_v57 = vpop.permute.xlu0 %1092  ;;  %v1070_v50 = vpop.permute.xlu1 %1069 }
 0x248   : > { %v1078_v17 = vsub.f32 %v1051_v8, %v1070_v50  ;;  %v1072_v51 = vsel %vm1016_vm6, %v1068_v41, %v1070_v50 }
 0x249   : > { %v1077_v46 = vsub.f32 %v1050_v52, %v1072_v51 }
 0x24b   : > { %v1097_v42 = vpop.permute.xlu0 %1096  ;;  %v1095_v49 = vpop.permute.xlu1 %1094 }
 0x24c   : > { %v1105_v13 = vsub.f32 %v1078_v17, %v1097_v42  ;;  %v1098_v54 = vsel %vm1016_vm6, %v1947_v57, %v1095_v49  ;;  %v1099_v26 = vsel %vm1016_vm6, %v1095_v49, %v1097_v42 }
 0x24d   : > { %v1103_v41 = vsub.f32 %v1076_v31, %v1098_v54  ;;  %v1104_v50 = vsub.f32 %v1077_v46, %v1099_v26 }
 0x24f   : > { %v1953_v0 = vpop.permute.xlu0 %1121  ;;  %v1120_v59 = vpop.permute.xlu1 %1119 }
 0x250   : > { %v1126_v58 = vsel %vm1125_vm7, %v1120_v59, %v1953_v0 }
 0x251   : > { %v1131_v61 = vsub.f32 %v1103_v41, %v1126_v58 }
 0x253   : > { %v1955_v63 = vpop.permute.xlu0 %1147  ;;  %v1124_v7 = vpop.permute.xlu1 %1123 }
 0x254   : > { %v1133_v62 = vsub.f32 %v1105_v13, %v1124_v7  ;;  %v1127_v55 = vsel %vm1125_vm7, %v1953_v0, %v1124_v7 }
 0x255   : > { %v1132_v2 = vsub.f32 %v1104_v50, %v1127_v55 }
 0x257   : > { %v1152_v6 = vpop.permute.xlu0 %1151  ;;  %v1150_v3 = vpop.permute.xlu1 %1149 }
 0x258   : > { %v1160_v38 = vsub.f32 %v1133_v62, %v1152_v6  ;;  %v1153_v57 = vsel %vm1125_vm7, %v1955_v63, %v1150_v3  ;;  %v1154_v42 = vsel %vm1125_vm7, %v1150_v3, %v1152_v6  ;;  %v1231_v6 = vld [vmem:[%s212_s9] sm:$0xff] }
 0x259   : > { %v1158_v34 = vsub.f32 %v1131_v61, %v1153_v57  ;;  %v1159_v23 = vsub.f32 %v1132_v2, %v1154_v42 }
 0x25b   : > { %v1175_v36 = vpop.permute.xlu0 %1174 }
 0x25f   : > { %v1179_v32 = vpop.permute.xlu0 %1178 }
 0x260   : > { %v1187_v20 = vsub.f32 %v1160_v38, %v1179_v32 }
 0x263   : > { %v1202_v24 = vpop.permute.xlu0 %1201 }
 0x267   : > { %v1206_v44 = vpop.permute.xlu0 %1205 }
 0x268   : > { %v1219_v48 = vpop.permute.xlu1 %1218  ;;  %v1214_v30 = vsub.f32 %v1187_v20, %v1206_v44 }
 0x26a   : > { %v1223_v49 = vmul.f32 %v1219_v48, %v1214_v30 }
 0x26c   : > { %v1177_v53 = vpop.permute.xlu1 %1176 }
 0x26d   : > { %v1180_v5 = vsel %vm1125_vm7, %v1175_v36, %v1177_v53  ;;  %v1181_v0 = vsel %vm1125_vm7, %v1177_v53, %v1179_v32  ;;  %v1234_v32 = vcombine.high %v1231_v6, %v1231_v6 }
 0x26e   : > { %v1185_v25 = vsub.f32 %v1158_v34, %v1180_v5  ;;  %v1186_v9 = vsub.f32 %v1159_v23, %v1181_v0 }
 0x270   : > { %v1226_v59 = vpop.permute.xlu1 %1225 }
 0x271   : > { %v1230_v29 = vadd.f32 %v1226_v59, %v1223_v49 }
 0x273   : > { %v1238_v12 = vadd.f32 %v1232_v1, %v1230_v29 }
 0x274   : > { %v1204_v63 = vpop.permute.xlu1 %1203 }
 0x275   : > { %v1241_v7 = vmax.f32 %v1238_v12, 0.0  ;;  %v1207_v4 = vsel %vm1125_vm7, %v1202_v24, %v1204_v63  ;;  %v1208_v36 = vsel %vm1125_vm7, %v1204_v63, %v1206_v44 }
 0x276   : > { %v1212_v60 = vsub.f32 %v1185_v25, %v1207_v4  ;;  %v1213_v8 = vsub.f32 %v1186_v9, %v1208_v36 }
 0x277   : > { %1248 = vst.msk [vmem:[%s217_s12 + $0x8] sm:$0xf] %vm1247_vm8, %v1241_v7 }
 0x278   : > { %v1221_v10 = vmul.f32 %v1219_v48, %v1212_v60  ;;  %v1222_v11 = vmul.f32 %v1219_v48, %v1213_v8 }
 0x27a   : > { %v1228_v16 = vadd.f32 %v1226_v59, %v1221_v10  ;;  %v1229_v56 = vadd.f32 %v1226_v59, %v1222_v11 }
 0x27c   : > { %v1236_v17 = vadd.f32 %v1231_v6, %v1228_v16  ;;  %v1237_v18 = vadd.f32 %v1234_v32, %v1229_v56 }
 0x27e   : > { %v1239_v19 = vmax.f32 %v1236_v17, 0.0  ;;  %v1240_v22 = vmax.f32 %v1237_v18, 0.0 }
 0x280   : > { %v1244_v43 = vcombine.low %v1239_v19, %v1240_v22 }
 0x282   : > { %1246 = vst [vmem:[%s217_s12] sm:$0xff] %v1244_v43 }
 0x283 PF: > { %s14_s15 = sadd.s32 1, %s1428_s15  }
 0x284   : > { %p11_p4 = scmp.ge.s32.totalorder %s14_s15, 4  }
 0x286   :  { %13 = sbr.rel (!%p11_p4) target bundleno = 1 (0x1), region = 72 }

</bundles_post_ra>
